<compile_context>
chip_gen: v7x
topology: tpu7x:2x2x1
jax: 0.10.0
libtpu: 0.0.40
codegen_flags: <defaults>
</compile_context>

<pallas_src>
import numpy as np
import jax
import jax.numpy as jnp
from jax.experimental import pallas as pl
from jax.experimental.pallas import tpu as pltpu


# ---------------------------------------------------------------------------
# Host-side weight preparation (one-time): banded / scatter matrices.
# Flat layout: activation with height H, width W, channels C is an (H, W*C)
# matrix, column index = j*C + c.
# ---------------------------------------------------------------------------
def _banded_conv(w_hwio, W, p, pool):
    """HWIO conv weight -> banded matmul weights.

    Returns (KH, W*Cin, W*Cout) for a plain conv.  If pool, the even/odd
    output-column parities are concatenated along the last axis:
    (KH, W*Cin, 2*(W//2)*Cout); width pooling is then an elementwise max of
    the two lane halves.  Width zero-padding of the input is folded into the
    zero band structure.
    """
    w = np.asarray(w_hwio, np.float32)
    KH, KW, Cin, Cout = w.shape
    B = np.zeros((KH, W * Cin, W * Cout), np.float32)
    for kh in range(KH):
        for j in range(W):
            for kw in range(KW):
                v = j + kw - p            # input width index (interior only)
                if 0 <= v < W:
                    B[kh, v * Cin:(v + 1) * Cin, j * Cout:(j + 1) * Cout] = w[kh, kw]
    if not pool:
        return B
    Br = B.reshape(KH, W * Cin, W, Cout)
    Be = Br[:, :, 0::2, :].reshape(KH, W * Cin, (W // 2) * Cout)
    Bo = Br[:, :, 1::2, :].reshape(KH, W * Cin, (W // 2) * Cout)
    return np.concatenate([Be, Bo], axis=-1)          # (KH, W*Cin, 128)


def _tran_matrix(wt, W):
    """(Cin,Cout,2,2) ConvTranspose2d weight -> (W*Cin, 2*(2W*Cout)) scatter.

    Columns [0 : 2W*Cout) produce output rows 2i (di=0), the second block
    produces rows 2i+1 (di=1); inside a block the column is (2j+dj)*Cout + o.
    """
    wt = np.asarray(wt, np.float32)
    Cin, Cout = wt.shape[0], wt.shape[1]
    blk = 2 * W * Cout
    T = np.zeros((W * Cin, 2 * blk), np.float32)
    for di in range(2):
        for j in range(W):
            for dj in range(2):
                col = di * blk + (2 * j + dj) * Cout
                T[j * Cin:(j + 1) * Cin, col:col + Cout] = wt[:, :, di, dj]
    return T


def prepare_kernel_weights(p):
    """Raw params -> list of arrays in the kernel's positional order."""
    arrs = []

    def add_conv(wk, bk, W, pad_, pool):
        arrs.append(jnp.asarray(_banded_conv(p[wk], W, pad_, pool)))
        reps = (W // 2) if pool else W
        arrs.append(jnp.asarray(np.tile(np.asarray(p[bk], np.float32), reps)[None, :]))

    def add_tran(wk, bk, W):
        arrs.append(jnp.asarray(_tran_matrix(p[wk], W)))
        arrs.append(jnp.asarray(np.tile(np.asarray(p[bk], np.float32), 4 * W)[None, :]))

    add_conv('c1w', 'c1b', 16, 2, True)
    add_conv('c2w', 'c2b', 8, 2, True)
    add_conv('c3w', 'c3b', 4, 1, True)
    add_conv('c4w', 'c4b', 2, 1, False)
    add_conv('c42w', 'c42b', 2, 1, False)
    add_tran('t4w', 't4b', 2)
    add_conv('c5w', 'c5b', 4, 1, False)
    add_tran('t5w', 't5b', 4)
    add_conv('c6w', 'c6b', 8, 2, False)
    add_tran('t6w', 't6b', 8)
    add_conv('c7w', 'c7b', 16, 2, False)

    # 0/1 row-selection (max-pool rows) and row-interleave (depth-to-space).
    se = np.zeros((8, 16), np.float32); se[np.arange(8), 2 * np.arange(8)] = 1.0
    so = np.zeros((8, 16), np.float32); so[np.arange(8), 2 * np.arange(8) + 1] = 1.0
    p0 = np.zeros((16, 8), np.float32); p0[2 * np.arange(8), np.arange(8)] = 1.0
    p1 = np.zeros((16, 8), np.float32); p1[2 * np.arange(8) + 1, np.arange(8)] = 1.0
    arrs.append(jnp.asarray(np.stack([se, so])))   # SEL (2, 8, 16)
    arrs.append(jnp.asarray(np.stack([p0, p1])))   # PRM (2, 16, 8)
    return arrs


# ---------------------------------------------------------------------------
# The single fused kernel.
# ---------------------------------------------------------------------------
def _fused_kernel(x_ref,
                  w1, b1, w2, b2, w3, b3, w4, b4, w42, b42,
                  t4w, t4b, w5, b5, t5w, t5b, w6, b6, t6w, t6b,
                  w7, b7, sel, prm, o_ref, pad):
    f32 = jnp.float32

    def conv(x, w_ref, b_ref, H, W, Cin, K, p, pool, relu):
        Lin = W * Cin
        # Width zero-padding is folded into the banded weights; only the p top
        # and p bottom row-padding rows (over the contracted columns) need to
        # be zero.  Interior rows are fully overwritten by `x`.
        pad[0:p, 0:Lin] = jnp.zeros((p, Lin), f32)
        pad[p + H:p + H + p, 0:Lin] = jnp.zeros((p, Lin), f32)
        pad[p:p + H, 0:Lin] = x

        out = jnp.dot(pad[0:H, 0:Lin], w_ref[0], preferred_element_type=f32)
        for kh in range(1, K):
            out = out + jnp.dot(pad[kh:kh + H, 0:Lin], w_ref[kh],
                                preferred_element_type=f32)

        bb = b_ref[...]                                     # (1, Ncol)
        if pool:
            half = bb.shape[-1]                             # (W//2)*Cout
            # Width (dj) pooling: max of the even/odd lane halves, then bias.
            m = jnp.maximum(out[:, 0:half], out[:, half:2 * half]) + bb
            if relu:
                m = jnp.maximum(m, 0.0)
            se = sel[0, 0:H // 2, 0:H]
            so = sel[1, 0:H // 2, 0:H]
            return jnp.maximum(                             # height (di) pooling
                jnp.dot(se, m, preferred_element_type=f32),
                jnp.dot(so, m, preferred_element_type=f32))
        out = out + bb
        if relu:
            out = jnp.maximum(out, 0.0)
        return out

    def conv_tran(x, t_ref, b_ref, H):
        # One matmul emits both output-row parities side by side:
        # columns [0:128) -> rows 2i, columns [128:256) -> rows 2i+1.
        r = jnp.dot(x, t_ref[...], preferred_element_type=f32) + b_ref[...]
        r = jnp.maximum(r, 0.0)
        p0 = prm[0, 0:2 * H, 0:H]
        p1 = prm[1, 0:2 * H, 0:H]
        return (jnp.dot(p0, r[:, 0:128], preferred_element_type=f32) +
                jnp.dot(p1, r[:, 128:256], preferred_element_type=f32))

    h = x_ref[0]                                                   # (16, 48)
    h = conv(h, w1, b1, 16, 16, 3, 5, 2, True, True)               # (8, 64)
    h = conv(h, w2, b2, 8, 8, 8, 5, 2, True, True)                 # (4, 64)
    h = conv(h, w3, b3, 4, 4, 16, 3, 1, True, True)                # (2, 64)
    h = conv(h, w4, b4, 2, 2, 32, 3, 1, False, True)               # (2, 64)
    h = conv(h, w42, b42, 2, 2, 32, 3, 1, False, True)             # (2, 64)
    h = conv_tran(h, t4w, t4b, 2)                                  # (4, 128)
    h = conv(h, w5, b5, 4, 4, 32, 3, 1, False, True)               # (4, 64)
    h = conv_tran(h, t5w, t5b, 4)                                  # (8, 128)
    h = conv(h, w6, b6, 8, 8, 16, 5, 2, False, True)               # (8, 64)
    h = conv_tran(h, t6w, t6b, 8)                                  # (16, 128)
    h = conv(h, w7, b7, 16, 16, 8, 5, 2, False, False)             # (16, 32)
    o_ref[0, :, :] = h


# ---------------------------------------------------------------------------
# Public wrapper: NCHW in, NCHW out, one pallas_call for the whole network.
# ---------------------------------------------------------------------------
def second_model_forward(x_nchw, weights):
    N = x_nchw.shape[0]
    # NCHW -> flat (N, H, W*C); a couple of tiny XLA ops on a ~3 KB tensor.
    xf = jnp.transpose(x_nchw, (0, 2, 3, 1)).reshape(N, 16, 48).astype(jnp.float32)
    ins = [xf] + list(weights)

    def full_spec(a):
        zeros = (0,) * a.ndim
        return pl.BlockSpec(a.shape, lambda n, z=zeros: z)

    in_specs = [pl.BlockSpec((1, 16, 48), lambda n: (n, 0, 0))]
    in_specs += [full_spec(a) for a in weights]

    out = pl.pallas_call(
        _fused_kernel,
        out_shape=jax.ShapeDtypeStruct((N, 16, 32), jnp.float32),
        grid=(N,),
        in_specs=in_specs,
        out_specs=pl.BlockSpec((1, 16, 32), lambda n: (n, 0, 0)),
        scratch_shapes=[pltpu.VMEM((20, 128), jnp.float32)],
        compiler_params=pltpu.CompilerParams(
            dimension_semantics=("parallel",)),
    )(*ins)
    # flat (N, 16, 16*2) with column order (j, o)  ->  NCHW (N, 2, 16, 16)
    return jnp.transpose(out.reshape(N, 16, 16, 2), (0, 3, 1, 2))


# ---------------------------------------------------------------------------
# Deterministic synthetic parameters matching SecondModel's layer shapes.
# ---------------------------------------------------------------------------
def init_params(key):
    def conv_w(k, kh, kw, cin, cout):
        bound = 1.0 / np.sqrt(cin * kh * kw)
        return jax.random.uniform(k, (kh, kw, cin, cout), jnp.float32, -bound, bound)

    def tran_w(k, cin, cout):
        bound = 1.0 / np.sqrt(cin * 4)
        return jax.random.uniform(k, (cin, cout, 2, 2), jnp.float32, -bound, bound)

    ks = jax.random.split(key, 22)
    p = {}
    p['c1w'] = conv_w(ks[0], 5, 5, 3, 8);    p['c1b'] = jax.random.normal(ks[1], (8,)) * 0.02
    p['c2w'] = conv_w(ks[2], 5, 5, 8, 16);   p['c2b'] = jax.random.normal(ks[3], (16,)) * 0.02
    p['c3w'] = conv_w(ks[4], 3, 3, 16, 32);  p['c3b'] = jax.random.normal(ks[5], (32,)) * 0.02
    p['c4w'] = conv_w(ks[6], 3, 3, 32, 32);  p['c4b'] = jax.random.normal(ks[7], (32,)) * 0.02
    p['c42w'] = conv_w(ks[8], 3, 3, 32, 32); p['c42b'] = jax.random.normal(ks[9], (32,)) * 0.02
    p['t4w'] = tran_w(ks[10], 32, 32);       p['t4b'] = jax.random.normal(ks[11], (32,)) * 0.02
    p['c5w'] = conv_w(ks[12], 3, 3, 32, 16); p['c5b'] = jax.random.normal(ks[13], (16,)) * 0.02
    p['t5w'] = tran_w(ks[14], 16, 16);       p['t5b'] = jax.random.normal(ks[15], (16,)) * 0.02
    p['c6w'] = conv_w(ks[16], 5, 5, 16, 8);  p['c6b'] = jax.random.normal(ks[17], (8,)) * 0.02
    p['t6w'] = tran_w(ks[18], 8, 8);         p['t6b'] = jax.random.normal(ks[19], (8,)) * 0.02
    p['c7w'] = conv_w(ks[20], 5, 5, 8, 2);   p['c7b'] = jax.random.normal(ks[21], (2,)) * 0.02
    return {k: v.astype(jnp.float32) for k, v in p.items()}


# ---------------------------------------------------------------------------
# Pure-JAX reference (lax convs) for the correctness cross-check.
# ---------------------------------------------------------------------------
def _conv_ref(x, w, b, pad):
    y = jax.lax.conv_general_dilated(
        x, w, (1, 1), [(pad, pad), (pad, pad)],
        dimension_numbers=('NHWC', 'HWIO', 'NHWC'))
    return y + b


def _pool_ref(x):
    return jax.lax.reduce_window(x, -jnp.inf, jax.lax.max,
                                 (1, 2, 2, 1), (1, 2, 2, 1), 'VALID')


def _tran_ref(x, wt, b):
    N, H, W, _ = x.shape
    Cout = wt.shape[1]
    y = jnp.einsum('nijc,coab->niajbo', x, wt)
    return y.reshape(N, 2 * H, 2 * W, Cout) + b


def second_model_reference(x_nchw, p):
    relu = lambda t: jnp.maximum(t, 0.0)
    x = jnp.transpose(x_nchw, (0, 2, 3, 1))
    h = _pool_ref(relu(_conv_ref(x, p['c1w'], p['c1b'], 2)))
    h = _pool_ref(relu(_conv_ref(h, p['c2w'], p['c2b'], 2)))
    h = _pool_ref(relu(_conv_ref(h, p['c3w'], p['c3b'], 1)))
    h = relu(_conv_ref(h, p['c4w'], p['c4b'], 1))
    h = relu(_conv_ref(h, p['c42w'], p['c42b'], 1))
    h = relu(_tran_ref(h, p['t4w'], p['t4b']))
    h = relu(_conv_ref(h, p['c5w'], p['c5b'], 1))
    h = relu(_tran_ref(h, p['t5w'], p['t5b']))
    h = relu(_conv_ref(h, p['c6w'], p['c6b'], 2))
    h = relu(_tran_ref(h, p['t6w'], p['t6b']))
    h = _conv_ref(h, p['c7w'], p['c7b'], 2)
    return jnp.transpose(h, (0, 3, 1, 2))


if __name__ == "__main__":
    key = jax.random.PRNGKey(0)
    kx, kp = jax.random.split(key)
    x = jax.random.normal(kx, (2, 3, 16, 16), jnp.float32)   # NCHW like PyTorch
    params = init_params(kp)
    weights = prepare_kernel_weights(params)

    fwd = jax.jit(second_model_forward)
    out = jax.block_until_ready(fwd(x, weights))
    assert out.shape == (2, 2, 16, 16), out.shape

    ref = jax.block_until_ready(jax.jit(second_model_reference)(x, params))
    np.testing.assert_allclose(np.asarray(out), np.asarray(ref), atol=5e-4, rtol=5e-4)

    print("KERNEL_OK")
</pallas_src>

<mosaic_0001>
module attributes {stable_mosaic.version = 11 : i64} {
  func.func @_fused_kernel(%arg0: i32, %arg1: memref<1x16x48xf32, #tpu.memory_space<vmem>>, %arg2: memref<5x48x128xf32, #tpu.memory_space<vmem>>, %arg3: memref<1x64xf32, #tpu.memory_space<vmem>>, %arg4: memref<5x64x128xf32, #tpu.memory_space<vmem>>, %arg5: memref<1x64xf32, #tpu.memory_space<vmem>>, %arg6: memref<3x64x128xf32, #tpu.memory_space<vmem>>, %arg7: memref<1x64xf32, #tpu.memory_space<vmem>>, %arg8: memref<3x64x64xf32, #tpu.memory_space<vmem>>, %arg9: memref<1x64xf32, #tpu.memory_space<vmem>>, %arg10: memref<3x64x64xf32, #tpu.memory_space<vmem>>, %arg11: memref<1x64xf32, #tpu.memory_space<vmem>>, %arg12: memref<64x256xf32, #tpu.memory_space<vmem>>, %arg13: memref<1x256xf32, #tpu.memory_space<vmem>>, %arg14: memref<3x128x64xf32, #tpu.memory_space<vmem>>, %arg15: memref<1x64xf32, #tpu.memory_space<vmem>>, %arg16: memref<64x256xf32, #tpu.memory_space<vmem>>, %arg17: memref<1x256xf32, #tpu.memory_space<vmem>>, %arg18: memref<5x128x64xf32, #tpu.memory_space<vmem>>, %arg19: memref<1x64xf32, #tpu.memory_space<vmem>>, %arg20: memref<64x256xf32, #tpu.memory_space<vmem>>, %arg21: memref<1x256xf32, #tpu.memory_space<vmem>>, %arg22: memref<5x128x32xf32, #tpu.memory_space<vmem>>, %arg23: memref<1x32xf32, #tpu.memory_space<vmem>>, %arg24: memref<2x8x16xf32, #tpu.memory_space<vmem>>, %arg25: memref<2x16x8xf32, #tpu.memory_space<vmem>>, %arg26: memref<1x16x32xf32, #tpu.memory_space<vmem>>, %arg27: memref<20x128xf32, #tpu.memory_space<vmem>>) attributes {dimension_semantics = [#tpu.dimension_semantics<parallel>], iteration_bounds = array<i64: 2>, scalar_prefetch = 0 : i64, scratch_operands = 1 : i64, tpu.core_type = #tpu.core_type<tc>, window_params = [{transform_indices = @transform_0, window_bounds = array<i64: 1, 16, 48>}, {pipeline_mode = #tpu.pipeline_mode<synchronous>, transform_indices = @transform_1, window_bounds = array<i64: 5, 48, 128>}, {pipeline_mode = #tpu.pipeline_mode<synchronous>, transform_indices = @transform_2, window_bounds = array<i64: 1, 64>}, {pipeline_mode = #tpu.pipeline_mode<synchronous>, transform_indices = @transform_3, window_bounds = array<i64: 5, 64, 128>}, {pipeline_mode = #tpu.pipeline_mode<synchronous>, transform_indices = @transform_4, window_bounds = array<i64: 1, 64>}, {pipeline_mode = #tpu.pipeline_mode<synchronous>, transform_indices = @transform_5, window_bounds = array<i64: 3, 64, 128>}, {pipeline_mode = #tpu.pipeline_mode<synchronous>, transform_indices = @transform_6, window_bounds = array<i64: 1, 64>}, {pipeline_mode = #tpu.pipeline_mode<synchronous>, transform_indices = @transform_7, window_bounds = array<i64: 3, 64, 64>}, {pipeline_mode = #tpu.pipeline_mode<synchronous>, transform_indices = @transform_8, window_bounds = array<i64: 1, 64>}, {pipeline_mode = #tpu.pipeline_mode<synchronous>, transform_indices = @transform_9, window_bounds = array<i64: 3, 64, 64>}, {pipeline_mode = #tpu.pipeline_mode<synchronous>, transform_indices = @transform_10, window_bounds = array<i64: 1, 64>}, {pipeline_mode = #tpu.pipeline_mode<synchronous>, transform_indices = @transform_11, window_bounds = array<i64: 64, 256>}, {pipeline_mode = #tpu.pipeline_mode<synchronous>, transform_indices = @transform_12, window_bounds = array<i64: 1, 256>}, {pipeline_mode = #tpu.pipeline_mode<synchronous>, transform_indices = @transform_13, window_bounds = array<i64: 3, 128, 64>}, {pipeline_mode = #tpu.pipeline_mode<synchronous>, transform_indices = @transform_14, window_bounds = array<i64: 1, 64>}, {pipeline_mode = #tpu.pipeline_mode<synchronous>, transform_indices = @transform_15, window_bounds = array<i64: 64, 256>}, {pipeline_mode = #tpu.pipeline_mode<synchronous>, transform_indices = @transform_16, window_bounds = array<i64: 1, 256>}, {pipeline_mode = #tpu.pipeline_mode<synchronous>, transform_indices = @transform_17, window_bounds = array<i64: 5, 128, 64>}, {pipeline_mode = #tpu.pipeline_mode<synchronous>, transform_indices = @transform_18, window_bounds = array<i64: 1, 64>}, {pipeline_mode = #tpu.pipeline_mode<synchronous>, transform_indices = @transform_19, window_bounds = array<i64: 64, 256>}, {pipeline_mode = #tpu.pipeline_mode<synchronous>, transform_indices = @transform_20, window_bounds = array<i64: 1, 256>}, {pipeline_mode = #tpu.pipeline_mode<synchronous>, transform_indices = @transform_21, window_bounds = array<i64: 5, 128, 32>}, {pipeline_mode = #tpu.pipeline_mode<synchronous>, transform_indices = @transform_22, window_bounds = array<i64: 1, 32>}, {pipeline_mode = #tpu.pipeline_mode<synchronous>, transform_indices = @transform_23, window_bounds = array<i64: 2, 8, 16>}, {pipeline_mode = #tpu.pipeline_mode<synchronous>, transform_indices = @transform_24, window_bounds = array<i64: 2, 16, 8>}, {transform_indices = @transform_25, window_bounds = array<i64: 1, 16, 32>}]} {
    %c0 = arith.constant 0 : index
    %c0_0 = arith.constant 0 : index
    %c0_1 = arith.constant 0 : index
    %0 = vector.load %arg1[%c0, %c0_0, %c0_1] : memref<1x16x48xf32, #tpu.memory_space<vmem>>, vector<1x16x48xf32>
    %1 = vector.shape_cast %0 : vector<1x16x48xf32> to vector<16x48xf32>
    %cst = arith.constant 0.000000e+00 : f32
    %2 = vector.broadcast %cst : f32 to vector<2x48xf32>
    %c0_2 = arith.constant 0 : index
    %c0_3 = arith.constant 0 : index
    %3 = vector.load %arg27[%c0_2, %c0_3] : memref<20x128xf32, #tpu.memory_space<vmem>>, vector<2x48xf32>
    tpu.vector_store %arg27[%c0_2, %c0_3], %2 {strides = array<i32>} : memref<20x128xf32, #tpu.memory_space<vmem>>, vector<2x48xf32>,
    %cst_4 = arith.constant 0.000000e+00 : f32
    %4 = vector.broadcast %cst_4 : f32 to vector<2x48xf32>
    %c18 = arith.constant 18 : index
    %c0_5 = arith.constant 0 : index
    %5 = vector.load %arg27[%c18, %c0_5] : memref<20x128xf32, #tpu.memory_space<vmem>>, vector<2x48xf32>
    tpu.vector_store %arg27[%c18, %c0_5], %4 {strides = array<i32>} : memref<20x128xf32, #tpu.memory_space<vmem>>, vector<2x48xf32>,
    %c2 = arith.constant 2 : index
    %c0_6 = arith.constant 0 : index
    %6 = vector.load %arg27[%c2, %c0_6] : memref<20x128xf32, #tpu.memory_space<vmem>>, vector<16x48xf32>
    tpu.vector_store %arg27[%c2, %c0_6], %1 {strides = array<i32>} : memref<20x128xf32, #tpu.memory_space<vmem>>, vector<16x48xf32>,
    %c0_7 = arith.constant 0 : index
    %c0_8 = arith.constant 0 : index
    %7 = vector.load %arg27[%c0_7, %c0_8] : memref<20x128xf32, #tpu.memory_space<vmem>>, vector<16x48xf32>
    %c0_9 = arith.constant 0 : index
    %c0_10 = arith.constant 0 : index
    %c0_11 = arith.constant 0 : index
    %8 = vector.load %arg2[%c0_9, %c0_10, %c0_11] : memref<5x48x128xf32, #tpu.memory_space<vmem>>, vector<1x48x128xf32>
    %9 = vector.shape_cast %8 : vector<1x48x128xf32> to vector<48x128xf32>
    %cst_12 = arith.constant dense<0.000000e+00> : vector<16x128xf32>
    %10 = tpu.matmul %7, %9, %cst_12 {dimension_numbers = #tpu.dot_dimension_numbers<[1], [0], [0], [1], [0, 0, 1, 1], [], []>} : vector<16x48xf32>, vector<48x128xf32>, vector<16x128xf32> -> vector<16x128xf32>
    %c1 = arith.constant 1 : index
    %c0_13 = arith.constant 0 : index
    %11 = vector.load %arg27[%c1, %c0_13] : memref<20x128xf32, #tpu.memory_space<vmem>>, vector<16x48xf32>
    %c1_14 = arith.constant 1 : index
    %c0_15 = arith.constant 0 : index
    %c0_16 = arith.constant 0 : index
    %12 = vector.load %arg2[%c1_14, %c0_15, %c0_16] : memref<5x48x128xf32, #tpu.memory_space<vmem>>, vector<1x48x128xf32>
    %13 = vector.shape_cast %12 : vector<1x48x128xf32> to vector<48x128xf32>
    %cst_17 = arith.constant dense<0.000000e+00> : vector<16x128xf32>
    %14 = tpu.matmul %11, %13, %cst_17 {dimension_numbers = #tpu.dot_dimension_numbers<[1], [0], [0], [1], [0, 0, 1, 1], [], []>} : vector<16x48xf32>, vector<48x128xf32>, vector<16x128xf32> -> vector<16x128xf32>
    %15 = arith.addf %10, %14 : vector<16x128xf32>
    %c2_18 = arith.constant 2 : index
    %c0_19 = arith.constant 0 : index
    %16 = vector.load %arg27[%c2_18, %c0_19] : memref<20x128xf32, #tpu.memory_space<vmem>>, vector<16x48xf32>
    %c2_20 = arith.constant 2 : index
    %c0_21 = arith.constant 0 : index
    %c0_22 = arith.constant 0 : index
    %17 = vector.load %arg2[%c2_20, %c0_21, %c0_22] : memref<5x48x128xf32, #tpu.memory_space<vmem>>, vector<1x48x128xf32>
    %18 = vector.shape_cast %17 : vector<1x48x128xf32> to vector<48x128xf32>
    %cst_23 = arith.constant dense<0.000000e+00> : vector<16x128xf32>
    %19 = tpu.matmul %16, %18, %cst_23 {dimension_numbers = #tpu.dot_dimension_numbers<[1], [0], [0], [1], [0, 0, 1, 1], [], []>} : vector<16x48xf32>, vector<48x128xf32>, vector<16x128xf32> -> vector<16x128xf32>
    %20 = arith.addf %15, %19 : vector<16x128xf32>
    %c3 = arith.constant 3 : index
    %c0_24 = arith.constant 0 : index
    %21 = vector.load %arg27[%c3, %c0_24] : memref<20x128xf32, #tpu.memory_space<vmem>>, vector<16x48xf32>
    %c3_25 = arith.constant 3 : index
    %c0_26 = arith.constant 0 : index
    %c0_27 = arith.constant 0 : index
    %22 = vector.load %arg2[%c3_25, %c0_26, %c0_27] : memref<5x48x128xf32, #tpu.memory_space<vmem>>, vector<1x48x128xf32>
    %23 = vector.shape_cast %22 : vector<1x48x128xf32> to vector<48x128xf32>
    %cst_28 = arith.constant dense<0.000000e+00> : vector<16x128xf32>
    %24 = tpu.matmul %21, %23, %cst_28 {dimension_numbers = #tpu.dot_dimension_numbers<[1], [0], [0], [1], [0, 0, 1, 1], [], []>} : vector<16x48xf32>, vector<48x128xf32>, vector<16x128xf32> -> vector<16x128xf32>
    %25 = arith.addf %20, %24 : vector<16x128xf32>
    %c4 = arith.constant 4 : index
    %c0_29 = arith.constant 0 : index
    %26 = vector.load %arg27[%c4, %c0_29] : memref<20x128xf32, #tpu.memory_space<vmem>>, vector<16x48xf32>
    %c4_30 = arith.constant 4 : index
    %c0_31 = arith.constant 0 : index
    %c0_32 = arith.constant 0 : index
    %27 = vector.load %arg2[%c4_30, %c0_31, %c0_32] : memref<5x48x128xf32, #tpu.memory_space<vmem>>, vector<1x48x128xf32>
    %28 = vector.shape_cast %27 : vector<1x48x128xf32> to vector<48x128xf32>
    %cst_33 = arith.constant dense<0.000000e+00> : vector<16x128xf32>
    %29 = tpu.matmul %26, %28, %cst_33 {dimension_numbers = #tpu.dot_dimension_numbers<[1], [0], [0], [1], [0, 0, 1, 1], [], []>} : vector<16x48xf32>, vector<48x128xf32>, vector<16x128xf32> -> vector<16x128xf32>
    %30 = arith.addf %25, %29 : vector<16x128xf32>
    %c0_34 = arith.constant 0 : index
    %c0_35 = arith.constant 0 : index
    %31 = vector.load %arg3[%c0_34, %c0_35] : memref<1x64xf32, #tpu.memory_space<vmem>>, vector<1x64xf32>
    %32 = vector.extract_strided_slice %30 {offsets = [0, 0], sizes = [16, 64], strides = [1, 1]} : vector<16x128xf32> to vector<16x64xf32>
    %33 = vector.extract_strided_slice %30 {offsets = [0, 64], sizes = [16, 64], strides = [1, 1]} : vector<16x128xf32> to vector<16x64xf32>
    %34 = arith.maximumf %32, %33 : vector<16x64xf32>
    %35 = vector.broadcast %31 : vector<1x64xf32> to vector<16x64xf32>
    %36 = arith.addf %34, %35 : vector<16x64xf32>
    %cst_36 = arith.constant 0.000000e+00 : f32
    %37 = vector.broadcast %cst_36 : f32 to vector<16x64xf32>
    %38 = arith.maximumf %36, %37 : vector<16x64xf32>
    %c0_37 = arith.constant 0 : index
    %c0_38 = arith.constant 0 : index
    %c0_39 = arith.constant 0 : index
    %39 = vector.load %arg24[%c0_37, %c0_38, %c0_39] : memref<2x8x16xf32, #tpu.memory_space<vmem>>, vector<1x8x16xf32>
    %40 = vector.shape_cast %39 : vector<1x8x16xf32> to vector<8x16xf32>
    %c1_40 = arith.constant 1 : index
    %c0_41 = arith.constant 0 : index
    %c0_42 = arith.constant 0 : index
    %41 = vector.load %arg24[%c1_40, %c0_41, %c0_42] : memref<2x8x16xf32, #tpu.memory_space<vmem>>, vector<1x8x16xf32>
    %42 = vector.shape_cast %41 : vector<1x8x16xf32> to vector<8x16xf32>
    %cst_43 = arith.constant dense<0.000000e+00> : vector<8x64xf32>
    %43 = tpu.matmul %40, %38, %cst_43 {dimension_numbers = #tpu.dot_dimension_numbers<[1], [0], [0], [1], [0, 0, 1, 1], [], []>} : vector<8x16xf32>, vector<16x64xf32>, vector<8x64xf32> -> vector<8x64xf32>
    %cst_44 = arith.constant dense<0.000000e+00> : vector<8x64xf32>
    %44 = tpu.matmul %42, %38, %cst_44 {dimension_numbers = #tpu.dot_dimension_numbers<[1], [0], [0], [1], [0, 0, 1, 1], [], []>} : vector<8x16xf32>, vector<16x64xf32>, vector<8x64xf32> -> vector<8x64xf32>
    %45 = arith.maximumf %43, %44 : vector<8x64xf32>
    %cst_45 = arith.constant 0.000000e+00 : f32
    %46 = vector.broadcast %cst_45 : f32 to vector<2x64xf32>
    %c0_46 = arith.constant 0 : index
    %c0_47 = arith.constant 0 : index
    %47 = vector.load %arg27[%c0_46, %c0_47] : memref<20x128xf32, #tpu.memory_space<vmem>>, vector<2x64xf32>
    tpu.vector_store %arg27[%c0_46, %c0_47], %46 {strides = array<i32>} : memref<20x128xf32, #tpu.memory_space<vmem>>, vector<2x64xf32>,
    %cst_48 = arith.constant 0.000000e+00 : f32
    %48 = vector.broadcast %cst_48 : f32 to vector<2x64xf32>
    %c10 = arith.constant 10 : index
    %c0_49 = arith.constant 0 : index
    %49 = vector.load %arg27[%c10, %c0_49] : memref<20x128xf32, #tpu.memory_space<vmem>>, vector<2x64xf32>
    tpu.vector_store %arg27[%c10, %c0_49], %48 {strides = array<i32>} : memref<20x128xf32, #tpu.memory_space<vmem>>, vector<2x64xf32>,
    %c2_50 = arith.constant 2 : index
    %c0_51 = arith.constant 0 : index
    %50 = vector.load %arg27[%c2_50, %c0_51] : memref<20x128xf32, #tpu.memory_space<vmem>>, vector<8x64xf32>
    tpu.vector_store %arg27[%c2_50, %c0_51], %45 {strides = array<i32>} : memref<20x128xf32, #tpu.memory_space<vmem>>, vector<8x64xf32>,
    %c0_52 = arith.constant 0 : index
    %c0_53 = arith.constant 0 : index
    %51 = vector.load %arg27[%c0_52, %c0_53] : memref<20x128xf32, #tpu.memory_space<vmem>>, vector<8x64xf32>
    %c0_54 = arith.constant 0 : index
    %c0_55 = arith.constant 0 : index
    %c0_56 = arith.constant 0 : index
    %52 = vector.load %arg4[%c0_54, %c0_55, %c0_56] : memref<5x64x128xf32, #tpu.memory_space<vmem>>, vector<1x64x128xf32>
    %53 = vector.shape_cast %52 : vector<1x64x128xf32> to vector<64x128xf32>
    %cst_57 = arith.constant dense<0.000000e+00> : vector<8x128xf32>
    %54 = tpu.matmul %51, %53, %cst_57 {dimension_numbers = #tpu.dot_dimension_numbers<[1], [0], [0], [1], [0, 0, 1, 1], [], []>} : vector<8x64xf32>, vector<64x128xf32>, vector<8x128xf32> -> vector<8x128xf32>
    %c1_58 = arith.constant 1 : index
    %c0_59 = arith.constant 0 : index
    %55 = vector.load %arg27[%c1_58, %c0_59] : memref<20x128xf32, #tpu.memory_space<vmem>>, vector<8x64xf32>
    %c1_60 = arith.constant 1 : index
    %c0_61 = arith.constant 0 : index
    %c0_62 = arith.constant 0 : index
    %56 = vector.load %arg4[%c1_60, %c0_61, %c0_62] : memref<5x64x128xf32, #tpu.memory_space<vmem>>, vector<1x64x128xf32>
    %57 = vector.shape_cast %56 : vector<1x64x128xf32> to vector<64x128xf32>
    %cst_63 = arith.constant dense<0.000000e+00> : vector<8x128xf32>
    %58 = tpu.matmul %55, %57, %cst_63 {dimension_numbers = #tpu.dot_dimension_numbers<[1], [0], [0], [1], [0, 0, 1, 1], [], []>} : vector<8x64xf32>, vector<64x128xf32>, vector<8x128xf32> -> vector<8x128xf32>
    %59 = arith.addf %54, %58 : vector<8x128xf32>
    %c2_64 = arith.constant 2 : index
    %c0_65 = arith.constant 0 : index
    %60 = vector.load %arg27[%c2_64, %c0_65] : memref<20x128xf32, #tpu.memory_space<vmem>>, vector<8x64xf32>
    %c2_66 = arith.constant 2 : index
    %c0_67 = arith.constant 0 : index
    %c0_68 = arith.constant 0 : index
    %61 = vector.load %arg4[%c2_66, %c0_67, %c0_68] : memref<5x64x128xf32, #tpu.memory_space<vmem>>, vector<1x64x128xf32>
    %62 = vector.shape_cast %61 : vector<1x64x128xf32> to vector<64x128xf32>
    %cst_69 = arith.constant dense<0.000000e+00> : vector<8x128xf32>
    %63 = tpu.matmul %60, %62, %cst_69 {dimension_numbers = #tpu.dot_dimension_numbers<[1], [0], [0], [1], [0, 0, 1, 1], [], []>} : vector<8x64xf32>, vector<64x128xf32>, vector<8x128xf32> -> vector<8x128xf32>
    %64 = arith.addf %59, %63 : vector<8x128xf32>
    %c3_70 = arith.constant 3 : index
    %c0_71 = arith.constant 0 : index
    %65 = vector.load %arg27[%c3_70, %c0_71] : memref<20x128xf32, #tpu.memory_space<vmem>>, vector<8x64xf32>
    %c3_72 = arith.constant 3 : index
    %c0_73 = arith.constant 0 : index
    %c0_74 = arith.constant 0 : index
    %66 = vector.load %arg4[%c3_72, %c0_73, %c0_74] : memref<5x64x128xf32, #tpu.memory_space<vmem>>, vector<1x64x128xf32>
    %67 = vector.shape_cast %66 : vector<1x64x128xf32> to vector<64x128xf32>
    %cst_75 = arith.constant dense<0.000000e+00> : vector<8x128xf32>
    %68 = tpu.matmul %65, %67, %cst_75 {dimension_numbers = #tpu.dot_dimension_numbers<[1], [0], [0], [1], [0, 0, 1, 1], [], []>} : vector<8x64xf32>, vector<64x128xf32>, vector<8x128xf32> -> vector<8x128xf32>
    %69 = arith.addf %64, %68 : vector<8x128xf32>
    %c4_76 = arith.constant 4 : index
    %c0_77 = arith.constant 0 : index
    %70 = vector.load %arg27[%c4_76, %c0_77] : memref<20x128xf32, #tpu.memory_space<vmem>>, vector<8x64xf32>
    %c4_78 = arith.constant 4 : index
    %c0_79 = arith.constant 0 : index
    %c0_80 = arith.constant 0 : index
    %71 = vector.load %arg4[%c4_78, %c0_79, %c0_80] : memref<5x64x128xf32, #tpu.memory_space<vmem>>, vector<1x64x128xf32>
    %72 = vector.shape_cast %71 : vector<1x64x128xf32> to vector<64x128xf32>
    %cst_81 = arith.constant dense<0.000000e+00> : vector<8x128xf32>
    %73 = tpu.matmul %70, %72, %cst_81 {dimension_numbers = #tpu.dot_dimension_numbers<[1], [0], [0], [1], [0, 0, 1, 1], [], []>} : vector<8x64xf32>, vector<64x128xf32>, vector<8x128xf32> -> vector<8x128xf32>
    %74 = arith.addf %69, %73 : vector<8x128xf32>
    %c0_82 = arith.constant 0 : index
    %c0_83 = arith.constant 0 : index
    %75 = vector.load %arg5[%c0_82, %c0_83] : memref<1x64xf32, #tpu.memory_space<vmem>>, vector<1x64xf32>
    %76 = vector.extract_strided_slice %74 {offsets = [0, 0], sizes = [8, 64], strides = [1, 1]} : vector<8x128xf32> to vector<8x64xf32>
    %77 = vector.extract_strided_slice %74 {offsets = [0, 64], sizes = [8, 64], strides = [1, 1]} : vector<8x128xf32> to vector<8x64xf32>
    %78 = arith.maximumf %76, %77 : vector<8x64xf32>
    %79 = vector.broadcast %75 : vector<1x64xf32> to vector<8x64xf32>
    %80 = arith.addf %78, %79 : vector<8x64xf32>
    %cst_84 = arith.constant 0.000000e+00 : f32
    %81 = vector.broadcast %cst_84 : f32 to vector<8x64xf32>
    %82 = arith.maximumf %80, %81 : vector<8x64xf32>
    %c0_85 = arith.constant 0 : index
    %c0_86 = arith.constant 0 : index
    %c0_87 = arith.constant 0 : index
    %83 = vector.load %arg24[%c0_85, %c0_86, %c0_87] : memref<2x8x16xf32, #tpu.memory_space<vmem>>, vector<1x4x8xf32>
    %84 = vector.shape_cast %83 : vector<1x4x8xf32> to vector<4x8xf32>
    %c1_88 = arith.constant 1 : index
    %c0_89 = arith.constant 0 : index
    %c0_90 = arith.constant 0 : index
    %85 = vector.load %arg24[%c1_88, %c0_89, %c0_90] : memref<2x8x16xf32, #tpu.memory_space<vmem>>, vector<1x4x8xf32>
    %86 = vector.shape_cast %85 : vector<1x4x8xf32> to vector<4x8xf32>
    %cst_91 = arith.constant dense<0.000000e+00> : vector<4x64xf32>
    %87 = tpu.matmul %84, %82, %cst_91 {dimension_numbers = #tpu.dot_dimension_numbers<[1], [0], [0], [1], [0, 0, 1, 1], [], []>} : vector<4x8xf32>, vector<8x64xf32>, vector<4x64xf32> -> vector<4x64xf32>
    %cst_92 = arith.constant dense<0.000000e+00> : vector<4x64xf32>
    %88 = tpu.matmul %86, %82, %cst_92 {dimension_numbers = #tpu.dot_dimension_numbers<[1], [0], [0], [1], [0, 0, 1, 1], [], []>} : vector<4x8xf32>, vector<8x64xf32>, vector<4x64xf32> -> vector<4x64xf32>
    %89 = arith.maximumf %87, %88 : vector<4x64xf32>
    %cst_93 = arith.constant 0.000000e+00 : f32
    %90 = vector.broadcast %cst_93 : f32 to vector<1x64xf32>
    %c0_94 = arith.constant 0 : index
    %c0_95 = arith.constant 0 : index
    %91 = vector.load %arg27[%c0_94, %c0_95] : memref<20x128xf32, #tpu.memory_space<vmem>>, vector<1x64xf32>
    tpu.vector_store %arg27[%c0_94, %c0_95], %90 {strides = array<i32>} : memref<20x128xf32, #tpu.memory_space<vmem>>, vector<1x64xf32>,
    %cst_96 = arith.constant 0.000000e+00 : f32
    %92 = vector.broadcast %cst_96 : f32 to vector<1x64xf32>
    %c5 = arith.constant 5 : index
    %c0_97 = arith.constant 0 : index
    %93 = vector.load %arg27[%c5, %c0_97] : memref<20x128xf32, #tpu.memory_space<vmem>>, vector<1x64xf32>
    tpu.vector_store %arg27[%c5, %c0_97], %92 {strides = array<i32>} : memref<20x128xf32, #tpu.memory_space<vmem>>, vector<1x64xf32>,
    %c1_98 = arith.constant 1 : index
    %c0_99 = arith.constant 0 : index
    %94 = vector.load %arg27[%c1_98, %c0_99] : memref<20x128xf32, #tpu.memory_space<vmem>>, vector<4x64xf32>
    tpu.vector_store %arg27[%c1_98, %c0_99], %89 {strides = array<i32>} : memref<20x128xf32, #tpu.memory_space<vmem>>, vector<4x64xf32>,
    %c0_100 = arith.constant 0 : index
    %c0_101 = arith.constant 0 : index
    %95 = vector.load %arg27[%c0_100, %c0_101] : memref<20x128xf32, #tpu.memory_space<vmem>>, vector<4x64xf32>
    %c0_102 = arith.constant 0 : index
    %c0_103 = arith.constant 0 : index
    %c0_104 = arith.constant 0 : index
    %96 = vector.load %arg6[%c0_102, %c0_103, %c0_104] : memref<3x64x128xf32, #tpu.memory_space<vmem>>, vector<1x64x128xf32>
    %97 = vector.shape_cast %96 : vector<1x64x128xf32> to vector<64x128xf32>
    %cst_105 = arith.constant dense<0.000000e+00> : vector<4x128xf32>
    %98 = tpu.matmul %95, %97, %cst_105 {dimension_numbers = #tpu.dot_dimension_numbers<[1], [0], [0], [1], [0, 0, 1, 1], [], []>} : vector<4x64xf32>, vector<64x128xf32>, vector<4x128xf32> -> vector<4x128xf32>
    %c1_106 = arith.constant 1 : index
    %c0_107 = arith.constant 0 : index
    %99 = vector.load %arg27[%c1_106, %c0_107] : memref<20x128xf32, #tpu.memory_space<vmem>>, vector<4x64xf32>
    %c1_108 = arith.constant 1 : index
    %c0_109 = arith.constant 0 : index
    %c0_110 = arith.constant 0 : index
    %100 = vector.load %arg6[%c1_108, %c0_109, %c0_110] : memref<3x64x128xf32, #tpu.memory_space<vmem>>, vector<1x64x128xf32>
    %101 = vector.shape_cast %100 : vector<1x64x128xf32> to vector<64x128xf32>
    %cst_111 = arith.constant dense<0.000000e+00> : vector<4x128xf32>
    %102 = tpu.matmul %99, %101, %cst_111 {dimension_numbers = #tpu.dot_dimension_numbers<[1], [0], [0], [1], [0, 0, 1, 1], [], []>} : vector<4x64xf32>, vector<64x128xf32>, vector<4x128xf32> -> vector<4x128xf32>
    %103 = arith.addf %98, %102 : vector<4x128xf32>
    %c2_112 = arith.constant 2 : index
    %c0_113 = arith.constant 0 : index
    %104 = vector.load %arg27[%c2_112, %c0_113] : memref<20x128xf32, #tpu.memory_space<vmem>>, vector<4x64xf32>
    %c2_114 = arith.constant 2 : index
    %c0_115 = arith.constant 0 : index
    %c0_116 = arith.constant 0 : index
    %105 = vector.load %arg6[%c2_114, %c0_115, %c0_116] : memref<3x64x128xf32, #tpu.memory_space<vmem>>, vector<1x64x128xf32>
    %106 = vector.shape_cast %105 : vector<1x64x128xf32> to vector<64x128xf32>
    %cst_117 = arith.constant dense<0.000000e+00> : vector<4x128xf32>
    %107 = tpu.matmul %104, %106, %cst_117 {dimension_numbers = #tpu.dot_dimension_numbers<[1], [0], [0], [1], [0, 0, 1, 1], [], []>} : vector<4x64xf32>, vector<64x128xf32>, vector<4x128xf32> -> vector<4x128xf32>
    %108 = arith.addf %103, %107 : vector<4x128xf32>
    %c0_118 = arith.constant 0 : index
    %c0_119 = arith.constant 0 : index
    %109 = vector.load %arg7[%c0_118, %c0_119] : memref<1x64xf32, #tpu.memory_space<vmem>>, vector<1x64xf32>
    %110 = vector.extract_strided_slice %108 {offsets = [0, 0], sizes = [4, 64], strides = [1, 1]} : vector<4x128xf32> to vector<4x64xf32>
    %111 = vector.extract_strided_slice %108 {offsets = [0, 64], sizes = [4, 64], strides = [1, 1]} : vector<4x128xf32> to vector<4x64xf32>
    %112 = arith.maximumf %110, %111 : vector<4x64xf32>
    %113 = vector.broadcast %109 : vector<1x64xf32> to vector<4x64xf32>
    %114 = arith.addf %112, %113 : vector<4x64xf32>
    %cst_120 = arith.constant 0.000000e+00 : f32
    %115 = vector.broadcast %cst_120 : f32 to vector<4x64xf32>
    %116 = arith.maximumf %114, %115 : vector<4x64xf32>
    %c0_121 = arith.constant 0 : index
    %c0_122 = arith.constant 0 : index
    %c0_123 = arith.constant 0 : index
    %117 = vector.load %arg24[%c0_121, %c0_122, %c0_123] : memref<2x8x16xf32, #tpu.memory_space<vmem>>, vector<1x2x4xf32>
    %118 = vector.shape_cast %117 : vector<1x2x4xf32> to vector<2x4xf32>
    %c1_124 = arith.constant 1 : index
    %c0_125 = arith.constant 0 : index
    %c0_126 = arith.constant 0 : index
    %119 = vector.load %arg24[%c1_124, %c0_125, %c0_126] : memref<2x8x16xf32, #tpu.memory_space<vmem>>, vector<1x2x4xf32>
    %120 = vector.shape_cast %119 : vector<1x2x4xf32> to vector<2x4xf32>
    %cst_127 = arith.constant dense<0.000000e+00> : vector<2x64xf32>
    %121 = tpu.matmul %118, %116, %cst_127 {dimension_numbers = #tpu.dot_dimension_numbers<[1], [0], [0], [1], [0, 0, 1, 1], [], []>} : vector<2x4xf32>, vector<4x64xf32>, vector<2x64xf32> -> vector<2x64xf32>
    %cst_128 = arith.constant dense<0.000000e+00> : vector<2x64xf32>
    %122 = tpu.matmul %120, %116, %cst_128 {dimension_numbers = #tpu.dot_dimension_numbers<[1], [0], [0], [1], [0, 0, 1, 1], [], []>} : vector<2x4xf32>, vector<4x64xf32>, vector<2x64xf32> -> vector<2x64xf32>
    %123 = arith.maximumf %121, %122 : vector<2x64xf32>
    %cst_129 = arith.constant 0.000000e+00 : f32
    %124 = vector.broadcast %cst_129 : f32 to vector<1x64xf32>
    %c0_130 = arith.constant 0 : index
    %c0_131 = arith.constant 0 : index
    %125 = vector.load %arg27[%c0_130, %c0_131] : memref<20x128xf32, #tpu.memory_space<vmem>>, vector<1x64xf32>
    tpu.vector_store %arg27[%c0_130, %c0_131], %124 {strides = array<i32>} : memref<20x128xf32, #tpu.memory_space<vmem>>, vector<1x64xf32>,
    %cst_132 = arith.constant 0.000000e+00 : f32
    %126 = vector.broadcast %cst_132 : f32 to vector<1x64xf32>
    %c3_133 = arith.constant 3 : index
    %c0_134 = arith.constant 0 : index
    %127 = vector.load %arg27[%c3_133, %c0_134] : memref<20x128xf32, #tpu.memory_space<vmem>>, vector<1x64xf32>
    tpu.vector_store %arg27[%c3_133, %c0_134], %126 {strides = array<i32>} : memref<20x128xf32, #tpu.memory_space<vmem>>, vector<1x64xf32>,
    %c1_135 = arith.constant 1 : index
    %c0_136 = arith.constant 0 : index
    %128 = vector.load %arg27[%c1_135, %c0_136] : memref<20x128xf32, #tpu.memory_space<vmem>>, vector<2x64xf32>
    tpu.vector_store %arg27[%c1_135, %c0_136], %123 {strides = array<i32>} : memref<20x128xf32, #tpu.memory_space<vmem>>, vector<2x64xf32>,
    %c0_137 = arith.constant 0 : index
    %c0_138 = arith.constant 0 : index
    %129 = vector.load %arg27[%c0_137, %c0_138] : memref<20x128xf32, #tpu.memory_space<vmem>>, vector<2x64xf32>
    %c0_139 = arith.constant 0 : index
    %c0_140 = arith.constant 0 : index
    %c0_141 = arith.constant 0 : index
    %130 = vector.load %arg8[%c0_139, %c0_140, %c0_141] : memref<3x64x64xf32, #tpu.memory_space<vmem>>, vector<1x64x64xf32>
    %131 = vector.shape_cast %130 : vector<1x64x64xf32> to vector<64x64xf32>
    %cst_142 = arith.constant dense<0.000000e+00> : vector<2x64xf32>
    %132 = tpu.matmul %129, %131, %cst_142 {dimension_numbers = #tpu.dot_dimension_numbers<[1], [0], [0], [1], [0, 0, 1, 1], [], []>} : vector<2x64xf32>, vector<64x64xf32>, vector<2x64xf32> -> vector<2x64xf32>
    %c1_143 = arith.constant 1 : index
    %c0_144 = arith.constant 0 : index
    %133 = vector.load %arg27[%c1_143, %c0_144] : memref<20x128xf32, #tpu.memory_space<vmem>>, vector<2x64xf32>
    %c1_145 = arith.constant 1 : index
    %c0_146 = arith.constant 0 : index
    %c0_147 = arith.constant 0 : index
    %134 = vector.load %arg8[%c1_145, %c0_146, %c0_147] : memref<3x64x64xf32, #tpu.memory_space<vmem>>, vector<1x64x64xf32>
    %135 = vector.shape_cast %134 : vector<1x64x64xf32> to vector<64x64xf32>
    %cst_148 = arith.constant dense<0.000000e+00> : vector<2x64xf32>
    %136 = tpu.matmul %133, %135, %cst_148 {dimension_numbers = #tpu.dot_dimension_numbers<[1], [0], [0], [1], [0, 0, 1, 1], [], []>} : vector<2x64xf32>, vector<64x64xf32>, vector<2x64xf32> -> vector<2x64xf32>
    %137 = arith.addf %132, %136 : vector<2x64xf32>
    %c2_149 = arith.constant 2 : index
    %c0_150 = arith.constant 0 : index
    %138 = vector.load %arg27[%c2_149, %c0_150] : memref<20x128xf32, #tpu.memory_space<vmem>>, vector<2x64xf32>
    %c2_151 = arith.constant 2 : index
    %c0_152 = arith.constant 0 : index
    %c0_153 = arith.constant 0 : index
    %139 = vector.load %arg8[%c2_151, %c0_152, %c0_153] : memref<3x64x64xf32, #tpu.memory_space<vmem>>, vector<1x64x64xf32>
    %140 = vector.shape_cast %139 : vector<1x64x64xf32> to vector<64x64xf32>
    %cst_154 = arith.constant dense<0.000000e+00> : vector<2x64xf32>
    %141 = tpu.matmul %138, %140, %cst_154 {dimension_numbers = #tpu.dot_dimension_numbers<[1], [0], [0], [1], [0, 0, 1, 1], [], []>} : vector<2x64xf32>, vector<64x64xf32>, vector<2x64xf32> -> vector<2x64xf32>
    %142 = arith.addf %137, %141 : vector<2x64xf32>
    %c0_155 = arith.constant 0 : index
    %c0_156 = arith.constant 0 : index
    %143 = vector.load %arg9[%c0_155, %c0_156] : memref<1x64xf32, #tpu.memory_space<vmem>>, vector<1x64xf32>
    %144 = vector.broadcast %143 : vector<1x64xf32> to vector<2x64xf32>
    %145 = arith.addf %142, %144 : vector<2x64xf32>
    %cst_157 = arith.constant 0.000000e+00 : f32
    %146 = vector.broadcast %cst_157 : f32 to vector<2x64xf32>
    %147 = arith.maximumf %145, %146 : vector<2x64xf32>
    %cst_158 = arith.constant 0.000000e+00 : f32
    %148 = vector.broadcast %cst_158 : f32 to vector<1x64xf32>
    %c0_159 = arith.constant 0 : index
    %c0_160 = arith.constant 0 : index
    %149 = vector.load %arg27[%c0_159, %c0_160] : memref<20x128xf32, #tpu.memory_space<vmem>>, vector<1x64xf32>
    tpu.vector_store %arg27[%c0_159, %c0_160], %148 {strides = array<i32>} : memref<20x128xf32, #tpu.memory_space<vmem>>, vector<1x64xf32>,
    %cst_161 = arith.constant 0.000000e+00 : f32
    %150 = vector.broadcast %cst_161 : f32 to vector<1x64xf32>
    %c3_162 = arith.constant 3 : index
    %c0_163 = arith.constant 0 : index
    %151 = vector.load %arg27[%c3_162, %c0_163] : memref<20x128xf32, #tpu.memory_space<vmem>>, vector<1x64xf32>
    tpu.vector_store %arg27[%c3_162, %c0_163], %150 {strides = array<i32>} : memref<20x128xf32, #tpu.memory_space<vmem>>, vector<1x64xf32>,
    %c1_164 = arith.constant 1 : index
    %c0_165 = arith.constant 0 : index
    %152 = vector.load %arg27[%c1_164, %c0_165] : memref<20x128xf32, #tpu.memory_space<vmem>>, vector<2x64xf32>
    tpu.vector_store %arg27[%c1_164, %c0_165], %147 {strides = array<i32>} : memref<20x128xf32, #tpu.memory_space<vmem>>, vector<2x64xf32>,
    %c0_166 = arith.constant 0 : index
    %c0_167 = arith.constant 0 : index
    %153 = vector.load %arg27[%c0_166, %c0_167] : memref<20x128xf32, #tpu.memory_space<vmem>>, vector<2x64xf32>
    %c0_168 = arith.constant 0 : index
    %c0_169 = arith.constant 0 : index
    %c0_170 = arith.constant 0 : index
    %154 = vector.load %arg10[%c0_168, %c0_169, %c0_170] : memref<3x64x64xf32, #tpu.memory_space<vmem>>, vector<1x64x64xf32>
    %155 = vector.shape_cast %154 : vector<1x64x64xf32> to vector<64x64xf32>
    %cst_171 = arith.constant dense<0.000000e+00> : vector<2x64xf32>
    %156 = tpu.matmul %153, %155, %cst_171 {dimension_numbers = #tpu.dot_dimension_numbers<[1], [0], [0], [1], [0, 0, 1, 1], [], []>} : vector<2x64xf32>, vector<64x64xf32>, vector<2x64xf32> -> vector<2x64xf32>
    %c1_172 = arith.constant 1 : index
    %c0_173 = arith.constant 0 : index
    %157 = vector.load %arg27[%c1_172, %c0_173] : memref<20x128xf32, #tpu.memory_space<vmem>>, vector<2x64xf32>
    %c1_174 = arith.constant 1 : index
    %c0_175 = arith.constant 0 : index
    %c0_176 = arith.constant 0 : index
    %158 = vector.load %arg10[%c1_174, %c0_175, %c0_176] : memref<3x64x64xf32, #tpu.memory_space<vmem>>, vector<1x64x64xf32>
    %159 = vector.shape_cast %158 : vector<1x64x64xf32> to vector<64x64xf32>
    %cst_177 = arith.constant dense<0.000000e+00> : vector<2x64xf32>
    %160 = tpu.matmul %157, %159, %cst_177 {dimension_numbers = #tpu.dot_dimension_numbers<[1], [0], [0], [1], [0, 0, 1, 1], [], []>} : vector<2x64xf32>, vector<64x64xf32>, vector<2x64xf32> -> vector<2x64xf32>
    %161 = arith.addf %156, %160 : vector<2x64xf32>
    %c2_178 = arith.constant 2 : index
    %c0_179 = arith.constant 0 : index
    %162 = vector.load %arg27[%c2_178, %c0_179] : memref<20x128xf32, #tpu.memory_space<vmem>>, vector<2x64xf32>
    %c2_180 = arith.constant 2 : index
    %c0_181 = arith.constant 0 : index
    %c0_182 = arith.constant 0 : index
    %163 = vector.load %arg10[%c2_180, %c0_181, %c0_182] : memref<3x64x64xf32, #tpu.memory_space<vmem>>, vector<1x64x64xf32>
    %164 = vector.shape_cast %163 : vector<1x64x64xf32> to vector<64x64xf32>
    %cst_183 = arith.constant dense<0.000000e+00> : vector<2x64xf32>
    %165 = tpu.matmul %162, %164, %cst_183 {dimension_numbers = #tpu.dot_dimension_numbers<[1], [0], [0], [1], [0, 0, 1, 1], [], []>} : vector<2x64xf32>, vector<64x64xf32>, vector<2x64xf32> -> vector<2x64xf32>
    %166 = arith.addf %161, %165 : vector<2x64xf32>
    %c0_184 = arith.constant 0 : index
    %c0_185 = arith.constant 0 : index
    %167 = vector.load %arg11[%c0_184, %c0_185] : memref<1x64xf32, #tpu.memory_space<vmem>>, vector<1x64xf32>
    %168 = vector.broadcast %167 : vector<1x64xf32> to vector<2x64xf32>
    %169 = arith.addf %166, %168 : vector<2x64xf32>
    %cst_186 = arith.constant 0.000000e+00 : f32
    %170 = vector.broadcast %cst_186 : f32 to vector<2x64xf32>
    %171 = arith.maximumf %169, %170 : vector<2x64xf32>
    %c0_187 = arith.constant 0 : index
    %c0_188 = arith.constant 0 : index
    %172 = vector.load %arg12[%c0_187, %c0_188] : memref<64x256xf32, #tpu.memory_space<vmem>>, vector<64x256xf32>
    %cst_189 = arith.constant dense<0.000000e+00> : vector<2x256xf32>
    %173 = tpu.matmul %171, %172, %cst_189 {dimension_numbers = #tpu.dot_dimension_numbers<[1], [0], [0], [1], [0, 0, 1, 1], [], []>} : vector<2x64xf32>, vector<64x256xf32>, vector<2x256xf32> -> vector<2x256xf32>
    %c0_190 = arith.constant 0 : index
    %c0_191 = arith.constant 0 : index
    %174 = vector.load %arg13[%c0_190, %c0_191] : memref<1x256xf32, #tpu.memory_space<vmem>>, vector<1x256xf32>
    %175 = vector.broadcast %174 : vector<1x256xf32> to vector<2x256xf32>
    %176 = arith.addf %173, %175 : vector<2x256xf32>
    %cst_192 = arith.constant 0.000000e+00 : f32
    %177 = vector.broadcast %cst_192 : f32 to vector<2x256xf32>
    %178 = arith.maximumf %176, %177 : vector<2x256xf32>
    %c0_193 = arith.constant 0 : index
    %c0_194 = arith.constant 0 : index
    %c0_195 = arith.constant 0 : index
    %179 = vector.load %arg25[%c0_193, %c0_194, %c0_195] : memref<2x16x8xf32, #tpu.memory_space<vmem>>, vector<1x4x2xf32>
    %180 = vector.shape_cast %179 : vector<1x4x2xf32> to vector<4x2xf32>
    %c1_196 = arith.constant 1 : index
    %c0_197 = arith.constant 0 : index
    %c0_198 = arith.constant 0 : index
    %181 = vector.load %arg25[%c1_196, %c0_197, %c0_198] : memref<2x16x8xf32, #tpu.memory_space<vmem>>, vector<1x4x2xf32>
    %182 = vector.shape_cast %181 : vector<1x4x2xf32> to vector<4x2xf32>
    %183 = vector.extract_strided_slice %178 {offsets = [0, 0], sizes = [2, 128], strides = [1, 1]} : vector<2x256xf32> to vector<2x128xf32>
    %cst_199 = arith.constant dense<0.000000e+00> : vector<4x128xf32>
    %184 = tpu.matmul %180, %183, %cst_199 {dimension_numbers = #tpu.dot_dimension_numbers<[1], [0], [0], [1], [0, 0, 1, 1], [], []>} : vector<4x2xf32>, vector<2x128xf32>, vector<4x128xf32> -> vector<4x128xf32>
    %185 = vector.extract_strided_slice %178 {offsets = [0, 128], sizes = [2, 128], strides = [1, 1]} : vector<2x256xf32> to vector<2x128xf32>
    %cst_200 = arith.constant dense<0.000000e+00> : vector<4x128xf32>
    %186 = tpu.matmul %182, %185, %cst_200 {dimension_numbers = #tpu.dot_dimension_numbers<[1], [0], [0], [1], [0, 0, 1, 1], [], []>} : vector<4x2xf32>, vector<2x128xf32>, vector<4x128xf32> -> vector<4x128xf32>
    %187 = arith.addf %184, %186 : vector<4x128xf32>
    %cst_201 = arith.constant 0.000000e+00 : f32
    %188 = vector.broadcast %cst_201 : f32 to vector<1x128xf32>
    %c0_202 = arith.constant 0 : index
    %c0_203 = arith.constant 0 : index
    %189 = vector.load %arg27[%c0_202, %c0_203] : memref<20x128xf32, #tpu.memory_space<vmem>>, vector<1x128xf32>
    tpu.vector_store %arg27[%c0_202, %c0_203], %188 {strides = array<i32>} : memref<20x128xf32, #tpu.memory_space<vmem>>, vector<1x128xf32>,
    %cst_204 = arith.constant 0.000000e+00 : f32
    %190 = vector.broadcast %cst_204 : f32 to vector<1x128xf32>
    %c5_205 = arith.constant 5 : index
    %c0_206 = arith.constant 0 : index
    %191 = vector.load %arg27[%c5_205, %c0_206] : memref<20x128xf32, #tpu.memory_space<vmem>>, vector<1x128xf32>
    tpu.vector_store %arg27[%c5_205, %c0_206], %190 {strides = array<i32>} : memref<20x128xf32, #tpu.memory_space<vmem>>, vector<1x128xf32>,
    %c1_207 = arith.constant 1 : index
    %c0_208 = arith.constant 0 : index
    %192 = vector.load %arg27[%c1_207, %c0_208] : memref<20x128xf32, #tpu.memory_space<vmem>>, vector<4x128xf32>
    tpu.vector_store %arg27[%c1_207, %c0_208], %187 {strides = array<i32>} : memref<20x128xf32, #tpu.memory_space<vmem>>, vector<4x128xf32>,
    %c0_209 = arith.constant 0 : index
    %c0_210 = arith.constant 0 : index
    %193 = vector.load %arg27[%c0_209, %c0_210] : memref<20x128xf32, #tpu.memory_space<vmem>>, vector<4x128xf32>
    %c0_211 = arith.constant 0 : index
    %c0_212 = arith.constant 0 : index
    %c0_213 = arith.constant 0 : index
    %194 = vector.load %arg14[%c0_211, %c0_212, %c0_213] : memref<3x128x64xf32, #tpu.memory_space<vmem>>, vector<1x128x64xf32>
    %195 = vector.shape_cast %194 : vector<1x128x64xf32> to vector<128x64xf32>
    %cst_214 = arith.constant dense<0.000000e+00> : vector<4x64xf32>
    %196 = tpu.matmul %193, %195, %cst_214 {dimension_numbers = #tpu.dot_dimension_numbers<[1], [0], [0], [1], [0, 0, 1, 1], [], []>} : vector<4x128xf32>, vector<128x64xf32>, vector<4x64xf32> -> vector<4x64xf32>
    %c1_215 = arith.constant 1 : index
    %c0_216 = arith.constant 0 : index
    %197 = vector.load %arg27[%c1_215, %c0_216] : memref<20x128xf32, #tpu.memory_space<vmem>>, vector<4x128xf32>
    %c1_217 = arith.constant 1 : index
    %c0_218 = arith.constant 0 : index
    %c0_219 = arith.constant 0 : index
    %198 = vector.load %arg14[%c1_217, %c0_218, %c0_219] : memref<3x128x64xf32, #tpu.memory_space<vmem>>, vector<1x128x64xf32>
    %199 = vector.shape_cast %198 : vector<1x128x64xf32> to vector<128x64xf32>
    %cst_220 = arith.constant dense<0.000000e+00> : vector<4x64xf32>
    %200 = tpu.matmul %197, %199, %cst_220 {dimension_numbers = #tpu.dot_dimension_numbers<[1], [0], [0], [1], [0, 0, 1, 1], [], []>} : vector<4x128xf32>, vector<128x64xf32>, vector<4x64xf32> -> vector<4x64xf32>
    %201 = arith.addf %196, %200 : vector<4x64xf32>
    %c2_221 = arith.constant 2 : index
    %c0_222 = arith.constant 0 : index
    %202 = vector.load %arg27[%c2_221, %c0_222] : memref<20x128xf32, #tpu.memory_space<vmem>>, vector<4x128xf32>
    %c2_223 = arith.constant 2 : index
    %c0_224 = arith.constant 0 : index
    %c0_225 = arith.constant 0 : index
    %203 = vector.load %arg14[%c2_223, %c0_224, %c0_225] : memref<3x128x64xf32, #tpu.memory_space<vmem>>, vector<1x128x64xf32>
    %204 = vector.shape_cast %203 : vector<1x128x64xf32> to vector<128x64xf32>
    %cst_226 = arith.constant dense<0.000000e+00> : vector<4x64xf32>
    %205 = tpu.matmul %202, %204, %cst_226 {dimension_numbers = #tpu.dot_dimension_numbers<[1], [0], [0], [1], [0, 0, 1, 1], [], []>} : vector<4x128xf32>, vector<128x64xf32>, vector<4x64xf32> -> vector<4x64xf32>
    %206 = arith.addf %201, %205 : vector<4x64xf32>
    %c0_227 = arith.constant 0 : index
    %c0_228 = arith.constant 0 : index
    %207 = vector.load %arg15[%c0_227, %c0_228] : memref<1x64xf32, #tpu.memory_space<vmem>>, vector<1x64xf32>
    %208 = vector.broadcast %207 : vector<1x64xf32> to vector<4x64xf32>
    %209 = arith.addf %206, %208 : vector<4x64xf32>
    %cst_229 = arith.constant 0.000000e+00 : f32
    %210 = vector.broadcast %cst_229 : f32 to vector<4x64xf32>
    %211 = arith.maximumf %209, %210 : vector<4x64xf32>
    %c0_230 = arith.constant 0 : index
    %c0_231 = arith.constant 0 : index
    %212 = vector.load %arg16[%c0_230, %c0_231] : memref<64x256xf32, #tpu.memory_space<vmem>>, vector<64x256xf32>
    %cst_232 = arith.constant dense<0.000000e+00> : vector<4x256xf32>
    %213 = tpu.matmul %211, %212, %cst_232 {dimension_numbers = #tpu.dot_dimension_numbers<[1], [0], [0], [1], [0, 0, 1, 1], [], []>} : vector<4x64xf32>, vector<64x256xf32>, vector<4x256xf32> -> vector<4x256xf32>
    %c0_233 = arith.constant 0 : index
    %c0_234 = arith.constant 0 : index
    %214 = vector.load %arg17[%c0_233, %c0_234] : memref<1x256xf32, #tpu.memory_space<vmem>>, vector<1x256xf32>
    %215 = vector.broadcast %214 : vector<1x256xf32> to vector<4x256xf32>
    %216 = arith.addf %213, %215 : vector<4x256xf32>
    %cst_235 = arith.constant 0.000000e+00 : f32
    %217 = vector.broadcast %cst_235 : f32 to vector<4x256xf32>
    %218 = arith.maximumf %216, %217 : vector<4x256xf32>
    %c0_236 = arith.constant 0 : index
    %c0_237 = arith.constant 0 : index
    %c0_238 = arith.constant 0 : index
    %219 = vector.load %arg25[%c0_236, %c0_237, %c0_238] : memref<2x16x8xf32, #tpu.memory_space<vmem>>, vector<1x8x4xf32>
    %220 = vector.shape_cast %219 : vector<1x8x4xf32> to vector<8x4xf32>
    %c1_239 = arith.constant 1 : index
    %c0_240 = arith.constant 0 : index
    %c0_241 = arith.constant 0 : index
    %221 = vector.load %arg25[%c1_239, %c0_240, %c0_241] : memref<2x16x8xf32, #tpu.memory_space<vmem>>, vector<1x8x4xf32>
    %222 = vector.shape_cast %221 : vector<1x8x4xf32> to vector<8x4xf32>
    %223 = vector.extract_strided_slice %218 {offsets = [0, 0], sizes = [4, 128], strides = [1, 1]} : vector<4x256xf32> to vector<4x128xf32>
    %cst_242 = arith.constant dense<0.000000e+00> : vector<8x128xf32>
    %224 = tpu.matmul %220, %223, %cst_242 {dimension_numbers = #tpu.dot_dimension_numbers<[1], [0], [0], [1], [0, 0, 1, 1], [], []>} : vector<8x4xf32>, vector<4x128xf32>, vector<8x128xf32> -> vector<8x128xf32>
    %225 = vector.extract_strided_slice %218 {offsets = [0, 128], sizes = [4, 128], strides = [1, 1]} : vector<4x256xf32> to vector<4x128xf32>
    %cst_243 = arith.constant dense<0.000000e+00> : vector<8x128xf32>
    %226 = tpu.matmul %222, %225, %cst_243 {dimension_numbers = #tpu.dot_dimension_numbers<[1], [0], [0], [1], [0, 0, 1, 1], [], []>} : vector<8x4xf32>, vector<4x128xf32>, vector<8x128xf32> -> vector<8x128xf32>
    %227 = arith.addf %224, %226 : vector<8x128xf32>
    %cst_244 = arith.constant 0.000000e+00 : f32
    %228 = vector.broadcast %cst_244 : f32 to vector<2x128xf32>
    %c0_245 = arith.constant 0 : index
    %c0_246 = arith.constant 0 : index
    %229 = vector.load %arg27[%c0_245, %c0_246] : memref<20x128xf32, #tpu.memory_space<vmem>>, vector<2x128xf32>
    tpu.vector_store %arg27[%c0_245, %c0_246], %228 {strides = array<i32>} : memref<20x128xf32, #tpu.memory_space<vmem>>, vector<2x128xf32>,
    %cst_247 = arith.constant 0.000000e+00 : f32
    %230 = vector.broadcast %cst_247 : f32 to vector<2x128xf32>
    %c10_248 = arith.constant 10 : index
    %c0_249 = arith.constant 0 : index
    %231 = vector.load %arg27[%c10_248, %c0_249] : memref<20x128xf32, #tpu.memory_space<vmem>>, vector<2x128xf32>
    tpu.vector_store %arg27[%c10_248, %c0_249], %230 {strides = array<i32>} : memref<20x128xf32, #tpu.memory_space<vmem>>, vector<2x128xf32>,
    %c2_250 = arith.constant 2 : index
    %c0_251 = arith.constant 0 : index
    %232 = vector.load %arg27[%c2_250, %c0_251] : memref<20x128xf32, #tpu.memory_space<vmem>>, vector<8x128xf32>
    tpu.vector_store %arg27[%c2_250, %c0_251], %227 {strides = array<i32>} : memref<20x128xf32, #tpu.memory_space<vmem>>, vector<8x128xf32>,
    %c0_252 = arith.constant 0 : index
    %c0_253 = arith.constant 0 : index
    %233 = vector.load %arg27[%c0_252, %c0_253] : memref<20x128xf32, #tpu.memory_space<vmem>>, vector<8x128xf32>
    %c0_254 = arith.constant 0 : index
    %c0_255 = arith.constant 0 : index
    %c0_256 = arith.constant 0 : index
    %234 = vector.load %arg18[%c0_254, %c0_255, %c0_256] : memref<5x128x64xf32, #tpu.memory_space<vmem>>, vector<1x128x64xf32>
    %235 = vector.shape_cast %234 : vector<1x128x64xf32> to vector<128x64xf32>
    %cst_257 = arith.constant dense<0.000000e+00> : vector<8x64xf32>
    %236 = tpu.matmul %233, %235, %cst_257 {dimension_numbers = #tpu.dot_dimension_numbers<[1], [0], [0], [1], [0, 0, 1, 1], [], []>} : vector<8x128xf32>, vector<128x64xf32>, vector<8x64xf32> -> vector<8x64xf32>
    %c1_258 = arith.constant 1 : index
    %c0_259 = arith.constant 0 : index
    %237 = vector.load %arg27[%c1_258, %c0_259] : memref<20x128xf32, #tpu.memory_space<vmem>>, vector<8x128xf32>
    %c1_260 = arith.constant 1 : index
    %c0_261 = arith.constant 0 : index
    %c0_262 = arith.constant 0 : index
    %238 = vector.load %arg18[%c1_260, %c0_261, %c0_262] : memref<5x128x64xf32, #tpu.memory_space<vmem>>, vector<1x128x64xf32>
    %239 = vector.shape_cast %238 : vector<1x128x64xf32> to vector<128x64xf32>
    %cst_263 = arith.constant dense<0.000000e+00> : vector<8x64xf32>
    %240 = tpu.matmul %237, %239, %cst_263 {dimension_numbers = #tpu.dot_dimension_numbers<[1], [0], [0], [1], [0, 0, 1, 1], [], []>} : vector<8x128xf32>, vector<128x64xf32>, vector<8x64xf32> -> vector<8x64xf32>
    %241 = arith.addf %236, %240 : vector<8x64xf32>
    %c2_264 = arith.constant 2 : index
    %c0_265 = arith.constant 0 : index
    %242 = vector.load %arg27[%c2_264, %c0_265] : memref<20x128xf32, #tpu.memory_space<vmem>>, vector<8x128xf32>
    %c2_266 = arith.constant 2 : index
    %c0_267 = arith.constant 0 : index
    %c0_268 = arith.constant 0 : index
    %243 = vector.load %arg18[%c2_266, %c0_267, %c0_268] : memref<5x128x64xf32, #tpu.memory_space<vmem>>, vector<1x128x64xf32>
    %244 = vector.shape_cast %243 : vector<1x128x64xf32> to vector<128x64xf32>
    %cst_269 = arith.constant dense<0.000000e+00> : vector<8x64xf32>
    %245 = tpu.matmul %242, %244, %cst_269 {dimension_numbers = #tpu.dot_dimension_numbers<[1], [0], [0], [1], [0, 0, 1, 1], [], []>} : vector<8x128xf32>, vector<128x64xf32>, vector<8x64xf32> -> vector<8x64xf32>
    %246 = arith.addf %241, %245 : vector<8x64xf32>
    %c3_270 = arith.constant 3 : index
    %c0_271 = arith.constant 0 : index
    %247 = vector.load %arg27[%c3_270, %c0_271] : memref<20x128xf32, #tpu.memory_space<vmem>>, vector<8x128xf32>
    %c3_272 = arith.constant 3 : index
    %c0_273 = arith.constant 0 : index
    %c0_274 = arith.constant 0 : index
    %248 = vector.load %arg18[%c3_272, %c0_273, %c0_274] : memref<5x128x64xf32, #tpu.memory_space<vmem>>, vector<1x128x64xf32>
    %249 = vector.shape_cast %248 : vector<1x128x64xf32> to vector<128x64xf32>
    %cst_275 = arith.constant dense<0.000000e+00> : vector<8x64xf32>
    %250 = tpu.matmul %247, %249, %cst_275 {dimension_numbers = #tpu.dot_dimension_numbers<[1], [0], [0], [1], [0, 0, 1, 1], [], []>} : vector<8x128xf32>, vector<128x64xf32>, vector<8x64xf32> -> vector<8x64xf32>
    %251 = arith.addf %246, %250 : vector<8x64xf32>
    %c4_276 = arith.constant 4 : index
    %c0_277 = arith.constant 0 : index
    %252 = vector.load %arg27[%c4_276, %c0_277] : memref<20x128xf32, #tpu.memory_space<vmem>>, vector<8x128xf32>
    %c4_278 = arith.constant 4 : index
    %c0_279 = arith.constant 0 : index
    %c0_280 = arith.constant 0 : index
    %253 = vector.load %arg18[%c4_278, %c0_279, %c0_280] : memref<5x128x64xf32, #tpu.memory_space<vmem>>, vector<1x128x64xf32>
    %254 = vector.shape_cast %253 : vector<1x128x64xf32> to vector<128x64xf32>
    %cst_281 = arith.constant dense<0.000000e+00> : vector<8x64xf32>
    %255 = tpu.matmul %252, %254, %cst_281 {dimension_numbers = #tpu.dot_dimension_numbers<[1], [0], [0], [1], [0, 0, 1, 1], [], []>} : vector<8x128xf32>, vector<128x64xf32>, vector<8x64xf32> -> vector<8x64xf32>
    %256 = arith.addf %251, %255 : vector<8x64xf32>
    %c0_282 = arith.constant 0 : index
    %c0_283 = arith.constant 0 : index
    %257 = vector.load %arg19[%c0_282, %c0_283] : memref<1x64xf32, #tpu.memory_space<vmem>>, vector<1x64xf32>
    %258 = vector.broadcast %257 : vector<1x64xf32> to vector<8x64xf32>
    %259 = arith.addf %256, %258 : vector<8x64xf32>
    %cst_284 = arith.constant 0.000000e+00 : f32
    %260 = vector.broadcast %cst_284 : f32 to vector<8x64xf32>
    %261 = arith.maximumf %259, %260 : vector<8x64xf32>
    %c0_285 = arith.constant 0 : index
    %c0_286 = arith.constant 0 : index
    %262 = vector.load %arg20[%c0_285, %c0_286] : memref<64x256xf32, #tpu.memory_space<vmem>>, vector<64x256xf32>
    %cst_287 = arith.constant dense<0.000000e+00> : vector<8x256xf32>
    %263 = tpu.matmul %261, %262, %cst_287 {dimension_numbers = #tpu.dot_dimension_numbers<[1], [0], [0], [1], [0, 0, 1, 1], [], []>} : vector<8x64xf32>, vector<64x256xf32>, vector<8x256xf32> -> vector<8x256xf32>
    %c0_288 = arith.constant 0 : index
    %c0_289 = arith.constant 0 : index
    %264 = vector.load %arg21[%c0_288, %c0_289] : memref<1x256xf32, #tpu.memory_space<vmem>>, vector<1x256xf32>
    %265 = vector.broadcast %264 : vector<1x256xf32> to vector<8x256xf32>
    %266 = arith.addf %263, %265 : vector<8x256xf32>
    %cst_290 = arith.constant 0.000000e+00 : f32
    %267 = vector.broadcast %cst_290 : f32 to vector<8x256xf32>
    %268 = arith.maximumf %266, %267 : vector<8x256xf32>
    %c0_291 = arith.constant 0 : index
    %c0_292 = arith.constant 0 : index
    %c0_293 = arith.constant 0 : index
    %269 = vector.load %arg25[%c0_291, %c0_292, %c0_293] : memref<2x16x8xf32, #tpu.memory_space<vmem>>, vector<1x16x8xf32>
    %270 = vector.shape_cast %269 : vector<1x16x8xf32> to vector<16x8xf32>
    %c1_294 = arith.constant 1 : index
    %c0_295 = arith.constant 0 : index
    %c0_296 = arith.constant 0 : index
    %271 = vector.load %arg25[%c1_294, %c0_295, %c0_296] : memref<2x16x8xf32, #tpu.memory_space<vmem>>, vector<1x16x8xf32>
    %272 = vector.shape_cast %271 : vector<1x16x8xf32> to vector<16x8xf32>
    %273 = vector.extract_strided_slice %268 {offsets = [0, 0], sizes = [8, 128], strides = [1, 1]} : vector<8x256xf32> to vector<8x128xf32>
    %cst_297 = arith.constant dense<0.000000e+00> : vector<16x128xf32>
    %274 = tpu.matmul %270, %273, %cst_297 {dimension_numbers = #tpu.dot_dimension_numbers<[1], [0], [0], [1], [0, 0, 1, 1], [], []>} : vector<16x8xf32>, vector<8x128xf32>, vector<16x128xf32> -> vector<16x128xf32>
    %275 = vector.extract_strided_slice %268 {offsets = [0, 128], sizes = [8, 128], strides = [1, 1]} : vector<8x256xf32> to vector<8x128xf32>
    %cst_298 = arith.constant dense<0.000000e+00> : vector<16x128xf32>
    %276 = tpu.matmul %272, %275, %cst_298 {dimension_numbers = #tpu.dot_dimension_numbers<[1], [0], [0], [1], [0, 0, 1, 1], [], []>} : vector<16x8xf32>, vector<8x128xf32>, vector<16x128xf32> -> vector<16x128xf32>
    %277 = arith.addf %274, %276 : vector<16x128xf32>
    %cst_299 = arith.constant 0.000000e+00 : f32
    %278 = vector.broadcast %cst_299 : f32 to vector<2x128xf32>
    %c0_300 = arith.constant 0 : index
    %c0_301 = arith.constant 0 : index
    %279 = vector.load %arg27[%c0_300, %c0_301] : memref<20x128xf32, #tpu.memory_space<vmem>>, vector<2x128xf32>
    tpu.vector_store %arg27[%c0_300, %c0_301], %278 {strides = array<i32>} : memref<20x128xf32, #tpu.memory_space<vmem>>, vector<2x128xf32>,
    %cst_302 = arith.constant 0.000000e+00 : f32
    %280 = vector.broadcast %cst_302 : f32 to vector<2x128xf32>
    %c18_303 = arith.constant 18 : index
    %c0_304 = arith.constant 0 : index
    %281 = vector.load %arg27[%c18_303, %c0_304] : memref<20x128xf32, #tpu.memory_space<vmem>>, vector<2x128xf32>
    tpu.vector_store %arg27[%c18_303, %c0_304], %280 {strides = array<i32>} : memref<20x128xf32, #tpu.memory_space<vmem>>, vector<2x128xf32>,
    %c2_305 = arith.constant 2 : index
    %c0_306 = arith.constant 0 : index
    %282 = vector.load %arg27[%c2_305, %c0_306] : memref<20x128xf32, #tpu.memory_space<vmem>>, vector<16x128xf32>
    tpu.vector_store %arg27[%c2_305, %c0_306], %277 {strides = array<i32>} : memref<20x128xf32, #tpu.memory_space<vmem>>, vector<16x128xf32>,
    %c0_307 = arith.constant 0 : index
    %c0_308 = arith.constant 0 : index
    %283 = vector.load %arg27[%c0_307, %c0_308] : memref<20x128xf32, #tpu.memory_space<vmem>>, vector<16x128xf32>
    %c0_309 = arith.constant 0 : index
    %c0_310 = arith.constant 0 : index
    %c0_311 = arith.constant 0 : index
    %284 = vector.load %arg22[%c0_309, %c0_310, %c0_311] : memref<5x128x32xf32, #tpu.memory_space<vmem>>, vector<1x128x32xf32>
    %285 = vector.shape_cast %284 : vector<1x128x32xf32> to vector<128x32xf32>
    %cst_312 = arith.constant dense<0.000000e+00> : vector<16x32xf32>
    %286 = tpu.matmul %283, %285, %cst_312 {dimension_numbers = #tpu.dot_dimension_numbers<[1], [0], [0], [1], [0, 0, 1, 1], [], []>} : vector<16x128xf32>, vector<128x32xf32>, vector<16x32xf32> -> vector<16x32xf32>
    %c1_313 = arith.constant 1 : index
    %c0_314 = arith.constant 0 : index
    %287 = vector.load %arg27[%c1_313, %c0_314] : memref<20x128xf32, #tpu.memory_space<vmem>>, vector<16x128xf32>
    %c1_315 = arith.constant 1 : index
    %c0_316 = arith.constant 0 : index
    %c0_317 = arith.constant 0 : index
    %288 = vector.load %arg22[%c1_315, %c0_316, %c0_317] : memref<5x128x32xf32, #tpu.memory_space<vmem>>, vector<1x128x32xf32>
    %289 = vector.shape_cast %288 : vector<1x128x32xf32> to vector<128x32xf32>
    %cst_318 = arith.constant dense<0.000000e+00> : vector<16x32xf32>
    %290 = tpu.matmul %287, %289, %cst_318 {dimension_numbers = #tpu.dot_dimension_numbers<[1], [0], [0], [1], [0, 0, 1, 1], [], []>} : vector<16x128xf32>, vector<128x32xf32>, vector<16x32xf32> -> vector<16x32xf32>
    %291 = arith.addf %286, %290 : vector<16x32xf32>
    %c2_319 = arith.constant 2 : index
    %c0_320 = arith.constant 0 : index
    %292 = vector.load %arg27[%c2_319, %c0_320] : memref<20x128xf32, #tpu.memory_space<vmem>>, vector<16x128xf32>
    %c2_321 = arith.constant 2 : index
    %c0_322 = arith.constant 0 : index
    %c0_323 = arith.constant 0 : index
    %293 = vector.load %arg22[%c2_321, %c0_322, %c0_323] : memref<5x128x32xf32, #tpu.memory_space<vmem>>, vector<1x128x32xf32>
    %294 = vector.shape_cast %293 : vector<1x128x32xf32> to vector<128x32xf32>
    %cst_324 = arith.constant dense<0.000000e+00> : vector<16x32xf32>
    %295 = tpu.matmul %292, %294, %cst_324 {dimension_numbers = #tpu.dot_dimension_numbers<[1], [0], [0], [1], [0, 0, 1, 1], [], []>} : vector<16x128xf32>, vector<128x32xf32>, vector<16x32xf32> -> vector<16x32xf32>
    %296 = arith.addf %291, %295 : vector<16x32xf32>
    %c3_325 = arith.constant 3 : index
    %c0_326 = arith.constant 0 : index
    %297 = vector.load %arg27[%c3_325, %c0_326] : memref<20x128xf32, #tpu.memory_space<vmem>>, vector<16x128xf32>
    %c3_327 = arith.constant 3 : index
    %c0_328 = arith.constant 0 : index
    %c0_329 = arith.constant 0 : index
    %298 = vector.load %arg22[%c3_327, %c0_328, %c0_329] : memref<5x128x32xf32, #tpu.memory_space<vmem>>, vector<1x128x32xf32>
    %299 = vector.shape_cast %298 : vector<1x128x32xf32> to vector<128x32xf32>
    %cst_330 = arith.constant dense<0.000000e+00> : vector<16x32xf32>
    %300 = tpu.matmul %297, %299, %cst_330 {dimension_numbers = #tpu.dot_dimension_numbers<[1], [0], [0], [1], [0, 0, 1, 1], [], []>} : vector<16x128xf32>, vector<128x32xf32>, vector<16x32xf32> -> vector<16x32xf32>
    %301 = arith.addf %296, %300 : vector<16x32xf32>
    %c4_331 = arith.constant 4 : index
    %c0_332 = arith.constant 0 : index
    %302 = vector.load %arg27[%c4_331, %c0_332] : memref<20x128xf32, #tpu.memory_space<vmem>>, vector<16x128xf32>
    %c4_333 = arith.constant 4 : index
    %c0_334 = arith.constant 0 : index
    %c0_335 = arith.constant 0 : index
    %303 = vector.load %arg22[%c4_333, %c0_334, %c0_335] : memref<5x128x32xf32, #tpu.memory_space<vmem>>, vector<1x128x32xf32>
    %304 = vector.shape_cast %303 : vector<1x128x32xf32> to vector<128x32xf32>
    %cst_336 = arith.constant dense<0.000000e+00> : vector<16x32xf32>
    %305 = tpu.matmul %302, %304, %cst_336 {dimension_numbers = #tpu.dot_dimension_numbers<[1], [0], [0], [1], [0, 0, 1, 1], [], []>} : vector<16x128xf32>, vector<128x32xf32>, vector<16x32xf32> -> vector<16x32xf32>
    %306 = arith.addf %301, %305 : vector<16x32xf32>
    %c0_337 = arith.constant 0 : index
    %c0_338 = arith.constant 0 : index
    %307 = vector.load %arg23[%c0_337, %c0_338] : memref<1x32xf32, #tpu.memory_space<vmem>>, vector<1x32xf32>
    %308 = vector.broadcast %307 : vector<1x32xf32> to vector<16x32xf32>
    %309 = arith.addf %306, %308 : vector<16x32xf32>
    %c0_339 = arith.constant 0 : index
    %c0_340 = arith.constant 0 : index
    %c0_341 = arith.constant 0 : index
    %310 = vector.load %arg26[%c0_339, %c0_340, %c0_341] : memref<1x16x32xf32, #tpu.memory_space<vmem>>, vector<1x16x32xf32>
    %311 = vector.shape_cast %310 : vector<1x16x32xf32> to vector<16x32xf32>
    %312 = vector.shape_cast %309 : vector<16x32xf32> to vector<1x16x32xf32>
    tpu.vector_store %arg26[%c0_339, %c0_340, %c0_341], %312 {strides = array<i32>} : memref<1x16x32xf32, #tpu.memory_space<vmem>>, vector<1x16x32xf32>,
    return
  }
  func.func @transform_0(%arg0: i32) -> (i32, i32, i32) {
    %c0_i32 = arith.constant 0 : i32
    %c0_i32_0 = arith.constant 0 : i32
    %c0_i32_1 = arith.constant 0 : i32
    return %arg0, %c0_i32, %c0_i32_0 : i32, i32, i32
  }
  func.func @transform_1(%arg0: i32) -> (i32, i32, i32) {
    %c0_i32 = arith.constant 0 : i32
    %c0_i32_0 = arith.constant 0 : i32
    %c0_i32_1 = arith.constant 0 : i32
    %c0_i32_2 = arith.constant 0 : i32
    return %c0_i32, %c0_i32_0, %c0_i32_1 : i32, i32, i32
  }
  func.func @transform_2(%arg0: i32) -> (i32, i32) {
    %c0_i32 = arith.constant 0 : i32
    %c0_i32_0 = arith.constant 0 : i32
    %c0_i32_1 = arith.constant 0 : i32
    return %c0_i32, %c0_i32_0 : i32, i32
  }
  func.func @transform_3(%arg0: i32) -> (i32, i32, i32) {
    %c0_i32 = arith.constant 0 : i32
    %c0_i32_0 = arith.constant 0 : i32
    %c0_i32_1 = arith.constant 0 : i32
    %c0_i32_2 = arith.constant 0 : i32
    return %c0_i32, %c0_i32_0, %c0_i32_1 : i32, i32, i32
  }
  func.func @transform_4(%arg0: i32) -> (i32, i32) {
    %c0_i32 = arith.constant 0 : i32
    %c0_i32_0 = arith.constant 0 : i32
    %c0_i32_1 = arith.constant 0 : i32
    return %c0_i32, %c0_i32_0 : i32, i32
  }
  func.func @transform_5(%arg0: i32) -> (i32, i32, i32) {
    %c0_i32 = arith.constant 0 : i32
    %c0_i32_0 = arith.constant 0 : i32
    %c0_i32_1 = arith.constant 0 : i32
    %c0_i32_2 = arith.constant 0 : i32
    return %c0_i32, %c0_i32_0, %c0_i32_1 : i32, i32, i32
  }
  func.func @transform_6(%arg0: i32) -> (i32, i32) {
    %c0_i32 = arith.constant 0 : i32
    %c0_i32_0 = arith.constant 0 : i32
    %c0_i32_1 = arith.constant 0 : i32
    return %c0_i32, %c0_i32_0 : i32, i32
  }
  func.func @transform_7(%arg0: i32) -> (i32, i32, i32) {
    %c0_i32 = arith.constant 0 : i32
    %c0_i32_0 = arith.constant 0 : i32
    %c0_i32_1 = arith.constant 0 : i32
    %c0_i32_2 = arith.constant 0 : i32
    return %c0_i32, %c0_i32_0, %c0_i32_1 : i32, i32, i32
  }
  func.func @transform_8(%arg0: i32) -> (i32, i32) {
    %c0_i32 = arith.constant 0 : i32
    %c0_i32_0 = arith.constant 0 : i32
    %c0_i32_1 = arith.constant 0 : i32
    return %c0_i32, %c0_i32_0 : i32, i32
  }
  func.func @transform_9(%arg0: i32) -> (i32, i32, i32) {
    %c0_i32 = arith.constant 0 : i32
    %c0_i32_0 = arith.constant 0 : i32
    %c0_i32_1 = arith.constant 0 : i32
    %c0_i32_2 = arith.constant 0 : i32
    return %c0_i32, %c0_i32_0, %c0_i32_1 : i32, i32, i32
  }
  func.func @transform_10(%arg0: i32) -> (i32, i32) {
    %c0_i32 = arith.constant 0 : i32
    %c0_i32_0 = arith.constant 0 : i32
    %c0_i32_1 = arith.constant 0 : i32
    return %c0_i32, %c0_i32_0 : i32, i32
  }
  func.func @transform_11(%arg0: i32) -> (i32, i32) {
    %c0_i32 = arith.constant 0 : i32
    %c0_i32_0 = arith.constant 0 : i32
    %c0_i32_1 = arith.constant 0 : i32
    return %c0_i32, %c0_i32_0 : i32, i32
  }
  func.func @transform_12(%arg0: i32) -> (i32, i32) {
    %c0_i32 = arith.constant 0 : i32
    %c0_i32_0 = arith.constant 0 : i32
    %c0_i32_1 = arith.constant 0 : i32
    return %c0_i32, %c0_i32_0 : i32, i32
  }
  func.func @transform_13(%arg0: i32) -> (i32, i32, i32) {
    %c0_i32 = arith.constant 0 : i32
    %c0_i32_0 = arith.constant 0 : i32
    %c0_i32_1 = arith.constant 0 : i32
    %c0_i32_2 = arith.constant 0 : i32
    return %c0_i32, %c0_i32_0, %c0_i32_1 : i32, i32, i32
  }
  func.func @transform_14(%arg0: i32) -> (i32, i32) {
    %c0_i32 = arith.constant 0 : i32
    %c0_i32_0 = arith.constant 0 : i32
    %c0_i32_1 = arith.constant 0 : i32
    return %c0_i32, %c0_i32_0 : i32, i32
  }
  func.func @transform_15(%arg0: i32) -> (i32, i32) {
    %c0_i32 = arith.constant 0 : i32
    %c0_i32_0 = arith.constant 0 : i32
    %c0_i32_1 = arith.constant 0 : i32
    return %c0_i32, %c0_i32_0 : i32, i32
  }
  func.func @transform_16(%arg0: i32) -> (i32, i32) {
    %c0_i32 = arith.constant 0 : i32
    %c0_i32_0 = arith.constant 0 : i32
    %c0_i32_1 = arith.constant 0 : i32
    return %c0_i32, %c0_i32_0 : i32, i32
  }
  func.func @transform_17(%arg0: i32) -> (i32, i32, i32) {
    %c0_i32 = arith.constant 0 : i32
    %c0_i32_0 = arith.constant 0 : i32
    %c0_i32_1 = arith.constant 0 : i32
    %c0_i32_2 = arith.constant 0 : i32
    return %c0_i32, %c0_i32_0, %c0_i32_1 : i32, i32, i32
  }
  func.func @transform_18(%arg0: i32) -> (i32, i32) {
    %c0_i32 = arith.constant 0 : i32
    %c0_i32_0 = arith.constant 0 : i32
    %c0_i32_1 = arith.constant 0 : i32
    return %c0_i32, %c0_i32_0 : i32, i32
  }
  func.func @transform_19(%arg0: i32) -> (i32, i32) {
    %c0_i32 = arith.constant 0 : i32
    %c0_i32_0 = arith.constant 0 : i32
    %c0_i32_1 = arith.constant 0 : i32
    return %c0_i32, %c0_i32_0 : i32, i32
  }
  func.func @transform_20(%arg0: i32) -> (i32, i32) {
    %c0_i32 = arith.constant 0 : i32
    %c0_i32_0 = arith.constant 0 : i32
    %c0_i32_1 = arith.constant 0 : i32
    return %c0_i32, %c0_i32_0 : i32, i32
  }
  func.func @transform_21(%arg0: i32) -> (i32, i32, i32) {
    %c0_i32 = arith.constant 0 : i32
    %c0_i32_0 = arith.constant 0 : i32
    %c0_i32_1 = arith.constant 0 : i32
    %c0_i32_2 = arith.constant 0 : i32
    return %c0_i32, %c0_i32_0, %c0_i32_1 : i32, i32, i32
  }
  func.func @transform_22(%arg0: i32) -> (i32, i32) {
    %c0_i32 = arith.constant 0 : i32
    %c0_i32_0 = arith.constant 0 : i32
    %c0_i32_1 = arith.constant 0 : i32
    return %c0_i32, %c0_i32_0 : i32, i32
  }
  func.func @transform_23(%arg0: i32) -> (i32, i32, i32) {
    %c0_i32 = arith.constant 0 : i32
    %c0_i32_0 = arith.constant 0 : i32
    %c0_i32_1 = arith.constant 0 : i32
    %c0_i32_2 = arith.constant 0 : i32
    return %c0_i32, %c0_i32_0, %c0_i32_1 : i32, i32, i32
  }
  func.func @transform_24(%arg0: i32) -> (i32, i32, i32) {
    %c0_i32 = arith.constant 0 : i32
    %c0_i32_0 = arith.constant 0 : i32
    %c0_i32_1 = arith.constant 0 : i32
    %c0_i32_2 = arith.constant 0 : i32
    return %c0_i32, %c0_i32_0, %c0_i32_1 : i32, i32, i32
  }
  func.func @transform_25(%arg0: i32) -> (i32, i32, i32) {
    %c0_i32 = arith.constant 0 : i32
    %c0_i32_0 = arith.constant 0 : i32
    %c0_i32_1 = arith.constant 0 : i32
    return %arg0, %c0_i32, %c0_i32_0 : i32, i32, i32
  }
}

</mosaic_0001>

<bundles_post_ra>
// kernel: second_model_forward.1
= control target key start
LH: loop header
LB: loop body
LE: loop exit
PB: predicated region body
PF: predicated region fallthrough
CT: control target
= control target key end

     0   :  { %s7436_s29 = smov 0   ;;  %s9026_s0 = inlined_call_operand.vmem [shape: f32[2,16,48], index: 0, kind: input, shape index: {}]   ;;  %s9027_s1 = inlined_call_operand.vmem [shape: f32[5,48,128], index: 1, kind: input, shape index: {}]   ;;  %s9028_s2 = inlined_call_operand.vmem [shape: f32[1,64], index: 2, kind: input, shape index: {}]   ;;  %s9029_s3 = inlined_call_operand.vmem [shape: f32[5,64,128], index: 3, kind: input, shape index: {}]   ;;  %s9030_s4 = inlined_call_operand.vmem [shape: f32[1,64], index: 4, kind: input, shape index: {}]   ;;  %s9031_s5 = inlined_call_operand.vmem [shape: f32[3,64,128], index: 5, kind: input, shape index: {}]   ;;  %s9032_s6 = inlined_call_operand.vmem [shape: f32[1,64], index: 6, kind: input, shape index: {}]   ;;  %s9033_s7 = inlined_call_operand.vmem [shape: f32[3,64,64], index: 7, kind: input, shape index: {}]   ;;  %s9034_s8 = inlined_call_operand.vmem [shape: f32[1,64], index: 8, kind: input, shape index: {}]   ;;  %s9035_s9 = inlined_call_operand.vmem [shape: f32[3,64,64], index: 9, kind: input, shape index: {}]   ;;  %s9036_s10 = inlined_call_operand.vmem [shape: f32[1,64], index: 10, kind: input, shape index: {}]   ;;  %s9037_s11 = inlined_call_operand.vmem [shape: f32[64,256], index: 11, kind: input, shape index: {}]   ;;  %s9038_s12 = inlined_call_operand.vmem [shape: f32[1,256], index: 12, kind: input, shape index: {}]   ;;  %s9039_s13 = inlined_call_operand.vmem [shape: f32[3,128,64], index: 13, kind: input, shape index: {}]   ;;  %s9040_s14 = inlined_call_operand.vmem [shape: f32[1,64], index: 14, kind: input, shape index: {}]   ;;  %s9041_s15 = inlined_call_operand.vmem [shape: f32[64,256], index: 15, kind: input, shape index: {}]   ;;  %s9042_s16 = inlined_call_operand.vmem [shape: f32[1,256], index: 16, kind: input, shape index: {}]   ;;  %s9043_s17 = inlined_call_operand.vmem [shape: f32[5,128,64], index: 17, kind: input, shape index: {}]   ;;  %s9044_s18 = inlined_call_operand.vmem [shape: f32[1,64], index: 18, kind: input, shape index: {}]   ;;  %s9045_s19 = inlined_call_operand.vmem [shape: f32[64,256], index: 19, kind: input, shape index: {}]   ;;  %s9046_s20 = inlined_call_operand.vmem [shape: f32[1,256], index: 20, kind: input, shape index: {}]   ;;  %s9047_s21 = inlined_call_operand.vmem [shape: f32[5,128,32], index: 21, kind: input, shape index: {}]   ;;  %s9048_s22 = inlined_call_operand.vmem [shape: f32[1,32], index: 22, kind: input, shape index: {}]   ;;  %s9049_s23 = inlined_call_operand.vmem [shape: f32[2,8,16], index: 23, kind: input, shape index: {}]   ;;  %s9050_s24 = inlined_call_operand.vmem [shape: f32[2,16,8], index: 24, kind: input, shape index: {}]   ;;  %s9051_s25 = inlined_call_operand.vmem [shape: f32[2,16,32], index: 25, kind: output, shape index: {}]  }
   0x1   :  { %9061 = sst [smem:[#allocation3_spill]] %s9026_s0 }
   0x2   :  { %9062 = sst [smem:[#allocation4_spill]] %s9027_s1 }
   0x3   :  { %9063 = sst [smem:[#allocation5_spill]] %s9028_s2 }
   0x4   :  { %9064 = sst [smem:[#allocation6_spill]] %s9029_s3 }
   0x5   :  { %9065 = sst [smem:[#allocation7_spill]] %s9030_s4 }
   0x6   :  { %9066 = sst [smem:[#allocation8_spill]] %s9031_s5 }
   0x7   :  { %9067 = sst [smem:[#allocation9_spill]] %s9032_s6 }
   0x8   :  { %9068 = sst [smem:[#allocation10_spill]] %s9033_s7 }
   0x9   :  { %9069 = sst [smem:[#allocation11_spill]] %s9034_s8 }
   0xa   :  { %9070 = sst [smem:[#allocation12_spill]] %s9035_s9 }
   0xb LB: > { %s4995_s2 = sadd.s32 4294967295, %s7300_s29   ;;  %p4999_p0 = scmp.ge.s32.totalorder %s7300_s29, 1  ;;  %s7300_s29 = sphi %s7436_s29, %s35_s29  }
   0xc   : > { %p687_p1 = scmp.lt.s32.totalorder %s7300_s29, 3 }
   0xe   : > { %p688_p2 = pnand %p4999_p0, %p687_p1 }
   0xf   : > { %s9071_s7 = sld [smem:[#allocation4_spill]] (!%p688_p2)  ;;  %p755_p3 = scmp.lt.s32.totalorder (!%p688_p2), %s4995_s2, 1  ;;  %vm767_vm0 = vcmask (!%p688_p2), 386048   ;;  %v7302_v5 = vmov (!%p688_p2), 0.0   ;;  %vm770_vm1 = vcmask (!%p688_p2), 392192   ;;  %vm1400_vm2 = vcmask (!%p688_p2), 517120  }
  0x10   : > { %691 = sbr.rel (%p688_p2) target bundleno = 4586 (0x11ea), region = 120  ;;  %768 = vst.msk [vmem:[#allocation2] sm:$0x3] (!%p688_p2), %vm767_vm0, %v7302_v5  ;;  %769 = vst.msk [vmem:[#allocation2 + $0x12] sm:$0x3] (!%p688_p2), %vm767_vm0, %v7302_v5  ;;  %s9072_s26 = sld [smem:[#allocation3_spill]] (!%p688_p2) }
  0x11   : > { %s7304_s9 = smov (!%p688_p2), 64   ;;  %vm7305_vm3 = vmmov (!%p688_p2), 0   ;;  %s9073_s30 = sld [smem:[#allocation5_spill]] (!%p688_p2)  ;;  %vm1252_vm4 = vcmask (!%p688_p2), 130048   ;;  %vm1403_vm5 = vcmask (!%p688_p2), 523264   ;;  %vm1838_vm6 = vcmask (!%p688_p2), 64512  }
  0x12   : > { %s9074_s27 = sld [smem:[#allocation6_spill]] (!%p688_p2)  ;;  %s9075_s28 = sld [smem:[#allocation7_spill]] (!%p688_p2)  ;;  %vm1986_vm7 = vcmask (!%p688_p2), 516096   ;;  %vm1989_vm8 = vcmask (!%p688_p2), 519168   ;;  %vm2260_vm9 = vcmask (!%p688_p2), 1043456   ;;  %vm2256_vm10 = vcmask (!%p688_p2), 31744  }
  0x13   : > { %s9078_s8 = sld [smem:[#allocation10_spill]] (!%p688_p2)  ;;  %s9079_s4 = sld [smem:[#allocation12_spill]] (!%p688_p2)  ;;  %vm3041_vm11 = vcmask (!%p688_p2), 1041408   ;;  %vm3037_vm12 = vcmask (!%p688_p2), 15360   ;;  %vm4937_vm13 = vcmask (!%p688_p2), 261120  }
  0x14   : > { %s9080_s5 = sld [smem:[#allocation11_spill]] (!%p688_p2) }
  0x15   : > { %v775_v0 = vld [vmem:[%s9071_s7] sm:$0xff] (!%p688_p2)  ;;  %v776_v1 = vld [vmem:[%s9071_s7 + $0x8] sm:$0xff] (!%p688_p2)  ;;  %v777_v2 = vld [vmem:[%s9071_s7 + $0x10] sm:$0xff] (!%p688_p2) }
  0x16   : > { %v6626_v3 = vpack.c.bf16 (!%p688_p2), %v776_v1, %v775_v0  ;;  %v778_v4 = vld [vmem:[%s9071_s7 + $0x18] sm:$0xff] (!%p688_p2)  ;;  %v779_v7 = vld [vmem:[%s9071_s7 + $0x20] sm:$0xff] (!%p688_p2)  ;;  %v780_v8 = vld [vmem:[%s9071_s7 + $0x28] sm:$0xff] (!%p688_p2)  ;;  %v7303_v0 = vmov (!%p688_p2), 0.0|0.0  }
  0x17   : > { %v6630_v6 = vpack.c.bf16 %v778_v4, %v777_v2  ;;  %s9083_s2 = smov (!%p755_p3, %s4995_s2), 1  ;;  %v6634_v9 = vpack.c.bf16 %v780_v8, %v779_v7  ;;  %v5014_v10 = vld [vmem:[%s9071_s7 + $0x60] sm:$0xff]  ;;  %v5015_v11 = vld [vmem:[%s9071_s7 + $0x68] sm:$0xff]  ;;  %v5004_v14 = vld [vmem:[%s9071_s7 + $0x30] sm:$0xff] }
  0x18   : > { %6627 = vmatprep.subr.bf16.mxu0 %v6626_v3  ;;  %s9057_s6 = sshll.u32 %s9083_s2, 4  ;;  %v5005_v15 = vld [vmem:[%s9071_s7 + $0x38] sm:$0xff]  ;;  %v5006_v17 = vld [vmem:[%s9071_s7 + $0x40] sm:$0xff]  ;;  %v5007_v18 = vld [vmem:[%s9071_s7 + $0x48] sm:$0xff]  ;;  %v6638_v19 = vpack.c.bf16 %v5015_v11, %v5014_v10 }
  0x19   : > { %6629 = vmatpush3.bf16.msra.mxu0 %v6626_v3  ;;  %s759_s1 = scalar_lea.vmem %s9072_s26, %s9057_s6  ;;  %v6614_v16 = vpack.c.bf16 %v5005_v15, %v5004_v14  ;;  %v6618_v20 = vpack.c.bf16 %v5007_v18, %v5006_v17  ;;  %v5008_v21 = vld [vmem:[%s9071_s7 + $0x50] sm:$0xff]  ;;  %v5009_v22 = vld [vmem:[%s9071_s7 + $0x58] sm:$0xff]  ;;  %v5018_v26 = vld [vmem:[%s9071_s7 + $0x80] sm:$0xff]  ;;  %s9076_s26 = sld [smem:[#allocation8_spill]] }
  0x1a   : > { %6631 = vmatprep.subr.bf16.mxu0 %v6630_v6  ;;  %v765_v12 = vld [vmem:[%s759_s1] sm:$0xff]  ;;  %v766_v13 = vld [vmem:[%s759_s1 + $0x8] sm:$0xff]  ;;  %v5016_v23 = vld [vmem:[%s9071_s7 + $0x70] sm:$0xff]  ;;  %v6622_v25 = vpack.c.bf16 %v5009_v22, %v5008_v21  ;;  %s9081_s6 = sshll.u32 %s9083_s2, 4 }
  0x1b   : > { %771 = vst.msk [vmem:[#allocation2 + $0x2] sm:$0xff] %vm770_vm1, %v765_v12  ;;  %772 = vst.msk [vmem:[#allocation2 + $0xa] sm:$0xff] %vm770_vm1, %v766_v13  ;;  %6615 = vmatprep.subr.bf16.mxu1 %v6614_v16  ;;  %v5017_v24 = vld [vmem:[%s9071_s7 + $0x78] sm:$0xff]  ;;  %v5019_v27 = vld [vmem:[%s9071_s7 + $0x88] sm:$0xff] }
  0x1c   : > { %6617 = vmatpush3.bf16.msra.mxu1 %v6614_v16  ;;  %v6642_v30 = vpack.c.bf16 %v5017_v24, %v5016_v23  ;;  %v6646_v39 = vpack.c.bf16 %v5019_v27, %v5018_v26  ;;  %v5022_v40 = vld [vmem:[%s9071_s7 + $0x90] sm:$0xff]  ;;  %v5023_v41 = vld [vmem:[%s9071_s7 + $0x98] sm:$0xff]  ;;  %v5024_v43 = vld [vmem:[%s9071_s7 + $0xa0] sm:$0xff] }
  0x1d   : > { %6633 = vmatpush3.bf16.msra.mxu0 %v6630_v6  ;;  %6619 = vmatprep.subr.bf16.mxu1 %v6618_v20  ;;  %v6650_v42 = vpack.c.bf16 %v5023_v41, %v5022_v40  ;;  %v5025_v44 = vld [vmem:[%s9071_s7 + $0xa8] sm:$0xff]  ;;  %v5026_v46 = vld [vmem:[%s9071_s7 + $0xb0] sm:$0xff]  ;;  %v5027_v47 = vld [vmem:[%s9071_s7 + $0xb8] sm:$0xff] }
  0x1e   : > { %6635 = vmatprep.subr.bf16.mxu0 %v6634_v9  ;;  %v6654_v45 = vpack.c.bf16 %v5025_v44, %v5024_v43  ;;  %v6658_v48 = vpack.c.bf16 %v5027_v47, %v5026_v46  ;;  %v5030_v49 = vld [vmem:[%s9071_s7 + $0xc0] sm:$0xff]  ;;  %v5031_v50 = vld [vmem:[%s9071_s7 + $0xc8] sm:$0xff]  ;;  %v5032_v52 = vld [vmem:[%s9071_s7 + $0xd0] sm:$0xff] }
  0x1f   : > { %v6662_v51 = vpack.c.bf16 %v5031_v50, %v5030_v49  ;;  %v5033_v53 = vld [vmem:[%s9071_s7 + $0xd8] sm:$0xff]  ;;  %v5034_v55 = vld [vmem:[%s9071_s7 + $0xe0] sm:$0xff]  ;;  %v5035_v56 = vld [vmem:[%s9071_s7 + $0xe8] sm:$0xff] }
  0x20   : > { %6621 = vmatpush3.bf16.msra.mxu1 %v6618_v20  ;;  %v6666_v54 = vpack.c.bf16 %v5033_v53, %v5032_v52  ;;  %v6670_v57 = vpack.c.bf16 %v5035_v56, %v5034_v55  ;;  %v5038_v3 = vld [vmem:[%s9073_s30] ss:$0 sm:$0xff]  ;;  %v5043_v14 = vld [vmem:[%s9074_s27 + $0x48] sm:$0xff]  ;;  %v5044_v17 = vld [vmem:[%s9074_s27 + $0x50] sm:$0xff] }
  0x21   : > { %6637 = vmatpush3.bf16.msra.mxu0 %v6634_v9  ;;  %6623 = vmatprep.subr.bf16.mxu1 %v6622_v25  ;;  %v1249_v12 = vld [vmem:[%s9049_s23] sm:$0xff]  ;;  %v5039_v15 = vld [vmem:[%s9049_s23 + $0x8] sm:$0xff]  ;;  %v5045_v18 = vld [vmem:[%s9074_s27 + $0x58] sm:$0xff] }
  0x22   : > { %6639 = vmatprep.subr.bf16.mxu0 %v6638_v19  ;;  %v773_v28 = vld [vmem:[#allocation2] sm:$0xff]  ;;  %v774_v29 = vld [vmem:[#allocation2 + $0x8] sm:$0xff]  ;;  %v5048_v23 = vld [vmem:[%s9074_s27 + $0x70] sm:$0xff] }
  0x23   : > { %v952_v31 = vld [vmem:[#allocation2 + $0x2] sm:$0xff]  ;;  %5781 = vmatprep.mubr.msk.f32.mxu0 %vm770_vm1, %v773_v28  ;;  %v953_v32 = vld [vmem:[#allocation2 + $0xa] sm:$0xff]  ;;  %v5049_v24 = vld [vmem:[%s9074_s27 + $0x78] sm:$0xff] }
  0x24   : > { %v1044_v33 = vld [vmem:[#allocation2 + $0x3] sm:$0xff]  ;;  %v1045_v34 = vld [vmem:[#allocation2 + $0xb] sm:$0xff]  ;;  %5782 = vmatmul.mubr.msk.f32.vlgmr.msra.gmra.mrb[0].mxu0 %vm770_vm1, %v774_v29  ;;  %6625 = vmatpush3.bf16.msra.mxu1 %v6622_v25  ;;  %v6690_v25 = vpack.c.bf16 %v5049_v24, %v5048_v23  ;;  %v1413_v44 = vld [vmem:[%s9074_s27 + $0x38] sm:$0xff] }
  0x25   : > { %v781_v35 = vld [vmem:[#allocation2 + $0x1] sm:$0xff]  ;;  %v782_v36 = vld [vmem:[#allocation2 + $0x9] sm:$0xff]  ;;  %6641 = vmatpush3.bf16.msra.mxu0 %v6638_v19  ;;  %5796 = vmatprep.mubr.msk.f32.mxu0 %vm770_vm1, %v952_v31  ;;  %v6684_v19 = vpack.c.bf16 %v5045_v18, %v5044_v17  ;;  %v5055_v50 = vld [vmem:[%s9074_s27 + $0x98] sm:$0xff] }
  0x26   : > { %v1136_v37 = vld [vmem:[#allocation2 + $0x4] sm:$0xff]  ;;  %1401 = vst.msk [vmem:[#allocation2] sm:$0x3] %vm1400_vm2, %v7302_v5  ;;  %v1137_v38 = vld [vmem:[#allocation2 + $0xc] sm:$0xff]  ;;  %6643 = vmatprep.subr.bf16.mxu0 %v6642_v30  ;;  %5766 = vmatprep.mubr.msk.f32.mxu1 %vm770_vm1, %v781_v35  ;;  %v1409_v35 = vld [vmem:[%s9074_s27 + $0x18] sm:$0xff] }
  0x27   : > { %1402 = vst.msk [vmem:[#allocation2 + $0xa] sm:$0x3] %vm1400_vm2, %v7302_v5  ;;  %4450 = vst [vmem:[#allocation2 + $0x12] sm:$0x3] %v7302_v5  ;;  %5767 = vmatmul.mubr.msk.f32.vlgmr.msra.gmra.mrb[0].mxu1 %vm770_vm1, %v782_v36  ;;  %6674 = vmatprep.subr.bf16.mxu1 %v7303_v0  ;;  %v5042_v13 = vld [vmem:[%s9074_s27 + $0x40] sm:$0xff]  ;;  %v5047_v21 = vld [vmem:[%s9074_s27 + $0x68] sm:$0xff] }
  0x28   : > { %5833 = vmatprep.mubr.msk.f32.mxu1 %vm7305_vm3, %v7302_v5  ;;  %v6681_v16 = vpack.c.bf16 %v5043_v14, %v5042_v13  ;;  %v5046_v20 = vld [vmem:[%s9074_s27 + $0x60] sm:$0xff]  ;;  %v1411_v41 = vld [vmem:[%s9074_s27 + $0x28] sm:$0xff]  ;;  %v1412_v43 = vld [vmem:[%s9074_s27 + $0x30] sm:$0xff] }
  0x29   : > { %6645 = vmatpush3.bf16.msra.mxu0 %v6642_v30  ;;  %v6687_v22 = vpack.c.bf16 %v5047_v21, %v5046_v20  ;;  %v1406_v31 = vld [vmem:[%s9074_s27] sm:$0xff]  ;;  %v5053_v47 = vld [vmem:[%s9074_s27 + $0x88] sm:$0xff]  ;;  %v5054_v49 = vld [vmem:[%s9074_s27 + $0x90] sm:$0xff] }
  0x2a   : > { %6647 = vmatprep.subr.bf16.mxu0 %v6646_v39  ;;  %v1410_v40 = vld [vmem:[%s9074_s27 + $0x20] sm:$0xff]  ;;  %v6708_v52 = vpack.c.bf16 %v5055_v50, %v5054_v49  ;;  %v5058_v56 = vld [vmem:[%s9074_s27 + $0xb0] sm:$0xff]  ;;  %v5073_v14 = vld [vmem:[%s9074_s27 + $0x118] sm:$0xff] }
  0x2b   : > { %v5052_v46 = vld [vmem:[%s9074_s27 + $0x80] sm:$0xff]  ;;  %v5072_v13 = vld [vmem:[%s9074_s27 + $0x110] sm:$0xff]  ;;  %v5075_v17 = vld [vmem:[%s9074_s27 + $0x128] sm:$0xff] }
  0x2c   : > { %v5056_v53 = vld [vmem:[%s9074_s27 + $0xa0] sm:$0xff]  ;;  %v5077_v20 = vld [vmem:[%s9074_s27 + $0x138] sm:$0xff]  ;;  %v1993_v49 = vld [vmem:[%s9076_s26 + $0x8] sm:$0xff] }
  0x2d   : > { %6649 = vmatpush3.bf16.msra.mxu0 %v6646_v39  ;;  %v5079_v24 = vld [vmem:[%s9075_s28] ss:$0 sm:$0xff]  ;;  %s9077_s28 = sld [smem:[#allocation9_spill]] }
  0x2e   : > { %6651 = vmatprep.subr.bf16.mxu0 %v6650_v42 }
  0x30   : > { %5797 = vmatmul.mubr.msk.f32.vlgmr.msra.gmra.mrb[0].mxu0 %vm770_vm1, %v953_v32  ;;  %v1407_v32 = vld [vmem:[%s9074_s27 + $0x8] sm:$0xff] }
  0x31   : > { %6653 = vmatpush3.bf16.msra.mxu0 %v6650_v42  ;;  %5811 = vmatprep.mubr.msk.f32.mxu0 %vm770_vm1, %v1044_v33  ;;  %v6693_v33 = vpack.c.bf16 %v1407_v32, %v1406_v31  ;;  %v6699_v42 = vpack.c.bf16 %v1411_v41, %v1410_v40  ;;  %v5084_v31 = vld [vmem:[%s9076_s26 + $0x48] sm:$0xff]  ;;  %v5089_v40 = vld [vmem:[%s9076_s26 + $0x70] sm:$0xff]  ;;  %v5090_v41 = vld [vmem:[%s9076_s26 + $0x78] sm:$0xff] }
  0x32   : > { %6655 = vmatprep.subr.bf16.mxu0 %v6654_v45  ;;  %v5080_v32 = vld [vmem:[%s9049_s23 + $0x8] sm:$0xf] }
  0x35   : > { %6657 = vmatpush3.bf16.msra.mxu0 %v6654_v45  ;;  %v6702_v45 = vpack.c.bf16 %v1413_v44, %v1412_v43 }
  0x36   : > { %6659 = vmatprep.subr.bf16.mxu0 %v6658_v48 }
  0x39   : > { %6661 = vmatpush3.bf16.msra.mxu0 %v6658_v48  ;;  %v6705_v48 = vpack.c.bf16 %v5053_v47, %v5052_v46 }
  0x3a   : > { %6663 = vmatprep.subr.bf16.mxu0 %v6662_v51 }
  0x3c   : > { %5812 = vmatmul.mubr.msk.f32.vlgmr.msra.gmra.mrb[0].mxu0 %vm770_vm1, %v1045_v34  ;;  %v1408_v34 = vld [vmem:[%s9074_s27 + $0x10] sm:$0xff] }
  0x3d   : > { %6665 = vmatpush3.bf16.msra.mxu0 %v6662_v51  ;;  %5826 = vmatprep.mubr.msk.f32.mxu0 %vm770_vm1, %v1136_v37  ;;  %v6696_v39 = vpack.c.bf16 %v1409_v35, %v1408_v34  ;;  %v5085_v34 = vld [vmem:[%s9076_s26 + $0x50] sm:$0xff]  ;;  %v5086_v35 = vld [vmem:[%s9076_s26 + $0x58] sm:$0xff] }
  0x3e   : > { %6667 = vmatprep.subr.bf16.mxu0 %v6666_v54 }
  0x41   : > { %6669 = vmatpush3.bf16.msra.mxu0 %v6666_v54  ;;  %v5057_v54 = vld [vmem:[%s9074_s27 + $0xa8] sm:$0xff] }
  0x42   : > { %6671 = vmatprep.subr.bf16.mxu0 %v6670_v57  ;;  %v6711_v55 = vpack.c.bf16 %v5057_v54, %v5056_v53 }
  0x45   : > { %6673 = vmatpush3.bf16.msra.mxu0 %v6670_v57  ;;  %v5059_v57 = vld [vmem:[%s9074_s27 + $0xb8] sm:$0xff] }
  0x46   : > { %5938 = vmatprep.subr.mxu0 %v7302_v5 }
  0x48   : > { %5827 = vmatmul.mubr.msk.f32.vlgmr.msra.gmra.mrb[0].mxu0 %vm770_vm1, %v1137_v38 }
  0x49   : > { %5940 = vmatprep.mubr.msk.f32.mxu0 %vm7305_vm3, %v7302_v5 }
  0xfa   : > { %v5768_v58 = vpop.f32.mrb[0].mxu1 }
  0xfb   : > { %v862_v59 = vpop.f32.mrb[1].mxu1 }
 0x11b   : > { %v5828_v60 = vpop.f32.mrb[0].mxu0 }
 0x11c   : > { %v7248_v61 = vadd.f32 %v5828_v60, %v5768_v58  ;;  %v1217_v62 = vpop.f32.mrb[1].mxu0  ;;  %v6714_v58 = vpack.c.bf16 %v5059_v57, %v5058_v56  ;;  %v5062_v60 = vld [vmem:[%s9074_s27 + $0xc8] sm:$0xff]  ;;  %v1996_v57 = vld [vmem:[%s9076_s26 + $0x20] sm:$0xff] }
 0x11d   : > { %v7249_v63 = vadd.f32 %v1217_v62, %v862_v59  ;;  %v5061_v59 = vld [vmem:[%s9074_s27 + $0xc0] sm:$0xff]  ;;  %v5063_v62 = vld [vmem:[%s9074_s27 + $0xd0] sm:$0xff] }
 0x11f   : > { %1231 = vrot.lane.b32.xlu0 %v7249_v63, %s7304_s9 }
 0x123   : > { %1233 = vrot.lane.b32.xlu0 %v7248_v61, %s7304_s9 }
 0x191   : > { %v1232_v1 = vpop.permute.xlu0 %1231 }
 0x192   : > { %v1237_v2 = vmax.f32 %v7249_v63, %v1232_v1  ;;  %v5064_v63 = vld [vmem:[%s9074_s27 + $0xd8] sm:$0xff] }
 0x194   : > { %v1245_v6 = vadd.f32 %v5038_v3, %v1237_v2  ;;  %v6720_v2 = vpack.c.bf16 %v5064_v63, %v5063_v62  ;;  %v5093_v63 = vld [vmem:[%s9076_s26 + $0x80] sm:$0xff] }
 0x195   : > { %v1234_v4 = vpop.permute.xlu0 %1233 }
 0x196   : > { %v1238_v7 = vmax.f32 %v7248_v61, %v1234_v4  ;;  %v1247_v9 = vmax.f32 %v1245_v6, 0.0  ;;  %v6717_v61 = vpack.c.bf16 %v5062_v60, %v5061_v59  ;;  %v5066_v4 = vld [vmem:[%s9074_s27 + $0xe8] sm:$0xff]  ;;  %v1998_v60 = vld [vmem:[%s9076_s26 + $0x30] sm:$0xff] }
 0x198   : > { %v1246_v8 = vadd.f32 %v5038_v3, %v1238_v7  ;;  %v5065_v3 = vld [vmem:[%s9074_s27 + $0xe0] sm:$0xff]  ;;  %v5067_v7 = vld [vmem:[%s9074_s27 + $0xf0] sm:$0xff] }
 0x199   : > { %v6723_v6 = vpack.c.bf16 %v5066_v4, %v5065_v3  ;;  %v5095_v3 = vld [vmem:[%s9076_s26 + $0x90] sm:$0xff]  ;;  %v5096_v4 = vld [vmem:[%s9076_s26 + $0x98] sm:$0xff] }
 0x19a   : > { %v1248_v10 = vmax.f32 %v1246_v8, 0.0  ;;  %v5068_v8 = vld [vmem:[%s9074_s27 + $0xf8] sm:$0xff] }
 0x19c   : > { %v6675_v11 = vpack.c.bf16 %v1248_v10, %v1247_v9  ;;  %v6726_v9 = vpack.c.bf16 %v5068_v8, %v5067_v7  ;;  %v5070_v10 = vld [vmem:[%s9074_s27 + $0x100] sm:$0xff]  ;;  %v5098_v8 = vld [vmem:[%s9076_s26 + $0xa8] sm:$0xff] }
 0x19d   : > { %v5097_v7 = vld [vmem:[%s9076_s26 + $0xa0] sm:$0xff] }
 0x19e   : > { %6676 = vmatpush3.bf16.msra.mxu1 %v6675_v11 }
 0x19f   : > { %6677 = vmatprep.subr.bf16.mxu1 %v7303_v0 }
 0x1a1   : > { %5834 = vmatmul.mubr.msk.f32.vlgmr.msra.gmra.mrb[2].mxu1 %vm1252_vm4, %v1249_v12 }
 0x1a2   : > { %6679 = vmatpush3.bf16.msra.mxu1 %v6675_v11  ;;  %5840 = vmatprep.mubr.msk.f32.mxu1 %vm7305_vm3, %v7302_v5  ;;  %v5071_v11 = vld [vmem:[%s9074_s27 + $0x108] sm:$0xff] }
 0x1a3   : > { %6680 = vmatprep.subr.bf16.mxu1 %v7303_v0  ;;  %v6729_v12 = vpack.c.bf16 %v5071_v11, %v5070_v10  ;;  %v5099_v10 = vld [vmem:[%s9076_s26 + $0xb0] sm:$0xff]  ;;  %v5100_v11 = vld [vmem:[%s9076_s26 + $0xb8] sm:$0xff] }
 0x1a5   : > { %5841 = vmatmul.mubr.msk.f32.vlgmr.msra.gmra.mrb[4].mxu1 %vm1252_vm4, %v5039_v15  ;;  %v6732_v15 = vpack.c.bf16 %v5073_v14, %v5072_v13 }
 0x1a6   : > { %6682 = vmatpush3.bf16.msra.mxu1 %v6681_v16  ;;  %5859 = vmatprep.mubr.msk.f32.mxu1 %vm7305_vm3, %v7302_v5  ;;  %v5074_v16 = vld [vmem:[%s9074_s27 + $0x120] sm:$0xff] }
 0x1a7   : > { %6683 = vmatprep.subr.bf16.mxu1 %v7303_v0  ;;  %v6735_v18 = vpack.c.bf16 %v5075_v17, %v5074_v16 }
 0x1aa   : > { %6685 = vmatpush3.bf16.msra.mxu1 %v6684_v19  ;;  %v5076_v19 = vld [vmem:[%s9074_s27 + $0x130] sm:$0xff] }
 0x1ab   : > { %6686 = vmatprep.subr.bf16.mxu1 %v7303_v0  ;;  %v6738_v21 = vpack.c.bf16 %v5077_v20, %v5076_v19  ;;  %v2254_v20 = vld [vmem:[%s9049_s23] sm:$0x3] }
 0x1ae   : > { %6688 = vmatpush3.bf16.msra.mxu1 %v6687_v22 }
 0x1af   : > { %6689 = vmatprep.subr.bf16.mxu1 %v7303_v0 }
 0x1b2   : > { %6691 = vmatpush3.bf16.msra.mxu1 %v6690_v25 }
 0x1b3   : > { %6692 = vmatprep.subr.bf16.mxu1 %v7303_v0 }
 0x274   : > { %v1322_v26 = vpop.f32.mrb[2].mxu1 }
 0x275   : > { %v5835_v27 = vpop.f32.mrb[3].mxu1 }
 0x278   : > { %v1395_v28 = vpop.f32.mrb[4].mxu1 }
 0x279   : > { %v1399_v29 = vmax.f32 %v1322_v26, %v1395_v28  ;;  %v5842_v30 = vpop.f32.mrb[5].mxu1 }
 0x27a   : > { %v5083_v30 = vld [vmem:[%s9076_s26 + $0x40] sm:$0xff] }
 0x27b   : > { %1404 = vst.msk [vmem:[#allocation2 + $0x2] sm:$0xff] %vm1403_vm5, %v1399_v29  ;;  %v1836_v29 = vld [vmem:[%s9049_s23] sm:$0xf] }
 0x282   : > { %v1414_v36 = vld [vmem:[#allocation2 + $0x1] sm:$0xff] }
 0x283   : > { %5860 = vmatmul.mubr.msk.f32.vlgmr.msra.gmra.mrb[6].mxu1 %vm1403_vm5, %v1414_v36  ;;  %v7626_v37 = vld [vmem:[#allocation2 + $0x3] sm:$0xff]  ;;  %v6744_v36 = vpack.c.bf16 %v5086_v35, %v5085_v34 }
 0x284   : > { %v7628_v38 = vld [vmem:[#allocation2 + $0x4] sm:$0xff]  ;;  %6694 = vmatpush3.bf16.msra.mxu1 %v6693_v33  ;;  %5878 = vmatprep.mubr.msk.f32.mxu1 %vm7305_vm3, %v7302_v5  ;;  %v6741_v33 = vpack.c.bf16 %v5084_v31, %v5083_v30  ;;  %v5120_v31 = vld [vmem:[%s9078_s8 + $0x90] sm:$0xff] }
 0x285   : > { %3726 = vst [vmem:[#allocation2 + $0xa] sm:$0x3] %v7302_v5  ;;  %6695 = vmatprep.subr.bf16.mxu1 %v7303_v0  ;;  %v1405_v51 = vld [vmem:[#allocation2] sm:$0xff]  ;;  %v5113_v35 = vld [vmem:[%s9078_s8 + $0x68] sm:$0xff] }
 0x286   : > { %v1570_v1 = vld [vmem:[#allocation2 + $0x2] sm:$0xff]  ;;  %1987 = vst.msk [vmem:[#allocation2] sm:$0x1] %vm1986_vm7, %v7302_v5 }
 0x287   : > { %1988 = vst.msk [vmem:[#allocation2 + $0x5] sm:$0x1] %vm1986_vm7, %v7302_v5  ;;  %v5112_v34 = vld [vmem:[%s9078_s8 + $0x60] sm:$0xff] }
 0x288   : > { %6697 = vmatpush3.bf16.msra.mxu1 %v6696_v39 }
 0x289   : > { %6698 = vmatprep.subr.bf16.mxu1 %v7303_v0 }
 0x28c   : > { %6700 = vmatpush3.bf16.msra.mxu1 %v6699_v42  ;;  %v6750_v42 = vpack.c.bf16 %v5090_v41, %v5089_v40  ;;  %v5114_v40 = vld [vmem:[%s9078_s8 + $0x70] sm:$0xff]  ;;  %v5115_v41 = vld [vmem:[%s9078_s8 + $0x78] sm:$0xff] }
 0x28d   : > { %6701 = vmatprep.subr.bf16.mxu1 %v7303_v0 }
 0x290   : > { %6703 = vmatpush3.bf16.msra.mxu1 %v6702_v45 }
 0x291   : > { %6704 = vmatprep.subr.bf16.mxu1 %v7303_v0 }
 0x293   : > { %5879 = vmatmul.mubr.msk.f32.vlgmr.msra.gmra.mrb[6].mxu1 %vm1403_vm5, %v1405_v51  ;;  %v1994_v51 = vld [vmem:[%s9076_s26 + $0x10] sm:$0xff] }
 0x294   : > { %6706 = vmatpush3.bf16.msra.mxu1 %v6705_v48  ;;  %5897 = vmatprep.mubr.msk.f32.mxu1 %vm7305_vm3, %v7302_v5  ;;  %v1992_v48 = vld [vmem:[%s9076_s26] sm:$0xff] }
 0x295   : > { %6707 = vmatprep.subr.bf16.mxu1 %v7303_v0  ;;  %v6753_v50 = vpack.c.bf16 %v1993_v49, %v1992_v48 }
 0x298   : > { %6709 = vmatpush3.bf16.msra.mxu1 %v6708_v52  ;;  %v1995_v52 = vld [vmem:[%s9076_s26 + $0x18] sm:$0xff] }
 0x299   : > { %6710 = vmatprep.subr.bf16.mxu1 %v7303_v0  ;;  %v6756_v56 = vpack.c.bf16 %v1995_v52, %v1994_v51  ;;  %v2412_v51 = vld [vmem:[%s9078_s8] sm:$0xff]  ;;  %v2413_v52 = vld [vmem:[%s9078_s8 + $0x8] sm:$0xff] }
 0x29c   : > { %6712 = vmatpush3.bf16.msra.mxu1 %v6711_v55 }
 0x29d   : > { %6713 = vmatprep.subr.bf16.mxu1 %v7303_v0 }
 0x2a0   : > { %6715 = vmatpush3.bf16.msra.mxu1 %v6714_v58  ;;  %v1997_v58 = vld [vmem:[%s9076_s26 + $0x28] sm:$0xff] }
 0x2a1   : > { %6716 = vmatprep.subr.bf16.mxu1 %v7303_v0  ;;  %v6759_v59 = vpack.c.bf16 %v1997_v58, %v1996_v57 }
 0x2a3   : > { %5898 = vmatmul.mubr.msk.f32.vlgmr.msra.gmra.mrb[6].mxu1 %vm1403_vm5, %v1570_v1  ;;  %v5094_v1 = vld [vmem:[%s9076_s26 + $0x88] sm:$0xff] }
 0x2a4   : > { %6718 = vmatpush3.bf16.msra.mxu1 %v6717_v61  ;;  %5916 = vmatprep.mubr.msk.f32.mxu1 %vm7305_vm3, %v7302_v5  ;;  %v1999_v61 = vld [vmem:[%s9076_s26 + $0x38] sm:$0xff] }
 0x2a5   : > { %6719 = vmatprep.subr.bf16.mxu1 %v7303_v0  ;;  %v6762_v62 = vpack.c.bf16 %v1999_v61, %v1998_v60  ;;  %v2416_v60 = vld [vmem:[%s9078_s8 + $0x20] sm:$0xff]  ;;  %v2417_v61 = vld [vmem:[%s9078_s8 + $0x28] sm:$0xff] }
 0x2a8   : > { %6721 = vmatpush3.bf16.msra.mxu1 %v6720_v2  ;;  %v6765_v2 = vpack.c.bf16 %v5094_v1, %v5093_v63  ;;  %v2418_v63 = vld [vmem:[%s9078_s8 + $0x30] sm:$0xff]  ;;  %v2419_v1 = vld [vmem:[%s9078_s8 + $0x38] sm:$0xff] }
 0x2a9   : > { %6722 = vmatprep.subr.bf16.mxu1 %v7303_v0 }
 0x2ac   : > { %6724 = vmatpush3.bf16.msra.mxu1 %v6723_v6  ;;  %v6768_v6 = vpack.c.bf16 %v5096_v4, %v5095_v3  ;;  %v5128_v3 = vld [vmem:[%s9079_s4 + $0x40] sm:$0xff]  ;;  %v5129_v4 = vld [vmem:[%s9079_s4 + $0x48] sm:$0xff] }
 0x2ad   : > { %6725 = vmatprep.subr.bf16.mxu1 %v7303_v0 }
 0x2b0   : > { %6727 = vmatpush3.bf16.msra.mxu1 %v6726_v9  ;;  %v6771_v9 = vpack.c.bf16 %v5098_v8, %v5097_v7  ;;  %v2673_v7 = vld [vmem:[%s9079_s4] sm:$0xff]  ;;  %v2674_v8 = vld [vmem:[%s9079_s4 + $0x8] sm:$0xff] }
 0x2b1   : > { %6728 = vmatprep.subr.bf16.mxu1 %v7303_v0 }
 0x2b3   : > { %5917 = vmatmul.mubr.msk.f32.vlgmr.msra.gmra.mrb[6].mxu1 %vm1403_vm5, %v7626_v37  ;;  %v5087_v37 = vld [vmem:[%s9076_s26 + $0x60] sm:$0xff] }
 0x2b4   : > { %6730 = vmatpush3.bf16.msra.mxu1 %v6729_v12  ;;  %5935 = vmatprep.mubr.msk.f32.mxu1 %vm7305_vm3, %v7302_v5  ;;  %v6774_v12 = vpack.c.bf16 %v5100_v11, %v5099_v10  ;;  %v5130_v10 = vld [vmem:[%s9079_s4 + $0x50] sm:$0xff]  ;;  %v5131_v11 = vld [vmem:[%s9079_s4 + $0x58] sm:$0xff] }
 0x2b5   : > { %6731 = vmatprep.subr.bf16.mxu1 %v7303_v0 }
 0x2b8   : > { %6733 = vmatpush3.bf16.msra.mxu1 %v6732_v15  ;;  %v5102_v15 = vld [vmem:[%s9077_s28] ss:$0 sm:$0xff]  ;;  %s764_s28 = scalar_lea.vmem %s9051_s25, %s9081_s6 }
 0x2b9   : > { %6734 = vmatprep.subr.bf16.mxu1 %v7303_v0 }
 0x2bc   : > { %6736 = vmatpush3.bf16.msra.mxu1 %v6735_v18 }
 0x2bd   : > { %6737 = vmatprep.subr.bf16.mxu1 %v7303_v0 }
 0x2c0   : > { %6739 = vmatpush3.bf16.msra.mxu1 %v6738_v21  ;;  %v5108_v21 = vld [vmem:[%s9078_s8 + $0x40] sm:$0xff] }
 0x2c1   : > { %6005 = vmatprep.subr.mxu1 %v7302_v5 }
 0x2c3   : > { %5936 = vmatmul.mubr.msk.f32.vlgmr.msra.gmra.mrb[6].mxu1 %vm1403_vm5, %v7628_v38  ;;  %v5088_v38 = vld [vmem:[%s9076_s26 + $0x68] sm:$0xff] }
 0x2c4   : > { %6007 = vmatprep.mubr.msk.f32.mxu1 %vm7305_vm3, %v7302_v5  ;;  %v6747_v39 = vpack.c.bf16 %v5088_v38, %v5087_v37  ;;  %v5122_v37 = vld [vmem:[%s9078_s8 + $0xa0] sm:$0xff]  ;;  %v5123_v38 = vld [vmem:[%s9078_s8 + $0xa8] sm:$0xff] }
 0x396   : > { %v1817_v22 = vpop.f32.mrb[6].mxu1 }
 0x397   : > { %1824 = vrot.lane.b32.xlu1 %v1817_v22, %s7304_s9  ;;  %v5937_v23 = vpop.f32.mrb[7].mxu1 }
 0x398   : > { %v5103_v23 = vld [vmem:[%s9049_s23 + $0x8] sm:$0x3] }
 0x409   : > { %v1825_v25 = vpop.permute.xlu1 %1824 }
 0x40a   : > { %v1827_v26 = vmax.f32 %v1817_v22, %v1825_v25  ;;  %v5109_v22 = vld [vmem:[%s9078_s8 + $0x48] sm:$0xff]  ;;  %v5118_v25 = vld [vmem:[%s9078_s8 + $0x80] sm:$0xff] }
 0x40c   : > { %v1834_v27 = vadd.f32 %v5079_v24, %v1827_v26  ;;  %v6777_v24 = vpack.c.bf16 %v5109_v22, %v5108_v21  ;;  %v5119_v26 = vld [vmem:[%s9078_s8 + $0x88] sm:$0xff]  ;;  %v5134_v22 = vld [vmem:[%s9079_s4 + $0x70] sm:$0xff] }
 0x40e   : > { %v1835_v28 = vmax.f32 %v1834_v27, 0.0  ;;  %v6801_v27 = vpack.c.bf16 %v5119_v26, %v5118_v25  ;;  %v2680_v26 = vld [vmem:[%s9079_s4 + $0x38] sm:$0xff] }
 0x410   : > { %5939 = vmatpush3.msra.mxu0 %v1835_v28 }
 0x411   : > { %5941 = vmatmul.mubr.msk.f32.vlgmr.msra.gmra.mrb[2].mxu0 %vm1838_vm6, %v1836_v29  ;;  %5943 = vmatprep.subr.mxu0 %v7302_v5  ;;  %v5111_v29 = vld [vmem:[%s9078_s8 + $0x58] sm:$0xff] }
 0x412   : > { %5944 = vmatpush3.msra.mxu0 %v1835_v28  ;;  %5945 = vmatprep.mubr.msk.f32.mxu0 %vm7305_vm3, %v7302_v5  ;;  %v5110_v28 = vld [vmem:[%s9078_s8 + $0x50] sm:$0xff] }
 0x413   : > { %6740 = vmatprep.subr.bf16.mxu0 %v7303_v0  ;;  %v6780_v30 = vpack.c.bf16 %v5111_v29, %v5110_v28 }
 0x415   : > { %5946 = vmatmul.mubr.msk.f32.vlgmr.msra.gmra.mrb[4].mxu0 %vm1838_vm6, %v5080_v32  ;;  %v5121_v32 = vld [vmem:[%s9078_s8 + $0x98] sm:$0xff] }
 0x416   : > { %6742 = vmatpush3.bf16.msra.mxu0 %v6741_v33  ;;  %5964 = vmatprep.mubr.msk.f32.mxu0 %vm7305_vm3, %v7302_v5  ;;  %v6804_v33 = vpack.c.bf16 %v5121_v32, %v5120_v31 }
 0x417   : > { %6743 = vmatprep.subr.bf16.mxu0 %v7303_v0 }
 0x41a   : > { %6745 = vmatpush3.bf16.msra.mxu0 %v6744_v36  ;;  %v6783_v36 = vpack.c.bf16 %v5113_v35, %v5112_v34  ;;  %v5127_v35 = vld [vmem:[%s9080_s5] ss:$0 sm:$0xff] }
 0x41b   : > { %6746 = vmatprep.subr.bf16.mxu0 %v7303_v0 }
 0x41e   : > { %6748 = vmatpush3.bf16.msra.mxu0 %v6747_v39  ;;  %v6807_v39 = vpack.c.bf16 %v5123_v38, %v5122_v37 }
 0x41f   : > { %6749 = vmatprep.subr.bf16.mxu0 %v7303_v0 }
 0x422   : > { %6751 = vmatpush3.bf16.msra.mxu0 %v6750_v42  ;;  %v5124_v42 = vld [vmem:[%s9078_s8 + $0xb0] sm:$0xff] }
 0x423   : > { %6752 = vmatprep.subr.bf16.mxu0 %v7303_v0 }
 0x4e4   : > { %v1908_v43 = vpop.f32.mrb[2].mxu0 }
 0x4e5   : > { %v5942_v44 = vpop.f32.mrb[3].mxu0 }
 0x4e6   : > { %v5125_v44 = vld [vmem:[%s9078_s8 + $0xb8] sm:$0xff] }
 0x4e8   : > { %v1981_v45 = vpop.f32.mrb[4].mxu0 }
 0x4e9   : > { %v1985_v46 = vmax.f32 %v1908_v43, %v1981_v45  ;;  %v5947_v47 = vpop.f32.mrb[5].mxu0  ;;  %v6786_v43 = vpack.c.bf16 %v5115_v41, %v5114_v40  ;;  %v6810_v45 = vpack.c.bf16 %v5125_v44, %v5124_v42  ;;  %v5139_v40 = vld [vmem:[%s9079_s4 + $0x88] sm:$0xff]  ;;  %v5140_v42 = vld [vmem:[%s9079_s4 + $0x90] sm:$0xff] }
 0x4eb   : > { %1990 = vst.msk [vmem:[#allocation2 + $0x1] sm:$0xf] %vm1989_vm8, %v1985_v46 }
 0x4f2   : > { %v2000_v53 = vld [vmem:[#allocation2 + $0x1] sm:$0xf] }
 0x4f3   : > { %v1991_v54 = vld [vmem:[#allocation2] sm:$0xf]  ;;  %5965 = vmatmul.mubr.msk.f32.vlgmr.msra.gmra.mrb[6].mxu0 %vm1403_vm5, %v2000_v53  ;;  %v6789_v53 = vpack.c.bf16 %v2413_v52, %v2412_v51  ;;  %v5145_v51 = vld [vmem:[%s9079_s4 + $0xb8] sm:$0xff] }
 0x4f4   : > { %v2156_v55 = vld [vmem:[#allocation2 + $0x2] sm:$0xf]  ;;  %2408 = vst.msk [vmem:[#allocation2] sm:$0x1] %vm1986_vm7, %v7302_v5  ;;  %6754 = vmatpush3.bf16.msra.mxu0 %v6753_v50  ;;  %5983 = vmatprep.mubr.msk.f32.mxu0 %vm7305_vm3, %v7302_v5 }
 0x4f5   : > { %2409 = vst.msk [vmem:[#allocation2 + $0x3] sm:$0x1] %vm1986_vm7, %v7302_v5  ;;  %3192 = vst [vmem:[#allocation2 + $0x5] sm:$0x1] %v7302_v5  ;;  %6755 = vmatprep.subr.bf16.mxu0 %v7303_v0 }
 0x4f8   : > { %6757 = vmatpush3.bf16.msra.mxu0 %v6756_v56 }
 0x4f9   : > { %6758 = vmatprep.subr.bf16.mxu0 %v7303_v0 }
 0x4fc   : > { %6760 = vmatpush3.bf16.msra.mxu0 %v6759_v59 }
 0x4fd   : > { %6761 = vmatprep.subr.bf16.mxu0 %v7303_v0 }
 0x500   : > { %6763 = vmatpush3.bf16.msra.mxu0 %v6762_v62  ;;  %v6795_v62 = vpack.c.bf16 %v2417_v61, %v2416_v60  ;;  %v2937_v60 = vld [vmem:[%s9037_s11 + $0x38] sm:$0xff] }
 0x501   : > { %6764 = vmatprep.subr.bf16.mxu0 %v7303_v0 }
 0x503   : > { %5984 = vmatmul.mubr.msk.f32.vlgmr.msra.gmra.mrb[6].mxu0 %vm1403_vm5, %v1991_v54  ;;  %v2414_v54 = vld [vmem:[%s9078_s8 + $0x10] sm:$0xff] }
 0x504   : > { %6766 = vmatpush3.bf16.msra.mxu0 %v6765_v2  ;;  %6002 = vmatprep.mubr.msk.f32.mxu0 %vm7305_vm3, %v7302_v5  ;;  %v6798_v2 = vpack.c.bf16 %v2419_v1, %v2418_v63  ;;  %v2934_v63 = vld [vmem:[%s9037_s11 + $0x20] sm:$0xff]  ;;  %v2936_v1 = vld [vmem:[%s9037_s11 + $0x30] sm:$0xff] }
 0x505   : > { %6767 = vmatprep.subr.bf16.mxu0 %v7303_v0 }
 0x508   : > { %6769 = vmatpush3.bf16.msra.mxu0 %v6768_v6  ;;  %v6813_v6 = vpack.c.bf16 %v5129_v4, %v5128_v3  ;;  %v2941_v3 = vld [vmem:[%s9037_s11 + $0x58] sm:$0xff]  ;;  %v6854_v4 = vpack.c.bf16 %v2936_v1, %v2934_v63  ;;  %v5168_v63 = vld [vmem:[%s9039_s13 + $0xf0] sm:$0xff] }
 0x509   : > { %6770 = vmatprep.subr.bf16.mxu0 %v7303_v0  ;;  %v5169_v1 = vld [vmem:[%s9039_s13 + $0xf8] sm:$0xff] }
 0x50c   : > { %6772 = vmatpush3.bf16.msra.mxu0 %v6771_v9  ;;  %v6825_v9 = vpack.c.bf16 %v2674_v8, %v2673_v7  ;;  %v2938_v7 = vld [vmem:[%s9037_s11 + $0x40] sm:$0xff]  ;;  %v2940_v8 = vld [vmem:[%s9037_s11 + $0x50] sm:$0xff] }
 0x50d   : > { %6773 = vmatprep.subr.bf16.mxu0 %v7303_v0 }
 0x510   : > { %6775 = vmatpush3.bf16.msra.mxu0 %v6774_v12  ;;  %v6816_v12 = vpack.c.bf16 %v5131_v11, %v5130_v10  ;;  %v2943_v10 = vld [vmem:[%s9037_s11 + $0x68] sm:$0xff]  ;;  %v2945_v11 = vld [vmem:[%s9037_s11 + $0x78] sm:$0xff] }
 0x511   : > { %6800 = vmatprep.subr.bf16.mxu0 %v7303_v0 }
 0x513   : > { %6003 = vmatmul.mubr.msk.f32.vlgmr.msra.gmra.mrb[6].mxu0 %vm1403_vm5, %v2156_v55  ;;  %v2415_v55 = vld [vmem:[%s9078_s8 + $0x18] sm:$0xff] }
 0x514   : > { %6069 = vmatprep.mubr.msk.f32.mxu0 %vm7305_vm3, %v7302_v5  ;;  %6802 = vmatpush3.bf16.msra.mxu0 %v6801_v27  ;;  %v6792_v59 = vpack.c.bf16 %v2415_v55, %v2414_v54  ;;  %v2931_v54 = vld [vmem:[%s9037_s11 + $0x8] sm:$0xff]  ;;  %v2933_v55 = vld [vmem:[%s9037_s11 + $0x18] sm:$0xff] }
 0x515   : > { %6803 = vmatprep.subr.bf16.mxu0 %v7303_v0 }
 0x518   : > { %6805 = vmatpush3.bf16.msra.mxu0 %v6804_v33 }
 0x519   : > { %6806 = vmatprep.subr.bf16.mxu0 %v7303_v0 }
 0x51c   : > { %6808 = vmatpush3.bf16.msra.mxu0 %v6807_v39  ;;  %v5138_v39 = vld [vmem:[%s9079_s4 + $0x80] sm:$0xff] }
 0x51d   : > { %6809 = vmatprep.subr.bf16.mxu0 %v7303_v0  ;;  %v6837_v41 = vpack.c.bf16 %v5139_v40, %v5138_v39  ;;  %v5149_v39 = vld [vmem:[%s9050_s24 + $0x10] sm:$0xf] }
 0x520   : > { %6811 = vmatpush3.bf16.msra.mxu0 %v6810_v45 }
 0x521   : > { %6824 = vmatprep.subr.bf16.mxu0 %v7303_v0 }
 0x5e6   : > { %v2235_v13 = vpop.f32.mrb[6].mxu0 }
 0x5e7   : > { %2242 = vrot.lane.b32.xlu1 %v2235_v13, %s7304_s9  ;;  %v6004_v14 = vpop.f32.mrb[7].mxu0 }
 0x5e8   : > { %v2676_v14 = vld [vmem:[%s9079_s4 + $0x18] sm:$0xff] }
 0x659   : > { %v2243_v16 = vpop.permute.xlu1 %2242 }
 0x65a   : > { %v2245_v17 = vmax.f32 %v2235_v13, %v2243_v16  ;;  %v2675_v13 = vld [vmem:[%s9079_s4 + $0x10] sm:$0xff]  ;;  %v5132_v16 = vld [vmem:[%s9079_s4 + $0x60] sm:$0xff] }
 0x65c   : > { %v2252_v18 = vadd.f32 %v5102_v15, %v2245_v17  ;;  %v6828_v15 = vpack.c.bf16 %v2676_v14, %v2675_v13  ;;  %v5133_v17 = vld [vmem:[%s9079_s4 + $0x68] sm:$0xff]  ;;  %v2942_v13 = vld [vmem:[%s9037_s11 + $0x60] sm:$0xff]  ;;  %v2944_v14 = vld [vmem:[%s9037_s11 + $0x70] sm:$0xff] }
 0x65e   : > { %v2253_v19 = vmax.f32 %v2252_v18, 0.0  ;;  %v6819_v18 = vpack.c.bf16 %v5133_v17, %v5132_v16 }
 0x660   : > { %6006 = vmatpush3.msk.msra.mxu1 %vm2260_vm9, %v2253_v19 }
 0x661   : > { %6008 = vmatmul.mubr.msk.f32.vlgmr.msra.gmra.mrb[8].mxu1 %vm2256_vm10, %v2254_v20  ;;  %6010 = vmatprep.subr.mxu1 %v7302_v5  ;;  %v2678_v20 = vld [vmem:[%s9079_s4 + $0x28] sm:$0xff] }
 0x662   : > { %6011 = vmatpush3.msk.msra.mxu1 %vm2260_vm9, %v2253_v19  ;;  %6012 = vmatprep.mubr.msk.f32.mxu1 %vm7305_vm3, %v7302_v5  ;;  %v2677_v19 = vld [vmem:[%s9079_s4 + $0x20] sm:$0xff] }
 0x663   : > { %6776 = vmatprep.subr.bf16.mxu1 %v7303_v0  ;;  %v6831_v21 = vpack.c.bf16 %v2678_v20, %v2677_v19 }
 0x665   : > { %6013 = vmatmul.mubr.msk.f32.vlgmr.msra.gmra.mrb[10].mxu1 %vm2256_vm10, %v5103_v23  ;;  %v5135_v23 = vld [vmem:[%s9079_s4 + $0x78] sm:$0xff] }
 0x666   : > { %6778 = vmatpush3.bf16.msra.mxu1 %v6777_v24  ;;  %6031 = vmatprep.mubr.msk.f32.mxu1 %vm7305_vm3, %v7302_v5  ;;  %v2679_v24 = vld [vmem:[%s9079_s4 + $0x30] sm:$0xff]  ;;  %v6822_v25 = vpack.c.bf16 %v5135_v23, %v5134_v22  ;;  %v5147_v22 = vld [vmem:[%s9036_s10] ss:$0 sm:$0xff] }
 0x667   : > { %6779 = vmatprep.subr.bf16.mxu1 %v7303_v0  ;;  %v6834_v27 = vpack.c.bf16 %v2680_v26, %v2679_v24 }
 0x66a   : > { %6781 = vmatpush3.bf16.msra.mxu1 %v6780_v30 }
 0x66b   : > { %6782 = vmatprep.subr.bf16.mxu1 %v7303_v0 }
 0x66e   : > { %6784 = vmatpush3.bf16.msra.mxu1 %v6783_v36 }
 0x66f   : > { %6785 = vmatprep.subr.bf16.mxu1 %v7303_v0 }
 0x672   : > { %6787 = vmatpush3.bf16.msra.mxu1 %v6786_v43  ;;  %v5141_v43 = vld [vmem:[%s9079_s4 + $0x98] sm:$0xff] }
 0x673   : > { %6788 = vmatprep.subr.bf16.mxu1 %v7303_v0 }
 0x734   : > { %v2330_v46 = vpop.f32.mrb[8].mxu1 }
 0x735   : > { %v6009_v47 = vpop.f32.mrb[9].mxu1 }
 0x736   : > { %v5142_v47 = vld [vmem:[%s9079_s4 + $0xa0] sm:$0xff] }
 0x738   : > { %v2403_v48 = vpop.f32.mrb[10].mxu1 }
 0x739   : > { %v2407_v49 = vmax.f32 %v2330_v46, %v2403_v48  ;;  %v6014_v50 = vpop.f32.mrb[11].mxu1  ;;  %v6840_v46 = vpack.c.bf16 %v5141_v43, %v5140_v42  ;;  %v5143_v48 = vld [vmem:[%s9079_s4 + $0xa8] sm:$0xff]  ;;  %v3034_v43 = vld [vmem:[%s9050_s24] sm:$0xf] }
 0x73a   : > { %v5144_v50 = vld [vmem:[%s9079_s4 + $0xb0] sm:$0xff]  ;;  %v5155_v42 = vld [vmem:[%s9039_s13 + $0x88] sm:$0xff] }
 0x73b   : > { %2410 = vst.msk [vmem:[#allocation2 + $0x1] sm:$0x3] %vm1400_vm2, %v2407_v49  ;;  %v6843_v49 = vpack.c.bf16 %v5143_v48, %v5142_v47  ;;  %v6846_v52 = vpack.c.bf16 %v5145_v51, %v5144_v50  ;;  %v5158_v48 = vld [vmem:[%s9039_s13 + $0xa0] sm:$0xff]  ;;  %v5160_v51 = vld [vmem:[%s9039_s13 + $0xb0] sm:$0xff] }
 0x742   : > { %v2420_v56 = vld [vmem:[#allocation2 + $0x1] sm:$0x3] }
 0x743   : > { %v2576_v57 = vld [vmem:[#allocation2 + $0x2] sm:$0x3]  ;;  %v2411_v58 = vld [vmem:[#allocation2] sm:$0x3]  ;;  %6032 = vmatmul.mubr.msk.f32.vlgmr.msra.gmra.mrb[12].mxu1 %vm1403_vm5, %v2420_v56 }
 0x744   : > { %6070 = vmatmul.mubr.msk.f32.vlgmr.msra.gmra.mrb[8].mxu0 %vm1403_vm5, %v2576_v57  ;;  %2670 = vst.msk [vmem:[#allocation2 + $0x3] sm:$0x1] %vm1986_vm7, %v7302_v5  ;;  %2669 = vst.msk [vmem:[#allocation2] sm:$0x1] %vm1986_vm7, %v7302_v5  ;;  %6790 = vmatpush3.bf16.msra.mxu1 %v6789_v53  ;;  %v2930_v56 = vld [vmem:[%s9037_s11] sm:$0xff]  ;;  %v6848_v57 = vpack.c.bf16 %v2933_v55, %v2931_v54  ;;  %v5163_v55 = vld [vmem:[%s9039_s13 + $0xc8] sm:$0xff] }
 0x745   : > { %6050 = vmatprep.mubr.msk.f32.mxu1 %vm7305_vm3, %v7302_v5  ;;  %6791 = vmatprep.subr.bf16.mxu1 %v7303_v0  ;;  %v5162_v54 = vld [vmem:[%s9039_s13 + $0xc0] sm:$0xff] }
 0x746   : > { %6107 = vmatprep.mubr.msk.f32.mxu0 %vm7305_vm3, %v7302_v5  ;;  %6826 = vmatpush3.bf16.msra.mxu0 %v6825_v9  ;;  %v6858_v9 = vpack.c.bf16 %v2940_v8, %v2938_v7  ;;  %v3196_v7 = vld [vmem:[%s9039_s13 + $0x8] sm:$0xff] }
 0x747   : > { %6827 = vmatprep.subr.bf16.mxu0 %v7303_v0 }
 0x748   : > { %6793 = vmatpush3.bf16.msra.mxu1 %v6792_v59  ;;  %v2935_v59 = vld [vmem:[%s9037_s11 + $0x28] sm:$0xff] }
 0x749   : > { %6794 = vmatprep.subr.bf16.mxu1 %v7303_v0 }
 0x74a   : > { %6829 = vmatpush3.bf16.msra.mxu0 %v6828_v15  ;;  %v6862_v15 = vpack.c.bf16 %v2944_v14, %v2942_v13  ;;  %v3199_v14 = vld [vmem:[%s9039_s13 + $0x20] sm:$0xff] }
 0x74b   : > { %6830 = vmatprep.subr.bf16.mxu0 %v7303_v0 }
 0x74c   : > { %6796 = vmatpush3.bf16.msra.mxu1 %v6795_v62  ;;  %v6852_v62 = vpack.c.bf16 %v2937_v60, %v2935_v59  ;;  %v5166_v60 = vld [vmem:[%s9039_s13 + $0xe0] sm:$0xff] }
 0x74d   : > { %6797 = vmatprep.subr.bf16.mxu1 %v7303_v0 }
 0x74e   : > { %6832 = vmatpush3.bf16.msra.mxu0 %v6831_v21 }
 0x74f   : > { %6833 = vmatprep.subr.bf16.mxu0 %v7303_v0 }
 0x750   : > { %6799 = vmatpush3.bf16.msra.mxu1 %v6798_v2  ;;  %v2939_v2 = vld [vmem:[%s9037_s11 + $0x48] sm:$0xff] }
 0x751   : > { %6812 = vmatprep.subr.bf16.mxu1 %v7303_v0 }
 0x752   : > { %6835 = vmatpush3.bf16.msra.mxu0 %v6834_v27  ;;  %v2948_v27 = vlaneseq }
 0x753   : > { %6051 = vmatmul.mubr.msk.f32.vlgmr.msra.gmra.mrb[14].mxu1 %vm1403_vm5, %v2411_v58  ;;  %v2932_v58 = vld [vmem:[%s9037_s11 + $0x10] sm:$0xff]  ;;  %6849 = vmatprep.subr.bf16.mxu0 %v6848_v57 }
 0x754   : > { %6088 = vmatprep.mubr.msk.f32.mxu1 %vm7305_vm3, %v7302_v5  ;;  %6814 = vmatpush3.bf16.msra.mxu1 %v6813_v6  ;;  %v6850_v61 = vpack.c.bf16 %v2932_v58, %v2930_v56  ;;  %v6856_v6 = vpack.c.bf16 %v2941_v3, %v2939_v2  ;;  %v6877_v56 = vpack.c.bf16 %v5163_v55, %v5162_v54  ;;  %v5164_v57 = vld [vmem:[%s9039_s13 + $0xd0] sm:$0xff]  ;;  %v5165_v58 = vld [vmem:[%s9039_s13 + $0xd8] sm:$0xff] }
 0x755   : > { %6815 = vmatprep.subr.bf16.mxu1 %v7303_v0  ;;  %v6880_v59 = vpack.c.bf16 %v5165_v58, %v5164_v57  ;;  %v6886_v2 = vpack.c.bf16 %v5169_v1, %v5168_v63  ;;  %v5184_v55 = vld [vmem:[%s9039_s13 + $0x170] sm:$0xff]  ;;  %v3472_v1 = vld [vmem:[%s9041_s15 + $0x28] sm:$0xff] }
 0x756   : > { %v3469_v63 = vld [vmem:[%s9041_s15 + $0x10] sm:$0xff] }
 0x758   : > { %6817 = vmatpush3.bf16.msra.mxu1 %v6816_v12  ;;  %v6860_v12 = vpack.c.bf16 %v2945_v11, %v2943_v10  ;;  %v3198_v10 = vld [vmem:[%s9039_s13 + $0x18] sm:$0xff] }
 0x759   : > { %6818 = vmatprep.subr.bf16.mxu1 %v7303_v0 }
 0x75c   : > { %6820 = vmatpush3.bf16.msra.mxu1 %v6819_v18 }
 0x75d   : > { %6821 = vmatprep.subr.bf16.mxu1 %v7303_v0 }
 0x760   : > { %6823 = vmatpush3.bf16.msra.mxu1 %v6822_v25 }
 0x761   : > { %6836 = vmatprep.subr.bf16.mxu1 %v7303_v0 }
 0x816   : > { %v2499_v28 = vpop.f32.mrb[12].mxu1 }
 0x817   : > { %v2655_v29 = vpop.f32.mrb[8].mxu0  ;;  %v6033_v30 = vpop.f32.mrb[13].mxu1 }
 0x818   : > { %v6071_v31 = vpop.f32.mrb[9].mxu0 }
 0x819   : > { %v2946_v31 = vld [vmem:[%s9038_s12] sm:$0x3] }
 0x826   : > { %v2572_v32 = vpop.f32.mrb[14].mxu1 }
 0x827   : > { %v2573_v33 = vadd.f32 %v2572_v32, %v2499_v28  ;;  %v6052_v34 = vpop.f32.mrb[15].mxu1  ;;  %v2949_v28 = vshrl.u32 %v2948_v27, 7  ;;  %v3208_v27 = vld [vmem:[%s9039_s13 + $0x68] sm:$0xff] }
 0x829   : > { %v2659_v36 = vadd.f32 %v2655_v29, %v2573_v33  ;;  %v8136_v29 = vsub.s32 0, %v2949_v28  ;;  %v8138_v30 = vsub.s32 1, %v2949_v28 }
 0x82b   : > { %v2667_v37 = vadd.f32 %v5127_v35, %v2659_v36  ;;  %v2951_v32 = vrot.slane %v2946_v31, %v8136_v29  ;;  %v2955_v33 = vrot.slane %v2946_v31, %v8138_v30  ;;  %v3209_v31 = vld [vmem:[%s9039_s13 + $0x70] sm:$0xff] }
 0x82d   : > { %v2668_v38 = vmax.f32 %v2667_v37, 0.0 }
 0x82f   : > { %2671 = vst.msk [vmem:[#allocation2 + $0x1] sm:$0x3] %vm1400_vm2, %v2668_v38 }
 0x836   : > { %v2681_v44 = vld [vmem:[#allocation2 + $0x1] sm:$0x3] }
 0x837   : > { %v2672_v45 = vld [vmem:[#allocation2] sm:$0x3]  ;;  %6089 = vmatmul.mubr.msk.f32.vlgmr.msra.gmra.mrb[16].mxu1 %vm1403_vm5, %v2681_v44  ;;  %v2837_v53 = vld [vmem:[#allocation2 + $0x2] sm:$0x3] }
 0x838   : > { %6108 = vmatmul.mubr.msk.f32.vlgmr.msra.gmra.mrb[10].mxu0 %vm1403_vm5, %v2672_v45  ;;  %3191 = vst [vmem:[#allocation2] sm:$0x1] %v7302_v5  ;;  %6838 = vmatpush3.bf16.msra.mxu1 %v6837_v41  ;;  %v5154_v41 = vld [vmem:[%s9039_s13 + $0x80] sm:$0xff]  ;;  %v5156_v45 = vld [vmem:[%s9039_s13 + $0x90] sm:$0xff] }
 0x839   : > { %6126 = vmatprep.mubr.msk.f32.mxu1 %vm7305_vm3, %v7302_v5  ;;  %6839 = vmatprep.subr.bf16.mxu1 %v7303_v0  ;;  %v6865_v44 = vpack.c.bf16 %v5155_v42, %v5154_v41  ;;  %v5175_v41 = vld [vmem:[%s9039_s13 + $0x128] sm:$0xff] }
 0x83a   : > { %3025 = vmatprep.mubr.f32.mxu0 %v7302_v5  ;;  %6851 = vmatpush1.bf16.msra.mxu0 %v6850_v61  ;;  %v5167_v61 = vld [vmem:[%s9039_s13 + $0xe8] sm:$0xff] }
 0x83b   : > { %6853 = vmatprep.subr.bf16.mxu0 %v6852_v62  ;;  %v6883_v62 = vpack.c.bf16 %v5167_v61, %v5166_v60  ;;  %v3470_v60 = vld [vmem:[%s9041_s15 + $0x18] sm:$0xff]  ;;  %v3467_v61 = vld [vmem:[%s9041_s15] sm:$0xff] }
 0x83c   : > { %6841 = vmatpush3.bf16.msra.mxu1 %v6840_v46  ;;  %v5157_v46 = vld [vmem:[%s9039_s13 + $0x98] sm:$0xff] }
 0x83d   : > { %6842 = vmatprep.subr.bf16.mxu1 %v7303_v0  ;;  %v6868_v47 = vpack.c.bf16 %v5157_v46, %v5156_v45  ;;  %v5178_v46 = vld [vmem:[%s9039_s13 + $0x140] sm:$0xff] }
 0x83e   : > { %6855 = vmatpush1.bf16.msra.mxu0 %v6854_v4 }
 0x83f   : > { %6857 = vmatprep.subr.bf16.mxu0 %v6856_v6  ;;  %v3195_v6 = vld [vmem:[%s9039_s13] sm:$0xff] }
 0x840   : > { %6844 = vmatpush3.bf16.msra.mxu1 %v6843_v49  ;;  %v5159_v49 = vld [vmem:[%s9039_s13 + $0xa8] sm:$0xff]  ;;  %v6889_v8 = vpack.c.bf16 %v3196_v7, %v3195_v6  ;;  %v3471_v6 = vld [vmem:[%s9041_s15 + $0x20] sm:$0xff]  ;;  %v3473_v7 = vld [vmem:[%s9041_s15 + $0x30] sm:$0xff] }
 0x841   : > { %6845 = vmatprep.subr.bf16.mxu1 %v7303_v0  ;;  %v6871_v50 = vpack.c.bf16 %v5159_v49, %v5158_v48  ;;  %v5180_v49 = vld [vmem:[%s9039_s13 + $0x150] sm:$0xff] }
 0x842   : > { %6859 = vmatpush1.bf16.msra.mxu0 %v6858_v9  ;;  %v3197_v9 = vld [vmem:[%s9039_s13 + $0x10] sm:$0xff] }
 0x843   : > { %6861 = vmatprep.subr.bf16.mxu0 %v6860_v12  ;;  %v6892_v13 = vpack.c.bf16 %v3198_v10, %v3197_v9  ;;  %v3478_v9 = vld [vmem:[%s9041_s15 + $0x58] sm:$0xff]  ;;  %v6942_v10 = vpack.c.bf16 %v3473_v7, %v3471_v6  ;;  %v5197_v7 = vld [vmem:[%s9043_s17 + $0xa0] sm:$0xff] }
 0x844   : > { %6847 = vmatpush3.bf16.msra.mxu1 %v6846_v52  ;;  %v5161_v52 = vld [vmem:[%s9039_s13 + $0xb8] sm:$0xff] }
 0x845   : > { %6129 = vmatprep.subr.mxu1 %v7302_v5 }
 0x846   : > { %6863 = vmatpush1.bf16.msra.mxu0 %v6862_v15  ;;  %v3200_v15 = vld [vmem:[%s9039_s13 + $0x28] sm:$0xff] }
 0x847   : > { %6127 = vmatmul.mubr.msk.f32.vlgmr.msra.gmra.mrb[18].mxu1 %vm1403_vm5, %v2837_v53  ;;  %6976 = vmatprep.subr.bf16.mxu0 %v7303_v0  ;;  %v6874_v53 = vpack.c.bf16 %v5161_v52, %v5160_v51  ;;  %v5182_v52 = vld [vmem:[%s9039_s13 + $0x160] sm:$0xff] }
 0x848   : > { %6131 = vmatprep.mubr.msk.f32.mxu1 %vm7305_vm3, %v7302_v5 }
 0x90a   : > { %v2760_v16 = vpop.f32.mrb[16].mxu1 }
 0x90b   : > { %v2833_v17 = vpop.f32.mrb[10].mxu0  ;;  %v6090_v19 = vpop.f32.mrb[17].mxu1 }
 0x90c   : > { %v2834_v18 = vadd.f32 %v2833_v17, %v2760_v16  ;;  %v6109_v20 = vpop.f32.mrb[11].mxu0  ;;  %v6895_v16 = vpack.c.bf16 %v3200_v15, %v3199_v14  ;;  %v3201_v17 = vld [vmem:[%s9039_s13 + $0x30] sm:$0xff]  ;;  %v3480_v15 = vld [vmem:[%s9041_s15 + $0x68] sm:$0xff] }
 0x90d   : > { %v3203_v20 = vld [vmem:[%s9039_s13 + $0x40] sm:$0xff] }
 0x91a   : > { %v2916_v21 = vpop.f32.mrb[18].mxu1 }
 0x91b   : > { %v2920_v23 = vadd.f32 %v2916_v21, %v2834_v18  ;;  %v6128_v24 = vpop.f32.mrb[19].mxu1  ;;  %v3202_v18 = vld [vmem:[%s9039_s13 + $0x38] sm:$0xff]  ;;  %v3204_v21 = vld [vmem:[%s9039_s13 + $0x48] sm:$0xff] }
 0x91c   : > { %v6898_v19 = vpack.c.bf16 %v3202_v18, %v3201_v17  ;;  %v3206_v24 = vld [vmem:[%s9039_s13 + $0x58] sm:$0xff]  ;;  %v3479_v18 = vld [vmem:[%s9041_s15 + $0x60] sm:$0xff] }
 0x91d   : > { %v2928_v25 = vadd.f32 %v5147_v22, %v2920_v23  ;;  %v6901_v22 = vpack.c.bf16 %v3204_v21, %v3203_v20  ;;  %v3205_v23 = vld [vmem:[%s9039_s13 + $0x50] sm:$0xff] }
 0x91f   : > { %v2929_v26 = vmax.f32 %v2928_v25, 0.0  ;;  %v6904_v25 = vpack.c.bf16 %v3206_v24, %v3205_v23 }
 0x921   : > { %5148 = vmatmul.mubr.msk.f32.vlgmr.msra.gmra.mrb[12].mxu0 %vm1403_vm5, %v2929_v26  ;;  %v3207_v26 = vld [vmem:[%s9039_s13 + $0x60] sm:$0xff] }
 0x922   : > { %6321 = vmatprep.mubr.msk.f32.mxu0 %vm7305_vm3, %v7302_v5  ;;  %v6907_v28 = vpack.c.bf16 %v3208_v27, %v3207_v26  ;;  %v5186_v27 = vld [vmem:[%s9040_s14] ss:$0 sm:$0xff] }
 0x9f4   : > { %v3027_v34 = vpop.f32.mrb[12].mxu0 }
 0x9f5   : > { %v3029_v35 = vpop.f32.mrb[13].mxu0  ;;  %v3028_v36 = vadd.f32 %v3027_v34, %v2951_v32  ;;  %v3210_v32 = vld [vmem:[%s9039_s13 + $0x78] sm:$0xff]  ;;  %v5170_v34 = vld [vmem:[%s9039_s13 + $0x100] sm:$0xff] }
 0x9f6   : > { %v3030_v37 = vadd.f32 %v3029_v35, %v2955_v33  ;;  %v6910_v33 = vpack.c.bf16 %v3210_v32, %v3209_v31  ;;  %v5171_v35 = vld [vmem:[%s9039_s13 + $0x108] sm:$0xff] }
 0x9f7   : > { %v3032_v40 = vmax.f32 %v3028_v36, 0.0  ;;  %v6913_v36 = vpack.c.bf16 %v5171_v35, %v5170_v34  ;;  %v3729_v34 = vld [vmem:[%s9043_s17] sm:$0xff]  ;;  %v3730_v35 = vld [vmem:[%s9043_s17 + $0x8] sm:$0xff] }
 0x9f8   : > { %v3033_v38 = vmax.f32 %v3030_v37, 0.0  ;;  %v5172_v37 = vld [vmem:[%s9039_s13 + $0x110] sm:$0xff] }
 0x9fa   : > { %6130 = vmatpush3.msk.msra.mxu1 %vm3041_vm11, %v3033_v38  ;;  %v5173_v38 = vld [vmem:[%s9039_s13 + $0x118] sm:$0xff] }
 0x9fb   : > { %6132 = vmatmul.mubr.msk.f32.vlgmr.msra.gmra.mrb[20].mxu1 %vm3037_vm12, %v5149_v39  ;;  %6134 = vmatprep.subr.mxu1 %v7302_v5  ;;  %v6916_v39 = vpack.c.bf16 %v5173_v38, %v5172_v37  ;;  %v3731_v37 = vld [vmem:[%s9043_s17 + $0x10] sm:$0xff]  ;;  %v3732_v38 = vld [vmem:[%s9043_s17 + $0x18] sm:$0xff] }
 0x9fc   : > { %6135 = vmatpush3.msk.msra.mxu1 %vm3041_vm11, %v3032_v40  ;;  %6136 = vmatprep.mubr.msk.f32.mxu1 %vm7305_vm3, %v7302_v5  ;;  %v5174_v40 = vld [vmem:[%s9039_s13 + $0x120] sm:$0xff] }
 0x9fd   : > { %6864 = vmatprep.subr.bf16.mxu1 %v7303_v0  ;;  %v6919_v42 = vpack.c.bf16 %v5175_v41, %v5174_v40  ;;  %v3733_v40 = vld [vmem:[%s9043_s17 + $0x20] sm:$0xff]  ;;  %v3734_v41 = vld [vmem:[%s9043_s17 + $0x28] sm:$0xff] }
 0xa03   : > { %6137 = vmatmul.mubr.msk.f32.vlgmr.msra.gmra.mrb[20].mxu1 %vm3037_vm12, %v3034_v43  ;;  %v5176_v43 = vld [vmem:[%s9039_s13 + $0x130] sm:$0xff] }
 0xa04   : > { %6866 = vmatpush3.bf16.msra.mxu1 %v6865_v44  ;;  %6171 = vmatprep.mubr.msk.f32.mxu1 %vm7305_vm3, %v7302_v5  ;;  %v5177_v44 = vld [vmem:[%s9039_s13 + $0x138] sm:$0xff] }
 0xa05   : > { %6867 = vmatprep.subr.bf16.mxu1 %v7303_v0  ;;  %v6922_v45 = vpack.c.bf16 %v5177_v44, %v5176_v43  ;;  %v3735_v43 = vld [vmem:[%s9043_s17 + $0x30] sm:$0xff]  ;;  %v3736_v44 = vld [vmem:[%s9043_s17 + $0x38] sm:$0xff] }
 0xa08   : > { %6869 = vmatpush3.bf16.msra.mxu1 %v6868_v47  ;;  %v5179_v47 = vld [vmem:[%s9039_s13 + $0x148] sm:$0xff] }
 0xa09   : > { %6870 = vmatprep.subr.bf16.mxu1 %v7303_v0  ;;  %v6925_v48 = vpack.c.bf16 %v5179_v47, %v5178_v46  ;;  %v3737_v46 = vld [vmem:[%s9043_s17 + $0x40] sm:$0xff]  ;;  %v3738_v47 = vld [vmem:[%s9043_s17 + $0x48] sm:$0xff] }
 0xa0c   : > { %6872 = vmatpush3.bf16.msra.mxu1 %v6871_v50  ;;  %v5181_v50 = vld [vmem:[%s9039_s13 + $0x158] sm:$0xff] }
 0xa0d   : > { %6873 = vmatprep.subr.bf16.mxu1 %v7303_v0  ;;  %v6928_v51 = vpack.c.bf16 %v5181_v50, %v5180_v49  ;;  %v3739_v49 = vld [vmem:[%s9043_s17 + $0x50] sm:$0xff]  ;;  %v3740_v50 = vld [vmem:[%s9043_s17 + $0x58] sm:$0xff] }
 0xa10   : > { %6875 = vmatpush3.bf16.msra.mxu1 %v6874_v53  ;;  %v5183_v53 = vld [vmem:[%s9039_s13 + $0x168] sm:$0xff] }
 0xa11   : > { %6876 = vmatprep.subr.bf16.mxu1 %v7303_v0  ;;  %v6931_v54 = vpack.c.bf16 %v5183_v53, %v5182_v52  ;;  %v3483_v52 = vld [vmem:[%s9042_s16] sm:$0x3] }
 0xa12   : > { %v3488_v53 = vrot.slane %v3483_v52, %v8136_v29 }
 0xa14   : > { %6878 = vmatpush3.bf16.msra.mxu1 %v6877_v56  ;;  %v5185_v56 = vld [vmem:[%s9039_s13 + $0x178] sm:$0xff] }
 0xa15   : > { %6879 = vmatprep.subr.bf16.mxu1 %v7303_v0  ;;  %v6934_v57 = vpack.c.bf16 %v5185_v56, %v5184_v55 }
 0xa18   : > { %6881 = vmatpush3.bf16.msra.mxu1 %v6880_v59  ;;  %v3468_v59 = vld [vmem:[%s9041_s15 + $0x8] sm:$0xff] }
 0xa19   : > { %6882 = vmatprep.subr.bf16.mxu1 %v7303_v0 }
 0xa1c   : > { %6884 = vmatpush3.bf16.msra.mxu1 %v6883_v62  ;;  %v6936_v62 = vpack.c.bf16 %v3470_v60, %v3468_v59  ;;  %v8435_v60 = vld [vmem:[%s9050_s24 + $0x10] sm:$0xff] }
 0xa1d   : > { %6885 = vmatprep.subr.bf16.mxu1 %v7303_v0 }
 0xa20   : > { %6887 = vmatpush3.bf16.msra.mxu1 %v6886_v2  ;;  %v3474_v2 = vld [vmem:[%s9041_s15 + $0x38] sm:$0xff] }
 0xa21   : > { %6888 = vmatprep.subr.bf16.mxu1 %v7303_v0 }
 0xad6   : > { %v3187_v3 = vpop.f32.mrb[20].mxu1 }
 0xad7   : > { %3193 = vst [vmem:[#allocation2 + $0x1] sm:$0xf] %v3187_v3  ;;  %v6138_v4 = vpop.f32.mrb[21].mxu1  ;;  %v6938_v3 = vpack.c.bf16 %v3469_v63, %v3467_v61  ;;  %v5194_v63 = vld [vmem:[%s9043_s17 + $0x88] sm:$0xff] }
 0xad8   : > { %v6940_v4 = vpack.c.bf16 %v3474_v2, %v3472_v1  ;;  %v8454_v1 = vld [vmem:[%s9050_s24] sm:$0xff] }
 0xade   : > { %v3211_v11 = vld [vmem:[#allocation2 + $0x1] sm:$0xf] }
 0xadf   : > { %v3194_v12 = vld [vmem:[#allocation2] sm:$0xf]  ;;  %6172 = vmatmul.mubr.f32.vlgmr.msra.gmra.mrb[22].mxu1 %v3211_v11 }
 0xae0   : > { %3725 = vst [vmem:[#allocation2] sm:$0x3] %v7302_v5  ;;  %6890 = vmatpush3.bf16.msra.mxu1 %v6889_v8  ;;  %6206 = vmatprep.mubr.msk.f32.mxu1 %vm7305_vm3, %v7302_v5  ;;  %v3369_v58 = vld [vmem:[#allocation2 + $0x2] sm:$0xf]  ;;  %v3476_v8 = vld [vmem:[%s9041_s15 + $0x48] sm:$0xff] }
 0xae1   : > { %6891 = vmatprep.subr.bf16.mxu1 %v7303_v0  ;;  %v6944_v11 = vpack.c.bf16 %v3478_v9, %v3476_v8  ;;  %v5198_v8 = vld [vmem:[%s9043_s17 + $0xa8] sm:$0xff] }
 0xae2   : > { %v6959_v9 = vpack.c.bf16 %v5198_v8, %v5197_v7  ;;  %v5219_v7 = vld [vmem:[%s9043_s17 + $0x150] sm:$0xff]  ;;  %v5220_v8 = vld [vmem:[%s9043_s17 + $0x158] sm:$0xff] }
 0xae4   : > { %6893 = vmatpush3.bf16.msra.mxu1 %v6892_v13  ;;  %v3477_v13 = vld [vmem:[%s9041_s15 + $0x50] sm:$0xff] }
 0xae5   : > { %6894 = vmatprep.subr.bf16.mxu1 %v7303_v0 }
 0xae8   : > { %6896 = vmatpush3.bf16.msra.mxu1 %v6895_v16  ;;  %v3482_v16 = vld [vmem:[%s9041_s15 + $0x78] sm:$0xff] }
 0xae9   : > { %6897 = vmatprep.subr.bf16.mxu1 %v7303_v0  ;;  %v6948_v17 = vpack.c.bf16 %v3482_v16, %v3480_v15  ;;  %v5203_v16 = vld [vmem:[%s9043_s17 + $0xd0] sm:$0xff] }
 0xaec   : > { %6899 = vmatpush3.bf16.msra.mxu1 %v6898_v19  ;;  %v3481_v19 = vld [vmem:[%s9041_s15 + $0x70] sm:$0xff] }
 0xaed   : > { %6900 = vmatprep.subr.bf16.mxu1 %v7303_v0  ;;  %v6950_v20 = vpack.c.bf16 %v3481_v19, %v3479_v18  ;;  %v5205_v19 = vld [vmem:[%s9043_s17 + $0xe0] sm:$0xff] }
 0xaf0   : > { %6902 = vmatpush3.bf16.msra.mxu1 %v6901_v22 }
 0xaf1   : > { %6903 = vmatprep.subr.bf16.mxu1 %v7303_v0 }
 0xaf4   : > { %6905 = vmatpush3.bf16.msra.mxu1 %v6904_v25 }
 0xaf5   : > { %6906 = vmatprep.subr.bf16.mxu1 %v7303_v0 }
 0xaf8   : > { %6908 = vmatpush3.bf16.msra.mxu1 %v6907_v28 }
 0xaf9   : > { %6909 = vmatprep.subr.bf16.mxu1 %v7303_v0 }
 0xafc   : > { %6911 = vmatpush3.bf16.msra.mxu1 %v6910_v33 }
 0xafd   : > { %6912 = vmatprep.subr.bf16.mxu1 %v7303_v0 }
 0xaff   : > { %6207 = vmatmul.mubr.f32.vlgmr.msra.gmra.mrb[24].mxu1 %v3194_v12  ;;  %v3475_v12 = vld [vmem:[%s9041_s15 + $0x40] sm:$0xff] }
 0xb00   : > { %6914 = vmatpush3.bf16.msra.mxu1 %v6913_v36  ;;  %6241 = vmatprep.mubr.msk.f32.mxu1 %vm7305_vm3, %v7302_v5  ;;  %v6946_v14 = vpack.c.bf16 %v3477_v13, %v3475_v12  ;;  %v6977_v36 = vpack.c.bf16 %v3730_v35, %v3729_v34  ;;  %v5201_v13 = vld [vmem:[%s9043_s17 + $0xc0] sm:$0xff] }
 0xb01   : > { %6915 = vmatprep.subr.bf16.mxu1 %v7303_v0  ;;  %v5209_v35 = vld [vmem:[%s9043_s17 + $0x100] sm:$0xff] }
 0xb02   : > { %6978 = vmatpush3.bf16.msra.mxu0 %v6977_v36  ;;  %v5210_v36 = vld [vmem:[%s9043_s17 + $0x108] sm:$0xff] }
 0xb03   : > { %6979 = vmatprep.subr.bf16.mxu0 %v7303_v0 }
 0xb04   : > { %6917 = vmatpush3.bf16.msra.mxu1 %v6916_v39  ;;  %v6980_v39 = vpack.c.bf16 %v3732_v38, %v3731_v37  ;;  %v5225_v37 = vld [vmem:[%s9043_s17 + $0x180] sm:$0xff]  ;;  %v5226_v38 = vld [vmem:[%s9043_s17 + $0x188] sm:$0xff] }
 0xb05   : > { %6918 = vmatprep.subr.bf16.mxu1 %v7303_v0 }
 0xb06   : > { %6981 = vmatpush3.bf16.msra.mxu0 %v6980_v39  ;;  %v7001_v39 = vpack.c.bf16 %v5210_v36, %v5209_v35  ;;  %v5245_v35 = vld [vmem:[%s9043_s17 + $0x220] sm:$0xff]  ;;  %v5246_v36 = vld [vmem:[%s9043_s17 + $0x228] sm:$0xff] }
 0xb07   : > { %6982 = vmatprep.subr.bf16.mxu0 %v7303_v0 }
 0xb08   : > { %6920 = vmatpush3.bf16.msra.mxu1 %v6919_v42  ;;  %v6983_v42 = vpack.c.bf16 %v3734_v41, %v3733_v40  ;;  %v7025_v40 = vpack.c.bf16 %v5226_v38, %v5225_v37  ;;  %v5211_v41 = vld [vmem:[%s9043_s17 + $0x110] sm:$0xff]  ;;  %v5248_v38 = vld [vmem:[%s9043_s17 + $0x238] sm:$0xff] }
 0xb09   : > { %6921 = vmatprep.subr.bf16.mxu1 %v7303_v0  ;;  %v5247_v37 = vld [vmem:[%s9043_s17 + $0x230] sm:$0xff] }
 0xb0a   : > { %6984 = vmatpush3.bf16.msra.mxu0 %v6983_v42  ;;  %v5212_v42 = vld [vmem:[%s9043_s17 + $0x118] sm:$0xff] }
 0xb0b   : > { %6985 = vmatprep.subr.bf16.mxu0 %v7303_v0 }
 0xb0c   : > { %6923 = vmatpush3.bf16.msra.mxu1 %v6922_v45  ;;  %v6986_v45 = vpack.c.bf16 %v3736_v44, %v3735_v43  ;;  %v5227_v43 = vld [vmem:[%s9043_s17 + $0x190] sm:$0xff]  ;;  %v5228_v44 = vld [vmem:[%s9043_s17 + $0x198] sm:$0xff] }
 0xb0d   : > { %6924 = vmatprep.subr.bf16.mxu1 %v7303_v0 }
 0xb0e   : > { %6987 = vmatpush3.bf16.msra.mxu0 %v6986_v45 }
 0xb0f   : > { %6988 = vmatprep.subr.bf16.mxu0 %v7303_v0 }
 0xb10   : > { %6926 = vmatpush3.bf16.msra.mxu1 %v6925_v48  ;;  %v6989_v48 = vpack.c.bf16 %v3738_v47, %v3737_v46  ;;  %v7004_v47 = vpack.c.bf16 %v5212_v42, %v5211_v41  ;;  %v5251_v42 = vld [vmem:[%s9043_s17 + $0x250] sm:$0xff] }
 0xb11   : > { %6927 = vmatprep.subr.bf16.mxu1 %v7303_v0 }
 0xb12   : > { %6990 = vmatpush3.bf16.msra.mxu0 %v6989_v48  ;;  %v7028_v48 = vpack.c.bf16 %v5228_v44, %v5227_v43  ;;  %v5252_v43 = vld [vmem:[%s9043_s17 + $0x258] sm:$0xff] }
 0xb13   : > { %6991 = vmatprep.subr.bf16.mxu0 %v7303_v0  ;;  %v7064_v44 = vpack.c.bf16 %v5252_v43, %v5251_v42  ;;  %v5260_v42 = vld [vmem:[%s9050_s24 + $0x18] sm:$0xff]  ;;  %v5267_v43 = vld [vmem:[%s9047_s21 + $0x90] sm:$0xff] }
 0xb14   : > { %6929 = vmatpush3.bf16.msra.mxu1 %v6928_v51  ;;  %v6992_v51 = vpack.c.bf16 %v3740_v50, %v3739_v49  ;;  %v5213_v49 = vld [vmem:[%s9043_s17 + $0x120] sm:$0xff]  ;;  %v5214_v50 = vld [vmem:[%s9043_s17 + $0x128] sm:$0xff] }
 0xb15   : > { %6930 = vmatprep.subr.bf16.mxu1 %v7303_v0 }
 0xb16   : > { %6993 = vmatpush3.bf16.msra.mxu0 %v6992_v51  ;;  %v5229_v51 = vld [vmem:[%s9043_s17 + $0x1a0] sm:$0xff] }
 0xb17   : > { %6994 = vmatprep.subr.bf16.mxu0 %v7303_v0 }
 0xb18   : > { %6932 = vmatpush3.bf16.msra.mxu1 %v6931_v54  ;;  %v3492_v54 = vrot.slane %v3483_v52, %v8138_v30  ;;  %v5230_v52 = vld [vmem:[%s9043_s17 + $0x1a8] sm:$0xff] }
 0xb19   : > { %6933 = vmatprep.subr.bf16.mxu1 %v7303_v0 }
 0xb1c   : > { %6935 = vmatpush3.bf16.msra.mxu1 %v6934_v57 }
 0xb1d   : > { %6937 = vmatprep.subr.bf16.mxu1 %v6936_v62  ;;  %v5193_v62 = vld [vmem:[%s9043_s17 + $0x80] sm:$0xff] }
 0xb1e   : > { %v6953_v2 = vpack.c.bf16 %v5194_v63, %v5193_v62  ;;  %v5217_v62 = vld [vmem:[%s9043_s17 + $0x140] sm:$0xff]  ;;  %v5218_v63 = vld [vmem:[%s9043_s17 + $0x148] sm:$0xff] }
 0xb1f   : > { %6242 = vmatmul.mubr.f32.vlgmr.msra.gmra.mrb[26].mxu1 %v3369_v58 }
 0xb20   : > { %3562 = vmatprep.mubr.f32.mxu1 %v7302_v5  ;;  %6939 = vmatpush1.bf16.msra.mxu1 %v6938_v3  ;;  %v5195_v3 = vld [vmem:[%s9043_s17 + $0x90] sm:$0xff] }
 0xb21   : > { %6941 = vmatprep.subr.bf16.mxu1 %v6940_v4  ;;  %v5196_v4 = vld [vmem:[%s9043_s17 + $0x98] sm:$0xff] }
 0xb22   : > { %v6956_v6 = vpack.c.bf16 %v5196_v4, %v5195_v3  ;;  %v5234_v3 = vld [vmem:[%s9043_s17 + $0x1c8] sm:$0xff]  ;;  %v7013_v4 = vpack.c.bf16 %v5218_v63, %v5217_v62  ;;  %v4185_v62 = vld [vmem:[%s9045_s19 + $0x30] sm:$0xff] }
 0xb23   : > { %v4188_v63 = vld [vmem:[%s9045_s19 + $0x48] sm:$0xff] }
 0xb24   : > { %6943 = vmatpush1.bf16.msra.mxu1 %v6942_v10  ;;  %v5199_v10 = vld [vmem:[%s9043_s17 + $0xb0] sm:$0xff] }
 0xb25   : > { %6945 = vmatprep.subr.bf16.mxu1 %v6944_v11  ;;  %v5200_v11 = vld [vmem:[%s9043_s17 + $0xb8] sm:$0xff] }
 0xb26   : > { %v6962_v12 = vpack.c.bf16 %v5200_v11, %v5199_v10  ;;  %v5236_v10 = vld [vmem:[%s9043_s17 + $0x1d8] sm:$0xff]  ;;  %v7016_v11 = vpack.c.bf16 %v5220_v8, %v5219_v7  ;;  %v4189_v7 = vld [vmem:[%s9045_s19 + $0x50] sm:$0xff] }
 0xb28   : > { %6947 = vmatpush1.bf16.msra.mxu1 %v6946_v14  ;;  %v5202_v14 = vld [vmem:[%s9043_s17 + $0xc8] sm:$0xff] }
 0xb29   : > { %6949 = vmatprep.subr.bf16.mxu1 %v6948_v17  ;;  %v6965_v15 = vpack.c.bf16 %v5202_v14, %v5201_v13  ;;  %v5204_v17 = vld [vmem:[%s9043_s17 + $0xd8] sm:$0xff]  ;;  %v5221_v13 = vld [vmem:[%s9043_s17 + $0x160] sm:$0xff]  ;;  %v5222_v14 = vld [vmem:[%s9043_s17 + $0x168] sm:$0xff] }
 0xb2a   : > { %v6968_v18 = vpack.c.bf16 %v5204_v17, %v5203_v16  ;;  %v5238_v16 = vld [vmem:[%s9043_s17 + $0x1e8] sm:$0xff]  ;;  %v7019_v17 = vpack.c.bf16 %v5222_v14, %v5221_v13  ;;  %v4193_v13 = vld [vmem:[%s9045_s19 + $0x70] sm:$0xff] }
 0xb2c   : > { %6951 = vmatpush1.bf16.msra.mxu1 %v6950_v20  ;;  %v5206_v20 = vld [vmem:[%s9043_s17 + $0xe8] sm:$0xff] }
 0xb2d   : > { %6244 = vmatprep.subr.mxu1 %v7302_v5 }
 0xbb2   : > { %v3295_v21 = vpop.f32.mrb[22].mxu1 }
 0xbb3   : > { %v6173_v22 = vpop.f32.mrb[23].mxu1 }
 0xbb4   : > { %v6971_v22 = vpack.c.bf16 %v5206_v20, %v5205_v19  ;;  %v5223_v19 = vld [vmem:[%s9043_s17 + $0x170] sm:$0xff]  ;;  %v5224_v20 = vld [vmem:[%s9043_s17 + $0x178] sm:$0xff] }
 0xbd2   : > { %v3365_v23 = vpop.f32.mrb[24].mxu1 }
 0xbd3   : > { %v3366_v24 = vadd.f32 %v3365_v23, %v3295_v21  ;;  %v6208_v25 = vpop.f32.mrb[25].mxu1  ;;  %v3741_v21 = vld [vmem:[%s9043_s17 + $0x60] sm:$0xff]  ;;  %v3742_v23 = vld [vmem:[%s9043_s17 + $0x68] sm:$0xff] }
 0xbd4   : > { %v5207_v25 = vld [vmem:[%s9043_s17 + $0xf0] sm:$0xff] }
 0xbf2   : > { %v3453_v26 = vpop.f32.mrb[26].mxu1 }
 0xbf3   : > { %v3457_v28 = vadd.f32 %v3453_v26, %v3366_v24  ;;  %v6243_v31 = vpop.f32.mrb[27].mxu1  ;;  %v6995_v24 = vpack.c.bf16 %v3742_v23, %v3741_v21  ;;  %v5208_v26 = vld [vmem:[%s9043_s17 + $0xf8] sm:$0xff]  ;;  %v5239_v21 = vld [vmem:[%s9043_s17 + $0x1f0] sm:$0xff]  ;;  %v7022_v23 = vpack.c.bf16 %v5224_v20, %v5223_v19 }
 0xbf4   : > { %v3744_v31 = vld [vmem:[%s9043_s17 + $0x78] sm:$0xff] }
 0xbf5   : > { %v3465_v32 = vadd.f32 %v5186_v27, %v3457_v28  ;;  %v3743_v27 = vld [vmem:[%s9043_s17 + $0x70] sm:$0xff]  ;;  %6996 = vmatpush3.bf16.msra.mxu0 %v6995_v24  ;;  %v6974_v28 = vpack.c.bf16 %v5208_v26, %v5207_v25  ;;  %v5241_v25 = vld [vmem:[%s9043_s17 + $0x200] sm:$0xff]  ;;  %v5242_v26 = vld [vmem:[%s9043_s17 + $0x208] sm:$0xff] }
 0xbf6   : > { %6997 = vmatprep.subr.bf16.mxu0 %v7303_v0 }
 0xbf7   : > { %v3466_v33 = vmax.f32 %v3465_v32, 0.0  ;;  %v6998_v32 = vpack.c.bf16 %v3744_v31, %v3743_v27  ;;  %v7049_v27 = vpack.c.bf16 %v5242_v26, %v5241_v25  ;;  %v5244_v31 = vld [vmem:[%s9043_s17 + $0x218] sm:$0xff] }
 0xbf9   : > { %5187 = vmatmul.mubr.msk.f32.vlgmr.msra.gmra.mrb[28].mxu1 %vm1403_vm5, %v3466_v33  ;;  %6999 = vmatpush3.bf16.msra.mxu0 %v6998_v32 }
 0xbfa   : > { %6246 = vmatprep.mubr.msk.f32.mxu1 %vm7305_vm3, %v7302_v5  ;;  %7024 = vmatprep.subr.bf16.mxu0 %v7303_v0 }
 0xccc   : > { %v3564_v55 = vpop.f32.mrb[28].mxu1 }
 0xccd   : > { %v3566_v56 = vpop.f32.mrb[29].mxu1  ;;  %v3565_v57 = vadd.f32 %v3564_v55, %v3488_v53  ;;  %v7007_v53 = vpack.c.bf16 %v5214_v50, %v5213_v49  ;;  %v5215_v55 = vld [vmem:[%s9043_s17 + $0x130] sm:$0xff]  ;;  %v5256_v49 = vld [vmem:[%s9043_s17 + $0x278] sm:$0xff] }
 0xcce   : > { %v3567_v58 = vadd.f32 %v3566_v56, %v3492_v54  ;;  %v7031_v54 = vpack.c.bf16 %v5230_v52, %v5229_v51  ;;  %v5216_v56 = vld [vmem:[%s9043_s17 + $0x138] sm:$0xff]  ;;  %v4180_v52 = vld [vmem:[%s9045_s19 + $0x8] sm:$0xff] }
 0xccf   : > { %v3569_v61 = vmax.f32 %v3565_v57, 0.0  ;;  %v5231_v57 = vld [vmem:[%s9043_s17 + $0x1b0] sm:$0xff] }
 0xcd0   : > { %v3570_v59 = vmax.f32 %v3567_v58, 0.0  ;;  %v5232_v58 = vld [vmem:[%s9043_s17 + $0x1b8] sm:$0xff] }
 0xcd2   : > { %6245 = vmatpush3.msk.msra.mxu1 %vm2260_vm9, %v3570_v59  ;;  %v7010_v59 = vpack.c.bf16 %v5216_v56, %v5215_v55  ;;  %v4184_v56 = vld [vmem:[%s9045_s19 + $0x28] sm:$0xff] }
 0xcd3   : > { %6247 = vmatmul.mubr.msk.f32.vlgmr.msra.gmra.mrb[30].mxu1 %vm2256_vm10, %v8435_v60  ;;  %6249 = vmatprep.subr.mxu1 %v7302_v5 }
 0xcd4   : > { %6250 = vmatpush3.msk.msra.mxu1 %vm2260_vm9, %v3569_v61  ;;  %6251 = vmatprep.mubr.msk.f32.mxu1 %vm7305_vm3, %v7302_v5  ;;  %v7034_v61 = vpack.c.bf16 %v5232_v58, %v5231_v57  ;;  %v4186_v57 = vld [vmem:[%s9045_s19 + $0x38] sm:$0xff] }
 0xcd5   : > { %6952 = vmatprep.subr.bf16.mxu1 %v7303_v0 }
 0xcdb   : > { %6252 = vmatmul.mubr.msk.f32.vlgmr.msra.gmra.mrb[30].mxu1 %vm2256_vm10, %v8454_v1 }
 0xcdc   : > { %6954 = vmatpush3.bf16.msra.mxu1 %v6953_v2  ;;  %6286 = vmatprep.mubr.msk.f32.mxu1 %vm7305_vm3, %v7302_v5  ;;  %v5233_v2 = vld [vmem:[%s9043_s17 + $0x1c0] sm:$0xff] }
 0xcdd   : > { %6955 = vmatprep.subr.bf16.mxu1 %v7303_v0 }
 0xce0   : > { %6957 = vmatpush3.bf16.msra.mxu1 %v6956_v6  ;;  %v7037_v6 = vpack.c.bf16 %v5234_v3, %v5233_v2  ;;  %v4190_v2 = vld [vmem:[%s9045_s19 + $0x58] sm:$0xff] }
 0xce1   : > { %6958 = vmatprep.subr.bf16.mxu1 %v7303_v0 }
 0xce4   : > { %6960 = vmatpush3.bf16.msra.mxu1 %v6959_v9  ;;  %v5235_v9 = vld [vmem:[%s9043_s17 + $0x1d0] sm:$0xff] }
 0xce5   : > { %6961 = vmatprep.subr.bf16.mxu1 %v7303_v0 }
 0xce8   : > { %6963 = vmatpush3.bf16.msra.mxu1 %v6962_v12  ;;  %v7040_v12 = vpack.c.bf16 %v5236_v10, %v5235_v9  ;;  %v4192_v9 = vld [vmem:[%s9045_s19 + $0x68] sm:$0xff]  ;;  %v4194_v10 = vld [vmem:[%s9045_s19 + $0x78] sm:$0xff] }
 0xce9   : > { %6964 = vmatprep.subr.bf16.mxu1 %v7303_v0 }
 0xcec   : > { %6966 = vmatpush3.bf16.msra.mxu1 %v6965_v15  ;;  %v5237_v15 = vld [vmem:[%s9043_s17 + $0x1e0] sm:$0xff] }
 0xced   : > { %6967 = vmatprep.subr.bf16.mxu1 %v7303_v0 }
 0xcf0   : > { %6969 = vmatpush3.bf16.msra.mxu1 %v6968_v18  ;;  %v7043_v18 = vpack.c.bf16 %v5238_v16, %v5237_v15 }
 0xcf1   : > { %6970 = vmatprep.subr.bf16.mxu1 %v7303_v0 }
 0xcf4   : > { %6972 = vmatpush3.bf16.msra.mxu1 %v6971_v22  ;;  %v5240_v22 = vld [vmem:[%s9043_s17 + $0x1f8] sm:$0xff] }
 0xcf5   : > { %6973 = vmatprep.subr.bf16.mxu1 %v7303_v0  ;;  %v7046_v24 = vpack.c.bf16 %v5240_v22, %v5239_v21 }
 0xcf8   : > { %6975 = vmatpush3.bf16.msra.mxu1 %v6974_v28  ;;  %v5243_v28 = vld [vmem:[%s9043_s17 + $0x210] sm:$0xff] }
 0xcf9   : > { %7000 = vmatprep.subr.bf16.mxu1 %v7303_v0 }
 0xdae   : > { %v8524_v33 = vpop.f32.mrb[30].mxu1 }
 0xdaf   : > { %3727 = vst [vmem:[#allocation2 + $0x2] sm:$0xff] %v8524_v33  ;;  %v6253_v34 = vpop.f32.mrb[31].mxu1 }
 0xdb0   : > { %v7052_v34 = vpack.c.bf16 %v5244_v31, %v5243_v28 }
 0xdb6   : > { %v3745_v45 = vld [vmem:[#allocation2 + $0x1] sm:$0xff] }
 0xdb7   : > { %v3728_v46 = vld [vmem:[#allocation2] sm:$0xff]  ;;  %6287 = vmatmul.mubr.f32.vlgmr.msra.gmra.mrb[32].mxu1 %v3745_v45 }
 0xdb8   : > { %6322 = vmatmul.mubr.f32.vlgmr.msra.gmra.mrb[14].mxu0 %v3728_v46  ;;  %4449 = vst [vmem:[#allocation2] sm:$0x3] %v7302_v5  ;;  %7002 = vmatpush3.bf16.msra.mxu1 %v7001_v39  ;;  %v3992_v32 = vld [vmem:[#allocation2 + $0x3] sm:$0xff]  ;;  %v7058_v39 = vpack.c.bf16 %v5248_v38, %v5247_v37 }
 0xdb9   : > { %7026 = vmatpush3.bf16.msra.mxu0 %v7025_v40  ;;  %7003 = vmatprep.subr.bf16.mxu1 %v7303_v0  ;;  %v5250_v40 = vld [vmem:[%s9043_s17 + $0x248] sm:$0xff]  ;;  %v5253_v45 = vld [vmem:[%s9043_s17 + $0x260] sm:$0xff] }
 0xdba   : > { %7027 = vmatprep.subr.bf16.mxu0 %v7303_v0  ;;  %6356 = vmatprep.mubr.msk.f32.mxu1 %vm7305_vm3, %v7302_v5  ;;  %v5254_v46 = vld [vmem:[%s9043_s17 + $0x268] sm:$0xff] }
 0xdbb   : > { %6391 = vmatprep.mubr.msk.f32.mxu0 %vm7305_vm3, %v7302_v5  ;;  %v4081_v51 = vld [vmem:[#allocation2 + $0x4] sm:$0xff] }
 0xdbc   : > { %7005 = vmatpush3.bf16.msra.mxu1 %v7004_v47  ;;  %v7067_v47 = vpack.c.bf16 %v5254_v46, %v5253_v45  ;;  %v4284_v45 = vld [vmem:[%s9050_s24 + $0x8] sm:$0xff] }
 0xdbd   : > { %7029 = vmatpush3.bf16.msra.mxu0 %v7028_v48  ;;  %7006 = vmatprep.subr.bf16.mxu1 %v7303_v0  ;;  %v5255_v48 = vld [vmem:[%s9043_s17 + $0x270] sm:$0xff] }
 0xdbe   : > { %7030 = vmatprep.subr.bf16.mxu0 %v7303_v0  ;;  %v7070_v50 = vpack.c.bf16 %v5256_v49, %v5255_v48  ;;  %v5271_v49 = vld [vmem:[%s9047_s21 + $0xb0] sm:$0xff] }
 0xdc0   : > { %7008 = vmatpush3.bf16.msra.mxu1 %v7007_v53  ;;  %v4182_v53 = vld [vmem:[%s9045_s19 + $0x18] sm:$0xff] }
 0xdc1   : > { %7032 = vmatpush3.bf16.msra.mxu0 %v7031_v54  ;;  %7009 = vmatprep.subr.bf16.mxu1 %v7303_v0  ;;  %v4179_v54 = vld [vmem:[%s9045_s19] sm:$0xff]  ;;  %v7072_v55 = vpack.c.bf16 %v4182_v53, %v4180_v52  ;;  %v5274_v53 = vld [vmem:[%s9047_s21 + $0xc8] sm:$0xff] }
 0xdc2   : > { %7033 = vmatprep.subr.bf16.mxu0 %v7303_v0  ;;  %v5273_v52 = vld [vmem:[%s9047_s21 + $0xc0] sm:$0xff] }
 0xdc4   : > { %7011 = vmatpush3.bf16.msra.mxu1 %v7010_v59  ;;  %v7076_v59 = vpack.c.bf16 %v4186_v57, %v4184_v56  ;;  %v5277_v57 = vld [vmem:[%s9047_s21 + $0xe0] sm:$0xff] }
 0xdc5   : > { %7035 = vmatpush3.bf16.msra.mxu0 %v7034_v61  ;;  %7012 = vmatprep.subr.bf16.mxu1 %v7303_v0  ;;  %v4183_v61 = vld [vmem:[%s9045_s19 + $0x20] sm:$0xff] }
 0xdc6   : > { %7036 = vmatprep.subr.bf16.mxu0 %v7303_v0  ;;  %v7078_v3 = vpack.c.bf16 %v4185_v62, %v4183_v61  ;;  %v5279_v61 = vld [vmem:[%s9047_s21 + $0xf0] sm:$0xff]  ;;  %v5280_v62 = vld [vmem:[%s9047_s21 + $0xf8] sm:$0xff] }
 0xdc8   : > { %7014 = vmatpush3.bf16.msra.mxu1 %v7013_v4  ;;  %v7080_v4 = vpack.c.bf16 %v4190_v2, %v4188_v63  ;;  %v7116_v63 = vpack.c.bf16 %v5280_v62, %v5279_v61  ;;  %v4455_v2 = vld [vmem:[%s9047_s21] sm:$0xff]  ;;  %v5302_v61 = vld [vmem:[%s9047_s21 + $0x1a8] sm:$0xff] }
 0xdc9   : > { %7038 = vmatpush3.bf16.msra.mxu0 %v7037_v6  ;;  %7015 = vmatprep.subr.bf16.mxu1 %v7303_v0  ;;  %v4187_v6 = vld [vmem:[%s9045_s19 + $0x40] sm:$0xff] }
 0xdca   : > { %7039 = vmatprep.subr.bf16.mxu0 %v7303_v0  ;;  %v7082_v8 = vpack.c.bf16 %v4189_v7, %v4187_v6 }
 0xdcc   : > { %7017 = vmatpush3.bf16.msra.mxu1 %v7016_v11  ;;  %v7084_v11 = vpack.c.bf16 %v4194_v10, %v4192_v9  ;;  %v4458_v9 = vld [vmem:[%s9047_s21 + $0x18] sm:$0xff] }
 0xdcd   : > { %7041 = vmatpush3.bf16.msra.mxu0 %v7040_v12  ;;  %7018 = vmatprep.subr.bf16.mxu1 %v7303_v0  ;;  %v4191_v12 = vld [vmem:[%s9045_s19 + $0x60] sm:$0xff] }
 0xdce   : > { %7042 = vmatprep.subr.bf16.mxu0 %v7303_v0  ;;  %v7086_v14 = vpack.c.bf16 %v4193_v13, %v4191_v12  ;;  %v4459_v13 = vld [vmem:[%s9047_s21 + $0x20] sm:$0xff] }
 0xdd0   : > { %7020 = vmatpush3.bf16.msra.mxu1 %v7019_v17 }
 0xdd1   : > { %7044 = vmatpush3.bf16.msra.mxu0 %v7043_v18  ;;  %7021 = vmatprep.subr.bf16.mxu1 %v7303_v0 }
 0xdd2   : > { %7045 = vmatprep.subr.bf16.mxu0 %v7303_v0 }
 0xdd4   : > { %7023 = vmatpush3.bf16.msra.mxu1 %v7022_v23 }
 0xdd5   : > { %7047 = vmatpush3.bf16.msra.mxu0 %v7046_v24  ;;  %7048 = vmatprep.subr.bf16.mxu1 %v7303_v0 }
 0xdd6   : > { %7073 = vmatprep.subr.bf16.mxu0 %v7072_v55  ;;  %v5275_v55 = vld [vmem:[%s9047_s21 + $0xd0] sm:$0xff] }
 0xdd7   : > { %6357 = vmatmul.mubr.f32.vlgmr.msra.gmra.mrb[34].mxu1 %v8524_v33  ;;  %v7055_v33 = vpack.c.bf16 %v5246_v36, %v5245_v35  ;;  %v4195_v35 = vld [vmem:[%s9046_s20] sm:$0x3] }
 0xdd8   : > { %6392 = vmatmul.mubr.f32.vlgmr.msra.gmra.mrb[16].mxu0 %v3992_v32  ;;  %7050 = vmatpush3.bf16.msra.mxu1 %v7049_v27  ;;  %v5257_v27 = vld [vmem:[%s9044_s18] ss:$0 sm:$0xff]  ;;  %v4200_v36 = vrot.slane %v4195_v35, %v8136_v29 }
 0xdd9   : > { %6426 = vmatprep.mubr.msk.f32.mxu1 %vm7305_vm3, %v7302_v5  ;;  %7051 = vmatprep.subr.bf16.mxu1 %v7303_v0 }
 0xdda   : > { %4274 = vmatprep.mubr.f32.mxu0 %v7302_v5  ;;  %v5249_v5 = vld [vmem:[%s9043_s17 + $0x240] sm:$0xff] }
 0xddb   : > { %v7061_v41 = vpack.c.bf16 %v5250_v40, %v5249_v5  ;;  %v5265_v40 = vld [vmem:[%s9047_s21 + $0x80] sm:$0xff] }
 0xddc   : > { %7053 = vmatpush3.bf16.msra.mxu1 %v7052_v34 }
 0xddd   : > { %7054 = vmatprep.subr.bf16.mxu1 %v7303_v0 }
 0xde0   : > { %7056 = vmatpush3.bf16.msra.mxu1 %v7055_v33  ;;  %v4204_v33 = vrot.slane %v4195_v35, %v8138_v30  ;;  %v5281_v35 = vld [vmem:[%s9047_s21 + $0x100] sm:$0xff] }
 0xde1   : > { %7057 = vmatprep.subr.bf16.mxu1 %v7303_v0 }
 0xde4   : > { %7059 = vmatpush3.bf16.msra.mxu1 %v7058_v39 }
 0xde5   : > { %7060 = vmatprep.subr.bf16.mxu1 %v7303_v0 }
 0xde8   : > { %7062 = vmatpush3.bf16.msra.mxu1 %v7061_v41 }
 0xde9   : > { %7063 = vmatprep.subr.bf16.mxu1 %v7303_v0 }
 0xdec   : > { %7065 = vmatpush3.bf16.msra.mxu1 %v7064_v44  ;;  %v5268_v44 = vld [vmem:[%s9047_s21 + $0x98] sm:$0xff] }
 0xded   : > { %7066 = vmatprep.subr.bf16.mxu1 %v7303_v0  ;;  %v7092_v46 = vpack.c.bf16 %v5268_v44, %v5267_v43  ;;  %v5289_v43 = vld [vmem:[%s9047_s21 + $0x140] sm:$0xff]  ;;  %v5290_v44 = vld [vmem:[%s9047_s21 + $0x148] sm:$0xff] }
 0xdf0   : > { %7068 = vmatpush3.bf16.msra.mxu1 %v7067_v47  ;;  %v5269_v47 = vld [vmem:[%s9047_s21 + $0xa0] sm:$0xff] }
 0xdf1   : > { %7069 = vmatprep.subr.bf16.mxu1 %v7303_v0  ;;  %v4181_v0 = vld [vmem:[%s9045_s19 + $0x10] sm:$0xff] }
 0xdf2   : > { %v7074_v58 = vpack.c.bf16 %v4181_v0, %v4179_v54  ;;  %v7104_v54 = vpack.c.bf16 %v5274_v53, %v5273_v52  ;;  %v5276_v0 = vld [vmem:[%s9047_s21 + $0xd8] sm:$0xff] }
 0xdf3   : > { %v7108_v56 = vpack.c.bf16 %v5276_v0, %v5275_v55  ;;  %v5296_v52 = vld [vmem:[%s9047_s21 + $0x178] sm:$0xff]  ;;  %v5298_v55 = vld [vmem:[%s9047_s21 + $0x188] sm:$0xff] }
 0xdf4   : > { %7071 = vmatpush3.bf16.msra.mxu1 %v7070_v50  ;;  %7075 = vmatpush1.bf16.msra.mxu0 %v7074_v58  ;;  %v5272_v50 = vld [vmem:[%s9047_s21 + $0xb8] sm:$0xff]  ;;  %v5278_v58 = vld [vmem:[%s9047_s21 + $0xe8] sm:$0xff] }
 0xdf5   : > { %7077 = vmatprep.subr.bf16.mxu0 %v7076_v59  ;;  %v7112_v59 = vpack.c.bf16 %v5278_v58, %v5277_v57  ;;  %v5300_v57 = vld [vmem:[%s9047_s21 + $0x198] sm:$0xff] }
 0xdf7   : > { %6427 = vmatmul.mubr.f32.vlgmr.msra.gmra.mrb[36].mxu1 %v4081_v51  ;;  %v7100_v51 = vpack.c.bf16 %v5272_v50, %v5271_v49  ;;  %v5294_v49 = vld [vmem:[%s9047_s21 + $0x168] sm:$0xff] }
 0xdf8   : > { %7079 = vmatpush1.bf16.msra.mxu0 %v7078_v3  ;;  %v4456_v3 = vld [vmem:[%s9047_s21 + $0x8] sm:$0xff] }
 0xdf9   : > { %7081 = vmatprep.subr.bf16.mxu0 %v7080_v4  ;;  %v7120_v4 = vpack.c.bf16 %v4456_v3, %v4455_v2  ;;  %v5303_v2 = vld [vmem:[%s9047_s21 + $0x1b0] sm:$0xff]  ;;  %v5304_v3 = vld [vmem:[%s9047_s21 + $0x1b8] sm:$0xff] }
 0xdfc   : > { %7083 = vmatpush1.bf16.msra.mxu0 %v7082_v8  ;;  %v4457_v8 = vld [vmem:[%s9047_s21 + $0x10] sm:$0xff] }
 0xdfd   : > { %7085 = vmatprep.subr.bf16.mxu0 %v7084_v11  ;;  %v7124_v12 = vpack.c.bf16 %v4458_v9, %v4457_v8  ;;  %v5307_v9 = vld [vmem:[%s9047_s21 + $0x1d0] sm:$0xff] }
 0xe00   : > { %7087 = vmatpush1.bf16.msra.mxu0 %v7086_v14  ;;  %v4460_v14 = vld [vmem:[%s9047_s21 + $0x28] sm:$0xff] }
 0xe8a   : > { %v3829_v15 = vpop.f32.mrb[32].mxu1 }
 0xe8b   : > { %v3899_v16 = vpop.f32.mrb[14].mxu0  ;;  %v6288_v18 = vpop.f32.mrb[33].mxu1 }
 0xe8c   : > { %v3900_v17 = vadd.f32 %v3899_v16, %v3829_v15  ;;  %v6323_v19 = vpop.f32.mrb[15].mxu0  ;;  %v7128_v16 = vpack.c.bf16 %v4460_v14, %v4459_v13  ;;  %v4462_v18 = vld [vmem:[%s9047_s21 + $0x38] sm:$0xff]  ;;  %v5310_v13 = vld [vmem:[%s9047_s21 + $0x1e8] sm:$0xff] }
 0xeaa   : > { %v3987_v20 = vpop.f32.mrb[34].mxu1 }
 0xeab   : > { %v4076_v21 = vpop.f32.mrb[16].mxu0  ;;  %v3991_v22 = vadd.f32 %v3987_v20, %v3900_v17  ;;  %v6358_v23 = vpop.f32.mrb[35].mxu1  ;;  %v4461_v17 = vld [vmem:[%s9047_s21 + $0x30] sm:$0xff]  ;;  %v4463_v20 = vld [vmem:[%s9047_s21 + $0x40] sm:$0xff] }
 0xeac   : > { %v6393_v24 = vpop.f32.mrb[17].mxu0  ;;  %v7132_v19 = vpack.c.bf16 %v4462_v18, %v4461_v17  ;;  %v4465_v23 = vld [vmem:[%s9047_s21 + $0x50] sm:$0xff]  ;;  %v5313_v18 = vld [vmem:[%s9047_s21 + $0x200] sm:$0xff] }
 0xead   : > { %v4080_v25 = vadd.f32 %v4076_v21, %v3991_v22  ;;  %v4464_v21 = vld [vmem:[%s9047_s21 + $0x48] sm:$0xff]  ;;  %v4466_v24 = vld [vmem:[%s9047_s21 + $0x58] sm:$0xff] }
 0xeae   : > { %v7136_v22 = vpack.c.bf16 %v4464_v21, %v4463_v20  ;;  %v5315_v21 = vld [vmem:[%s9047_s21 + $0x210] sm:$0xff] }
 0xeca   : > { %v4165_v26 = vpop.f32.mrb[36].mxu1 }
 0xecb   : > { %v4169_v28 = vadd.f32 %v4165_v26, %v4080_v25  ;;  %v6428_v31 = vpop.f32.mrb[37].mxu1  ;;  %v7140_v25 = vpack.c.bf16 %v4466_v24, %v4465_v23  ;;  %v4467_v26 = vld [vmem:[%s9047_s21 + $0x60] sm:$0xff] }
 0xecc   : > { %v4469_v31 = vld [vmem:[%s9047_s21 + $0x70] sm:$0xff] }
 0xecd   : > { %v4177_v32 = vadd.f32 %v5257_v27, %v4169_v28  ;;  %v4468_v27 = vld [vmem:[%s9047_s21 + $0x68] sm:$0xff] }
 0xece   : > { %v7144_v28 = vpack.c.bf16 %v4468_v27, %v4467_v26  ;;  %v5318_v26 = vld [vmem:[%s9047_s21 + $0x228] sm:$0xff] }
 0xecf   : > { %v4178_v34 = vmax.f32 %v4177_v32, 0.0  ;;  %v4470_v32 = vld [vmem:[%s9047_s21 + $0x78] sm:$0xff] }
 0xed1   : > { %5258 = vmatmul.mubr.msk.f32.vlgmr.msra.gmra.mrb[18].mxu0 %vm1403_vm5, %v4178_v34  ;;  %v7148_v34 = vpack.c.bf16 %v4470_v32, %v4469_v31  ;;  %v5319_v31 = vld [vmem:[%s9047_s21 + $0x230] sm:$0xff]  ;;  %v5320_v32 = vld [vmem:[%s9047_s21 + $0x238] sm:$0xff] }
 0xed2   : > { %6431 = vmatprep.mubr.msk.f32.mxu0 %vm1838_vm6, %v8435_v60  ;;  %v5266_v60 = vld [vmem:[%s9047_s21 + $0x88] sm:$0xff] }
 0xed3   : > { %v7088_v30 = vpack.c.bf16 %v5266_v60, %v5265_v40  ;;  %v5285_v40 = vld [vmem:[%s9047_s21 + $0x120] sm:$0xff]  ;;  %v5286_v60 = vld [vmem:[%s9047_s21 + $0x128] sm:$0xff] }
 0xfa4   : > { %v4276_v37 = vpop.f32.mrb[18].mxu0 }
 0xfa5   : > { %v4278_v38 = vpop.f32.mrb[19].mxu0  ;;  %v4277_v39 = vadd.f32 %v4276_v37, %v4200_v36  ;;  %v5282_v36 = vld [vmem:[%s9047_s21 + $0x108] sm:$0xff]  ;;  %v5283_v37 = vld [vmem:[%s9047_s21 + $0x110] sm:$0xff] }
 0xfa6   : > { %v4279_v5 = vadd.f32 %v4278_v38, %v4204_v33  ;;  %v7152_v33 = vpack.c.bf16 %v5282_v36, %v5281_v35  ;;  %v5284_v38 = vld [vmem:[%s9047_s21 + $0x118] sm:$0xff]  ;;  %v5321_v35 = vld [vmem:[%s9047_s21 + $0x240] sm:$0xff]  ;;  %v5322_v36 = vld [vmem:[%s9047_s21 + $0x248] sm:$0xff] }
 0xfa7   : > { %v4281_v29 = vmax.f32 %v4277_v39, 0.0  ;;  %v7156_v39 = vpack.c.bf16 %v5284_v38, %v5283_v37  ;;  %v5323_v37 = vld [vmem:[%s9047_s21 + $0x250] sm:$0xff]  ;;  %v5324_v38 = vld [vmem:[%s9047_s21 + $0x258] sm:$0xff] }
 0xfa8   : > { %v4282_v41 = vmax.f32 %v4279_v5, 0.0 }
 0xfaa   : > { %6429 = vmatprep.subr.mxu0 %v4282_v41 }
 0xfab   : > { %6430 = vmatpush3.msra.mxu0 %v4282_v41  ;;  %v7160_v41 = vpack.c.bf16 %v5286_v60, %v5285_v40  ;;  %v5326_v40 = vld [vmem:[%s9047_s21 + $0x268] sm:$0xff] }
 0xfac   : > { %6432 = vmatmul.mubr.msk.f32.vlgmr.msra.gmra.mrb[20].mxu0 %vm1838_vm6, %v5260_v42  ;;  %6434 = vmatprep.subr.mxu0 %v4281_v29  ;;  %v5287_v42 = vld [vmem:[%s9047_s21 + $0x130] sm:$0xff] }
 0xfad   : > { %6435 = vmatpush3.msra.mxu0 %v4281_v29  ;;  %6436 = vmatprep.mubr.msk.f32.mxu0 %vm1838_vm6, %v8454_v1  ;;  %v5270_v1 = vld [vmem:[%s9047_s21 + $0xa8] sm:$0xff]  ;;  %v5288_v29 = vld [vmem:[%s9047_s21 + $0x138] sm:$0xff] }
 0xfae   : > { %7089 = vmatprep.subr.bf16.mxu0 %v7088_v30  ;;  %v7096_v48 = vpack.c.bf16 %v5270_v1, %v5269_v47  ;;  %v5292_v47 = vld [vmem:[%s9047_s21 + $0x158] sm:$0xff] }
 0xfb4   : > { %6437 = vmatmul.mubr.msk.f32.vlgmr.msra.gmra.mrb[20].mxu0 %vm1838_vm6, %v4284_v45  ;;  %v7168_v45 = vpack.c.bf16 %v5290_v44, %v5289_v43  ;;  %v5329_v43 = vld [vmem:[%s9048_s22] ss:$0 sm:$0xff] }
 0xfb5   : > { %7091 = vmatpush3.bf16.msra.mxu0 %v7088_v30  ;;  %v7164_v30 = vpack.c.bf16 %v5288_v29, %v5287_v42  ;;  %v5328_v42 = vld [vmem:[%s9047_s21 + $0x278] sm:$0xff] }
 0xfb6   : > { %7093 = vmatprep.subr.bf16.mxu0 %v7092_v46 }
 0xfb9   : > { %7095 = vmatpush3.bf16.msra.mxu0 %v7092_v46  ;;  %v5291_v46 = vld [vmem:[%s9047_s21 + $0x150] sm:$0xff] }
 0xfba   : > { %7097 = vmatprep.subr.bf16.mxu0 %v7096_v48  ;;  %v7172_v1 = vpack.c.bf16 %v5292_v47, %v5291_v46 }
 0xfbd   : > { %7099 = vmatpush3.bf16.msra.mxu0 %v7096_v48  ;;  %v5293_v48 = vld [vmem:[%s9047_s21 + $0x160] sm:$0xff] }
 0xfbe   : > { %7101 = vmatprep.subr.bf16.mxu0 %v7100_v51  ;;  %v7176_v50 = vpack.c.bf16 %v5294_v49, %v5293_v48 }
 0xfc1   : > { %7103 = vmatpush3.bf16.msra.mxu0 %v7100_v51  ;;  %v5295_v51 = vld [vmem:[%s9047_s21 + $0x170] sm:$0xff] }
 0xfc2   : > { %7105 = vmatprep.subr.bf16.mxu0 %v7104_v54  ;;  %v7180_v53 = vpack.c.bf16 %v5296_v52, %v5295_v51 }
 0xfc5   : > { %7107 = vmatpush3.bf16.msra.mxu0 %v7104_v54  ;;  %v5297_v54 = vld [vmem:[%s9047_s21 + $0x180] sm:$0xff] }
 0xfc6   : > { %7109 = vmatprep.subr.bf16.mxu0 %v7108_v56  ;;  %v7184_v0 = vpack.c.bf16 %v5298_v55, %v5297_v54 }
 0xfc9   : > { %7111 = vmatpush3.bf16.msra.mxu0 %v7108_v56  ;;  %v5299_v56 = vld [vmem:[%s9047_s21 + $0x190] sm:$0xff] }
 0xfca   : > { %7113 = vmatprep.subr.bf16.mxu0 %v7112_v59  ;;  %v7188_v58 = vpack.c.bf16 %v5300_v57, %v5299_v56 }
 0xfcd   : > { %7115 = vmatpush3.bf16.msra.mxu0 %v7112_v59  ;;  %v5301_v59 = vld [vmem:[%s9047_s21 + $0x1a0] sm:$0xff] }
 0xfce   : > { %7117 = vmatprep.subr.bf16.mxu0 %v7116_v63 }
 0xfd1   : > { %7119 = vmatpush3.bf16.msra.mxu0 %v7116_v63  ;;  %v7192_v63 = vpack.c.bf16 %v5302_v61, %v5301_v59 }
 0xfd2   : > { %7121 = vmatprep.subr.bf16.mxu0 %v7120_v4 }
0x1087   : > { %v8825_v6 = vpop.f32.mrb[20].mxu0 }
0x1088   : > { %4452 = vst [vmem:[#allocation2 + $0xa] sm:$0xff] %v8825_v6  ;;  %v4440_v7 = vpop.f32.mrb[21].mxu0 }
0x1089   : > { %4451 = vst [vmem:[#allocation2 + $0x2] sm:$0xff] %v4440_v7 }
0x108f   : > { %v4737_v24 = vld [vmem:[#allocation2 + $0xb] sm:$0xff] }
0x1090   : > { %v4471_v10 = vld [vmem:[#allocation2 + $0x1] sm:$0xff]  ;;  %v4472_v11 = vld [vmem:[#allocation2 + $0x9] sm:$0xff] }
0x1091   : > { %6471 = vmatprep.mubr.f32.mxu0 %v4471_v10  ;;  %v4453_v15 = vld [vmem:[#allocation2] sm:$0xff]  ;;  %v4454_v5 = vld [vmem:[#allocation2 + $0x8] sm:$0xff]  ;;  %v5308_v10 = vld [vmem:[%s9047_s21 + $0x1d8] sm:$0xff] }
0x1092   : > { %6472 = vmatmul.mubr.f32.vlgmr.msra.gmra.mrb[22].mxu0 %v4472_v11  ;;  %v4736_v62 = vld [vmem:[#allocation2 + $0x3] sm:$0xff]  ;;  %v7204_v11 = vpack.c.bf16 %v5308_v10, %v5307_v9 }
0x1093   : > { %7123 = vmatpush3.bf16.msra.mxu0 %v7120_v4  ;;  %6506 = vmatprep.mubr.f32.mxu0 %v4453_v15  ;;  %v7196_v4 = vpack.c.bf16 %v5304_v3, %v5303_v2  ;;  %v5311_v15 = vld [vmem:[%s9047_s21 + $0x1f0] sm:$0xff]  ;;  %v4832_v27 = vld [vmem:[#allocation2 + $0x4] sm:$0xff] }
0x1094   : > { %7125 = vmatprep.subr.bf16.mxu0 %v7124_v12 }
0x1097   : > { %7127 = vmatpush3.bf16.msra.mxu0 %v7124_v12  ;;  %v5309_v12 = vld [vmem:[%s9047_s21 + $0x1e0] sm:$0xff] }
0x1098   : > { %7129 = vmatprep.subr.bf16.mxu0 %v7128_v16  ;;  %v7208_v14 = vpack.c.bf16 %v5310_v13, %v5309_v12 }
0x109b   : > { %7131 = vmatpush3.bf16.msra.mxu0 %v7128_v16  ;;  %v5312_v16 = vld [vmem:[%s9047_s21 + $0x1f8] sm:$0xff] }
0x109c   : > { %7133 = vmatprep.subr.bf16.mxu0 %v7132_v19  ;;  %v7212_v17 = vpack.c.bf16 %v5312_v16, %v5311_v15 }
0x109f   : > { %7135 = vmatpush3.bf16.msra.mxu0 %v7132_v19  ;;  %v5314_v19 = vld [vmem:[%s9047_s21 + $0x208] sm:$0xff] }
0x10a0   : > { %7137 = vmatprep.subr.bf16.mxu0 %v7136_v22  ;;  %v7216_v20 = vpack.c.bf16 %v5314_v19, %v5313_v18 }
0x10a3   : > { %7139 = vmatpush3.bf16.msra.mxu0 %v7136_v22  ;;  %v5316_v22 = vld [vmem:[%s9047_s21 + $0x218] sm:$0xff] }
0x10a4   : > { %7141 = vmatprep.subr.bf16.mxu0 %v7140_v25  ;;  %v7220_v23 = vpack.c.bf16 %v5316_v22, %v5315_v21 }
0x10a7   : > { %7143 = vmatpush3.bf16.msra.mxu0 %v7140_v25  ;;  %v5317_v25 = vld [vmem:[%s9047_s21 + $0x220] sm:$0xff] }
0x10a8   : > { %7145 = vmatprep.subr.bf16.mxu0 %v7144_v28 }
0x10ab   : > { %7147 = vmatpush3.bf16.msra.mxu0 %v7144_v28  ;;  %v7224_v28 = vpack.c.bf16 %v5318_v26, %v5317_v25 }
0x10ac   : > { %7149 = vmatprep.subr.bf16.mxu0 %v7148_v34 }
0x10af   : > { %7151 = vmatpush3.bf16.msra.mxu0 %v7148_v34  ;;  %v7228_v34 = vpack.c.bf16 %v5320_v32, %v5319_v31 }
0x10b0   : > { %7153 = vmatprep.subr.bf16.mxu0 %v7152_v33 }
0x10b2   : > { %6507 = vmatmul.mubr.f32.vlgmr.msra.gmra.mrb[22].mxu0 %v4454_v5  ;;  %v5325_v5 = vld [vmem:[%s9047_s21 + $0x260] sm:$0xff] }
0x10b3   : > { %7155 = vmatpush3.bf16.msra.mxu0 %v7152_v33  ;;  %6541 = vmatprep.mubr.f32.mxu0 %v4440_v7  ;;  %v5306_v7 = vld [vmem:[%s9047_s21 + $0x1c8] sm:$0xff]  ;;  %v7232_v33 = vpack.c.bf16 %v5322_v36, %v5321_v35  ;;  %v7240_v60 = vpack.c.bf16 %v5326_v40, %v5325_v5 }
0x10b4   : > { %7157 = vmatprep.subr.bf16.mxu0 %v7156_v39 }
0x10b7   : > { %7159 = vmatpush3.bf16.msra.mxu0 %v7156_v39  ;;  %v7236_v39 = vpack.c.bf16 %v5324_v38, %v5323_v37 }
0x10b8   : > { %7161 = vmatprep.subr.bf16.mxu0 %v7160_v41 }
0x10bb   : > { %7163 = vmatpush3.bf16.msra.mxu0 %v7160_v41  ;;  %v5327_v41 = vld [vmem:[%s9047_s21 + $0x270] sm:$0xff] }
0x10bc   : > { %7165 = vmatprep.subr.bf16.mxu0 %v7164_v30  ;;  %v7244_v29 = vpack.c.bf16 %v5328_v42, %v5327_v41 }
0x10bf   : > { %7167 = vmatpush3.bf16.msra.mxu0 %v7164_v30  ;;  %v4833_v30 = vld [vmem:[#allocation2 + $0xc] sm:$0xff] }
0x10c0   : > { %7169 = vmatprep.subr.bf16.mxu0 %v7168_v45 }
0x10c3   : > { %7171 = vmatpush3.bf16.msra.mxu0 %v7168_v45 }
0x10c4   : > { %7173 = vmatprep.subr.bf16.mxu0 %v7172_v1 }
0x10c7   : > { %7175 = vmatpush3.bf16.msra.mxu0 %v7172_v1 }
0x10c8   : > { %7177 = vmatprep.subr.bf16.mxu0 %v7176_v50 }
0x10cb   : > { %7179 = vmatpush3.bf16.msra.mxu0 %v7176_v50 }
0x10cc   : > { %7181 = vmatprep.subr.bf16.mxu0 %v7180_v53 }
0x10cf   : > { %7183 = vmatpush3.bf16.msra.mxu0 %v7180_v53 }
0x10d0   : > { %7185 = vmatprep.subr.bf16.mxu0 %v7184_v0 }
0x10d2   : > { %6542 = vmatmul.mubr.f32.vlgmr.msra.gmra.mrb[22].mxu0 %v8825_v6  ;;  %v5305_v6 = vld [vmem:[%s9047_s21 + $0x1c0] sm:$0xff] }
0x10d3   : > { %7187 = vmatpush3.bf16.msra.mxu0 %v7184_v0  ;;  %6576 = vmatprep.mubr.f32.mxu0 %v4736_v62  ;;  %v7200_v8 = vpack.c.bf16 %v5306_v7, %v5305_v6 }
0x10d4   : > { %7189 = vmatprep.subr.bf16.mxu0 %v7188_v58 }
0x10d7   : > { %7191 = vmatpush3.bf16.msra.mxu0 %v7188_v58 }
0x10d8   : > { %7193 = vmatprep.subr.bf16.mxu0 %v7192_v63 }
0x10db   : > { %7195 = vmatpush3.bf16.msra.mxu0 %v7192_v63 }
0x10dc   : > { %7197 = vmatprep.subr.bf16.mxu0 %v7196_v4 }
0x10df   : > { %7199 = vmatpush3.bf16.msra.mxu0 %v7196_v4 }
0x10e0   : > { %7201 = vmatprep.subr.bf16.mxu0 %v7200_v8 }
0x10e3   : > { %7203 = vmatpush3.bf16.msra.mxu0 %v7200_v8 }
0x10e4   : > { %7205 = vmatprep.subr.bf16.mxu0 %v7204_v11 }
0x10e7   : > { %7207 = vmatpush3.bf16.msra.mxu0 %v7204_v11 }
0x10e8   : > { %7209 = vmatprep.subr.bf16.mxu0 %v7208_v14 }
0x10eb   : > { %7211 = vmatpush3.bf16.msra.mxu0 %v7208_v14 }
0x10ec   : > { %7213 = vmatprep.subr.bf16.mxu0 %v7212_v17 }
0x10ef   : > { %7215 = vmatpush3.bf16.msra.mxu0 %v7212_v17 }
0x10f0   : > { %7217 = vmatprep.subr.bf16.mxu0 %v7216_v20 }
0x10f2   : > { %6577 = vmatmul.mubr.f32.vlgmr.msra.gmra.mrb[22].mxu0 %v4737_v24 }
0x10f3   : > { %7219 = vmatpush3.bf16.msra.mxu0 %v7216_v20  ;;  %6611 = vmatprep.mubr.f32.mxu0 %v4832_v27 }
0x10f4   : > { %7221 = vmatprep.subr.bf16.mxu0 %v7220_v23 }
0x10f7   : > { %7223 = vmatpush3.bf16.msra.mxu0 %v7220_v23 }
0x10f8   : > { %7225 = vmatprep.subr.bf16.mxu0 %v7224_v28 }
0x10fb   : > { %7227 = vmatpush3.bf16.msra.mxu0 %v7224_v28 }
0x10fc   : > { %7229 = vmatprep.subr.bf16.mxu0 %v7228_v34 }
0x10ff   : > { %7231 = vmatpush3.bf16.msra.mxu0 %v7228_v34 }
0x1100   : > { %7233 = vmatprep.subr.bf16.mxu0 %v7232_v33 }
0x1103   : > { %7235 = vmatpush3.bf16.msra.mxu0 %v7232_v33 }
0x1104   : > { %7237 = vmatprep.subr.bf16.mxu0 %v7236_v39 }
0x1107   : > { %7239 = vmatpush3.bf16.msra.mxu0 %v7236_v39 }
0x1108   : > { %7241 = vmatprep.subr.bf16.mxu0 %v7240_v60 }
0x110b   : > { %7243 = vmatpush3.bf16.msra.mxu0 %v7240_v60 }
0x110c   : > { %7245 = vmatprep.subr.bf16.mxu0 %v7244_v29 }
0x110f   : > { %7247 = vmatpush3.bf16.msra.mxu0 %v7244_v29 }
0x1112   : > { %6612 = vmatmul.mubr.f32.vlgmr.msra.gmra.mrb[22].mxu0 %v4833_v30 }
0x11e5   : > { %v6613_v44 = vpop.f32.mrb[22].mxu0 }
0x11e6   : > { %v4936_v45 = vadd.f32 %v6613_v44, %v5329_v43  ;;  %v4917_v46 = vpop.f32.mrb[23].mxu0 }
0x11e7   : > { %v4935_v47 = vadd.f32 %v5329_v43, %v4917_v46 }
0x11e8   : > { %4939 = vst.msk [vmem:[%s764_s28 + $0x8] sm:$0xff] %vm4937_vm13, %v4936_v45 }
0x11e9   : > { %4938 = vst.msk [vmem:[%s764_s28] sm:$0xff] %vm4937_vm13, %v4935_v47 }
0x11ea PF: > { %s35_s29 = sadd.s32 1, %s7300_s29  }
0x11eb   : > { %p32_p4 = scmp.ge.s32.totalorder %s35_s29, 4  }
0x11ed   :  { %34 = sbr.rel (!%p32_p4) target bundleno = 11 (0xb), region = 176 }

</bundles_post_ra>
